<compile_context>
chip_gen: v7x
topology: tpu7x:2x2x1
jax: 0.10.0
libtpu: 0.0.40
codegen_flags: <defaults>
</compile_context>

<pallas_src>
import functools

import jax
import jax.numpy as jnp
import numpy as np
from jax.experimental import pallas as pl
from jax.experimental.pallas import tpu as pltpu


# ----------------------------------------------------------------------------
# Fused Pallas kernel: conv1 + pool1 + conv2 + pool2 + linear, all in VMEM.
# ----------------------------------------------------------------------------
def _cnn_fused_kernel(p1_ref, w1_ref, b1_ref, w2_ref, b2_ref, sp_ref, w3_ref,
                      b3_ref, o_ref, a1s_ref, fl_ref, *,
                      B, K2, Q1, Q2, Hp1, Wp1, Hp2, Wp2, C1, C2):
    """All refs are whole-array VMEM blocks (grid=(1,)).

    p1_ref : (B*Q1*Hp1*Wp1, K1*K1*Cin) bf16  layer-1 pooled-im2col patch rows
    w1_ref : (K1*K1*Cin, C1) bf16            layer-1 weight  (tap-major, cin-minor rows)
    b1_ref : (1, C1) f32
    w2_ref : (K2*K2*C1, C2) bf16             layer-2 weight  (tap-major, cin-minor rows)
    b2_ref : (1, C2) f32
    sp_ref : (Q2*Hp2*Wp2, Hp1*Wp1) f32       0/1 pool-reorder selection matrix
    w3_ref : (Hp2*Wp2*C2, O) bf16            linear weight, (F, O), columns (h,w,c)-ordered
    b3_ref : (1, O) f32
    o_ref  : (B, O) f32
    a1s_ref: (K2, B*BLK, C1) bf16  scratch   K2 w-shifted, h-padded copies of layer-1 out
    fl_ref : (B, Hp2*Wp2*C2) f32   scratch   flattened layer-2 output
    """
    N1 = Hp1 * Wp1                 # layer-1 pooled positions per image (rows of a1)
    QP1 = Q1 * N1                  # layer-1 patch rows per image
    N2 = Hp2 * Wp2                 # layer-2 pooled positions per image
    PAD2 = (K2 - 1) // 2           # layer-2 conv padding
    BLK = N1 + 2 * PAD2 * Wp1      # rows per image inside the h-padded scratch

    w1 = w1_ref[...]
    b1 = b1_ref[...]

    # Zero the shifted-copy scratch once; the h-padding rows simply stay zero.
    a1s_ref[...] = jnp.zeros_like(a1s_ref)

    # w coordinate of every a1 row (rows are h*Wp1 + w raster) for the shift masks.
    wpos = jax.lax.broadcasted_iota(jnp.int32, (N1, C1), 0) & (Wp1 - 1)

    # ---------------- layer 1: conv + bias + relu + maxpool --------------------
    for b in range(B):
        acc = None
        for q in range(Q1):
            lhs = p1_ref[b * QP1 + q * N1:b * QP1 + (q + 1) * N1, :]
            y = jnp.dot(lhs, w1, preferred_element_type=jnp.float32)        # (N1, C1)
            acc = y if acc is None else jnp.maximum(acc, y)
        # relu(maxpool(conv)+b) == maxpool(relu(conv+b)): bias const / relu monotone.
        a1 = jnp.maximum(acc + b1, 0.0)                                      # (N1, C1) f32

        # K2 w-shifted, w-masked copies of a1, stored h-padded (layer-2 "im2col").
        for kw in range(K2):
            shift = PAD2 - kw
            rolled = a1 if shift == 0 else pltpu.roll(a1, shift=shift % N1, axis=0)
            wsrc = wpos + (kw - PAD2)
            valid = jnp.logical_and(wsrc >= 0, wsrc < Wp1)
            rolled = jnp.where(valid, rolled, 0.0)
            row0 = b * BLK + PAD2 * Wp1
            a1s_ref[kw, row0:row0 + N1, :] = rolled.astype(jnp.bfloat16)

    # --------- layer 2: conv as K2*K2 aligned shifted-slice matmuls ------------
    f2 = [jnp.zeros((N1, C2), jnp.float32) for _ in range(B)]
    for kh in range(K2):
        for kw in range(K2):
            t = kh * K2 + kw
            w2t = w2_ref[t * C1:(t + 1) * C1, :]                             # (C1, C2)
            for b in range(B):
                lhs = a1s_ref[kw, b * BLK + kh * Wp1:b * BLK + kh * Wp1 + N1, :]
                f2[b] = f2[b] + jnp.dot(lhs, w2t,
                                        preferred_element_type=jnp.float32)

    # ---------- layer-2 maxpool (exact selection matmul) + bias + relu ---------
    sp = sp_ref[...]
    b2 = b2_ref[...]
    for b in range(B):
        g = jnp.dot(sp, f2[b], preferred_element_type=jnp.float32)           # (Q2*N2, C2)
        m = g[0:N2]
        for q in range(1, Q2):
            m = jnp.maximum(m, g[q * N2:(q + 1) * N2])
        a2 = jnp.maximum(m + b2, 0.0)                                         # (N2, C2) f32
        # Flatten (h, w, c) onto the lane axis of the linear input.
        for r in range(N2):
            fl_ref[b:b + 1, r * C2:(r + 1) * C2] = a2[r:r + 1, :]

    # ------------------------------- linear ------------------------------------
    flat = fl_ref[...].astype(jnp.bfloat16)
    o_ref[...] = (jnp.dot(flat, w3_ref[...],
                          preferred_element_type=jnp.float32) + b3_ref[...])


# ----------------------------------------------------------------------------
# XLA-side glue (tiny): layer-1 pooled-im2col gather and constant matrices.
# ----------------------------------------------------------------------------
def _layer1_patch_rows(x_nhwc, K, pool):
    """(B,H,W,C) -> (B*pool*pool*Hp*Wp, K*K*C) bf16 pooled-im2col patch rows.

    Row order: image-major, pool-quadrant (dy,dx), pooled raster (hp*Wp + wp).
    Column order: tap-major (kh,kw), channel-minor.  One pad + one gather in XLA.
    """
    B, H, W, C = x_nhwc.shape
    pad = (K - 1) // 2
    Hp, Wp = H // pool, W // pool
    Wpad = W + 2 * pad
    xp = jnp.pad(x_nhwc, ((0, 0), (pad, pad), (pad, pad), (0, 0)))
    rows = xp.reshape(B, (H + 2 * pad) * Wpad, C)

    idx = np.empty((pool, pool, Hp, Wp, K, K), np.int32)
    for dy in range(pool):
        for dx in range(pool):
            for hp in range(Hp):
                for wp in range(Wp):
                    for kh in range(K):
                        for kw in range(K):
                            idx[dy, dx, hp, wp, kh, kw] = (
                                (pool * hp + dy + kh) * Wpad + pool * wp + dx + kw)
    g = jnp.take(rows, jnp.asarray(idx.reshape(-1)), axis=1)       # (B, Q*P*K*K, C)
    return g.reshape(B * pool * pool * Hp * Wp, K * K * C).astype(jnp.bfloat16)


def _pool_reorder_matrix(Hp, Wp, pool):
    """(pool*pool*Hq*Wq, Hp*Wp) 0/1 matrix: row (dy,dx,u,v) selects full-res raster
    position (pool*u+dy, pool*v+dx).  Max over the pool*pool row blocks == maxpool."""
    Hq, Wq = Hp // pool, Wp // pool
    S = np.zeros((pool * pool * Hq * Wq, Hp * Wp), np.float32)
    r = 0
    for dy in range(pool):
        for dx in range(pool):
            for u in range(Hq):
                for v in range(Wq):
                    S[r, (pool * u + dy) * Wp + pool * v + dx] = 1.0
                    r += 1
    return jnp.asarray(S)


# ----------------------------------------------------------------------------
# Wrapper: one pallas_call for the whole forward pass.
# ----------------------------------------------------------------------------
@functools.partial(jax.jit, static_argnames=("pools",))
def cnn_forward(x_nchw, params, pools):
    """Full CNN.forward for the default two-conv-block config.  x: (B,Cin,H,W)."""
    (w1, b1), (w2, b2) = params["conv"]
    lin_w, lin_b = params["lin_w"], params["lin_b"]
    pool1, pool2 = pools

    B, Cin, H, W = x_nchw.shape
    C1, _, K1, _ = w1.shape
    C2, _, K2, _ = w2.shape
    assert K1 % 2 == 1 and K2 % 2 == 1, "padding=(k-1)//2 assumes odd kernels"
    assert H % (pool1 * pool2) == 0 and W % (pool1 * pool2) == 0
    Hp1, Wp1 = H // pool1, W // pool1
    Hp2, Wp2 = Hp1 // pool2, Wp1 // pool2
    assert (Wp1 & (Wp1 - 1)) == 0, "in-kernel shift mask assumes power-of-two width"
    F = Hp2 * Wp2 * C2
    O = lin_w.shape[0]

    x_nhwc = jnp.transpose(x_nchw, (0, 2, 3, 1)).astype(jnp.float32)
    p1 = _layer1_patch_rows(x_nhwc, K1, pool1)                      # (B*Q1*Hp1*Wp1, K1*K1*Cin)

    w1m = jnp.transpose(w1, (2, 3, 1, 0)).reshape(K1 * K1 * Cin, C1).astype(jnp.bfloat16)
    w2m = jnp.transpose(w2, (2, 3, 1, 0)).reshape(K2 * K2 * C1, C2).astype(jnp.bfloat16)
    # Linear weight: PyTorch flattens NCHW; permute columns to the kernel's (h,w,c)
    # flatten order once, and pre-transpose to (F, O) so F stays lane-dense.
    w3m = (lin_w.reshape(O, C2, Hp2, Wp2).transpose(0, 2, 3, 1)
           .reshape(O, F).T).astype(jnp.bfloat16)
    sp = _pool_reorder_matrix(Hp1, Wp1, pool2)                      # (Q2*Hp2*Wp2, Hp1*Wp1)

    b1r = b1.reshape(1, C1).astype(jnp.float32)
    b2r = b2.reshape(1, C2).astype(jnp.float32)
    b3r = lin_b.reshape(1, O).astype(jnp.float32)

    Q1, Q2 = pool1 * pool1, pool2 * pool2
    PAD2 = (K2 - 1) // 2
    BLK = Hp1 * Wp1 + 2 * PAD2 * Wp1

    kernel = functools.partial(
        _cnn_fused_kernel, B=B, K2=K2, Q1=Q1, Q2=Q2,
        Hp1=Hp1, Wp1=Wp1, Hp2=Hp2, Wp2=Wp2, C1=C1, C2=C2)

    return pl.pallas_call(
        kernel,
        out_shape=jax.ShapeDtypeStruct((B, O), jnp.float32),
        grid=(1,),
        in_specs=[
            pl.BlockSpec((B * Q1 * Hp1 * Wp1, K1 * K1 * Cin), lambda i: (0, 0)),
            pl.BlockSpec((K1 * K1 * Cin, C1), lambda i: (0, 0)),
            pl.BlockSpec((1, C1), lambda i: (0, 0)),
            pl.BlockSpec((K2 * K2 * C1, C2), lambda i: (0, 0)),
            pl.BlockSpec((1, C2), lambda i: (0, 0)),
            pl.BlockSpec((Q2 * Hp2 * Wp2, Hp1 * Wp1), lambda i: (0, 0)),
            pl.BlockSpec((F, O), lambda i: (0, 0)),
            pl.BlockSpec((1, O), lambda i: (0, 0)),
        ],
        out_specs=pl.BlockSpec((B, O), lambda i: (0, 0)),
        scratch_shapes=[
            pltpu.VMEM((K2, B * BLK, C1), jnp.bfloat16),
            pltpu.VMEM((B, F), jnp.float32),
        ],
        compiler_params=pltpu.CompilerParams(dimension_semantics=("arbitrary",)),
    )(p1, w1m, b1r, w2m, b2r, sp, w3m, b3r)


# ----------------------------------------------------------------------------
# Pure-JAX reference (correctness only).  Mirrors the kernel's bf16 rounding at
# every matmul input so the comparison isolates indexing/fusion bugs.
# ----------------------------------------------------------------------------
def _bf16_round(x):
    return x.astype(jnp.bfloat16).astype(jnp.float32)


def cnn_reference(x_nchw, params, pools):
    y = x_nchw.astype(jnp.float32)
    for (w, b), pool in zip(params["conv"], pools):
        pad = (w.shape[-1] - 1) // 2
        y = jax.lax.conv_general_dilated(
            _bf16_round(y), _bf16_round(w), window_strides=(1, 1),
            padding=[(pad, pad), (pad, pad)],
            dimension_numbers=("NCHW", "OIHW", "NCHW"))
        y = jnp.maximum(y + b[None, :, None, None], 0.0)
        y = jax.lax.reduce_window(
            y, -jnp.inf, jax.lax.max,
            (1, 1, pool, pool), (1, 1, pool, pool), "VALID")
    flat = y.reshape(y.shape[0], -1)
    return _bf16_round(flat) @ _bf16_round(params["lin_w"]).T + params["lin_b"][None, :]


# ----------------------------------------------------------------------------
# Main
# ----------------------------------------------------------------------------
if __name__ == "__main__":
    # Shapes consistent with the module: img_size=16, in_channels=3,
    # out_channels=5, default conv_layers_params (16 / 32 kernels, k=5, pool=2).
    B, CIN, IMG, OUT = 2, 3, 16, 5
    conv_cfg = [
        {"kernel_num": 16, "kernel_size": 5, "pool_size": 2},
        {"kernel_num": 32, "kernel_size": 5, "pool_size": 2},
    ]
    pools = tuple(cfg["pool_size"] for cfg in conv_cfg)

    key = jax.random.PRNGKey(0)
    keys = jax.random.split(key, 8)

    # Params / input rounded to bf16-representable f32 so kernel and reference
    # consume identical operand values.
    params = {"conv": []}
    cur_c, k_i = CIN, 0
    for cfg in conv_cfg:
        K, CO = cfg["kernel_size"], cfg["kernel_num"]
        w = _bf16_round(0.05 * jax.random.normal(keys[k_i], (CO, cur_c, K, K), jnp.float32))
        b = _bf16_round(0.05 * jax.random.normal(keys[k_i + 1], (CO,), jnp.float32))
        params["conv"].append((w, b))
        cur_c = CO
        k_i += 2

    feat = (IMG // (pools[0] * pools[1])) ** 2 * conv_cfg[-1]["kernel_num"]   # 4*4*32 = 512
    params["lin_w"] = _bf16_round(0.05 * jax.random.normal(keys[k_i], (OUT, feat), jnp.float32))
    params["lin_b"] = _bf16_round(0.05 * jax.random.normal(keys[k_i + 1], (OUT,), jnp.float32))

    x = _bf16_round(jax.random.normal(keys[k_i + 2], (B, CIN, IMG, IMG), jnp.float32))

    out = jax.block_until_ready(cnn_forward(x, params, pools=pools))
    ref = jax.block_until_ready(cnn_reference(x, params, pools))

    assert out.shape == (B, OUT), out.shape
    np.testing.assert_allclose(np.asarray(out), np.asarray(ref), rtol=2e-3, atol=2e-3)
    print("KERNEL_OK")
</pallas_src>

<mosaic_0001>
module attributes {stable_mosaic.version = 11 : i64} {
  func.func @_cnn_fused_kernel(%arg0: i32, %arg1: memref<512x75xbf16, #tpu.memory_space<vmem>>, %arg2: memref<75x16xbf16, #tpu.memory_space<vmem>>, %arg3: memref<1x16xf32, #tpu.memory_space<vmem>>, %arg4: memref<400x32xbf16, #tpu.memory_space<vmem>>, %arg5: memref<1x32xf32, #tpu.memory_space<vmem>>, %arg6: memref<64x64xf32, #tpu.memory_space<vmem>>, %arg7: memref<512x5xbf16, #tpu.memory_space<vmem>>, %arg8: memref<1x5xf32, #tpu.memory_space<vmem>>, %arg9: memref<2x5xf32, #tpu.memory_space<vmem>>, %arg10: memref<5x192x16xbf16, #tpu.memory_space<vmem>>, %arg11: memref<2x512xf32, #tpu.memory_space<vmem>>) attributes {dimension_semantics = [#tpu.dimension_semantics<arbitrary>], iteration_bounds = array<i64: 1>, scalar_prefetch = 0 : i64, scratch_operands = 2 : i64, tpu.core_type = #tpu.core_type<tc>, window_params = [{pipeline_mode = #tpu.pipeline_mode<synchronous>, transform_indices = @transform_0, window_bounds = array<i64: 512, 75>}, {pipeline_mode = #tpu.pipeline_mode<synchronous>, transform_indices = @transform_1, window_bounds = array<i64: 75, 16>}, {pipeline_mode = #tpu.pipeline_mode<synchronous>, transform_indices = @transform_2, window_bounds = array<i64: 1, 16>}, {pipeline_mode = #tpu.pipeline_mode<synchronous>, transform_indices = @transform_3, window_bounds = array<i64: 400, 32>}, {pipeline_mode = #tpu.pipeline_mode<synchronous>, transform_indices = @transform_4, window_bounds = array<i64: 1, 32>}, {pipeline_mode = #tpu.pipeline_mode<synchronous>, transform_indices = @transform_5, window_bounds = array<i64: 64, 64>}, {pipeline_mode = #tpu.pipeline_mode<synchronous>, transform_indices = @transform_6, window_bounds = array<i64: 512, 5>}, {pipeline_mode = #tpu.pipeline_mode<synchronous>, transform_indices = @transform_7, window_bounds = array<i64: 1, 5>}, {pipeline_mode = #tpu.pipeline_mode<synchronous>, transform_indices = @transform_8, window_bounds = array<i64: 2, 5>}]} {
    %c0 = arith.constant 0 : index
    %c0_0 = arith.constant 0 : index
    %0 = vector.load %arg2[%c0, %c0_0] : memref<75x16xbf16, #tpu.memory_space<vmem>>, vector<75x16xbf16>
    %c0_1 = arith.constant 0 : index
    %c0_2 = arith.constant 0 : index
    %1 = vector.load %arg3[%c0_1, %c0_2] : memref<1x16xf32, #tpu.memory_space<vmem>>, vector<1x16xf32>
    %cst = arith.constant 0.000000e+00 : bf16
    %2 = vector.broadcast %cst : bf16 to vector<5x192x16xbf16>
    %c0_3 = arith.constant 0 : index
    %c0_4 = arith.constant 0 : index
    %c0_5 = arith.constant 0 : index
    %3 = vector.load %arg10[%c0_3, %c0_4, %c0_5] : memref<5x192x16xbf16, #tpu.memory_space<vmem>>, vector<5x192x16xbf16>
    tpu.vector_store %arg10[%c0_3, %c0_4, %c0_5], %2 {strides = array<i32>} : memref<5x192x16xbf16, #tpu.memory_space<vmem>>, vector<5x192x16xbf16>,
    %4 = tpu.iota {dimensions = array<i32: 0>} : vector<64x16xi32>
    %c7_i32 = arith.constant 7 : i32
    %5 = vector.broadcast %c7_i32 : i32 to vector<64x16xi32>
    %6 = arith.andi %4, %5 : vector<64x16xi32>
    %c0_6 = arith.constant 0 : index
    %c0_7 = arith.constant 0 : index
    %7 = vector.load %arg1[%c0_6, %c0_7] : memref<512x75xbf16, #tpu.memory_space<vmem>>, vector<64x75xbf16>
    %cst_8 = arith.constant dense<0.000000e+00> : vector<64x16xf32>
    %8 = tpu.matmul %7, %0, %cst_8 {dimension_numbers = #tpu.dot_dimension_numbers<[1], [0], [0], [1], [0, 0, 1, 1], [], []>} : vector<64x75xbf16>, vector<75x16xbf16>, vector<64x16xf32> -> vector<64x16xf32>
    %c64 = arith.constant 64 : index
    %c0_9 = arith.constant 0 : index
    %9 = vector.load %arg1[%c64, %c0_9] : memref<512x75xbf16, #tpu.memory_space<vmem>>, vector<64x75xbf16>
    %cst_10 = arith.constant dense<0.000000e+00> : vector<64x16xf32>
    %10 = tpu.matmul %9, %0, %cst_10 {dimension_numbers = #tpu.dot_dimension_numbers<[1], [0], [0], [1], [0, 0, 1, 1], [], []>} : vector<64x75xbf16>, vector<75x16xbf16>, vector<64x16xf32> -> vector<64x16xf32>
    %11 = arith.maximumf %8, %10 : vector<64x16xf32>
    %c128 = arith.constant 128 : index
    %c0_11 = arith.constant 0 : index
    %12 = vector.load %arg1[%c128, %c0_11] : memref<512x75xbf16, #tpu.memory_space<vmem>>, vector<64x75xbf16>
    %cst_12 = arith.constant dense<0.000000e+00> : vector<64x16xf32>
    %13 = tpu.matmul %12, %0, %cst_12 {dimension_numbers = #tpu.dot_dimension_numbers<[1], [0], [0], [1], [0, 0, 1, 1], [], []>} : vector<64x75xbf16>, vector<75x16xbf16>, vector<64x16xf32> -> vector<64x16xf32>
    %14 = arith.maximumf %11, %13 : vector<64x16xf32>
    %c192 = arith.constant 192 : index
    %c0_13 = arith.constant 0 : index
    %15 = vector.load %arg1[%c192, %c0_13] : memref<512x75xbf16, #tpu.memory_space<vmem>>, vector<64x75xbf16>
    %cst_14 = arith.constant dense<0.000000e+00> : vector<64x16xf32>
    %16 = tpu.matmul %15, %0, %cst_14 {dimension_numbers = #tpu.dot_dimension_numbers<[1], [0], [0], [1], [0, 0, 1, 1], [], []>} : vector<64x75xbf16>, vector<75x16xbf16>, vector<64x16xf32> -> vector<64x16xf32>
    %17 = arith.maximumf %14, %16 : vector<64x16xf32>
    %18 = vector.broadcast %1 : vector<1x16xf32> to vector<64x16xf32>
    %19 = arith.addf %17, %18 : vector<64x16xf32>
    %cst_15 = arith.constant 0.000000e+00 : f32
    %20 = vector.broadcast %cst_15 : f32 to vector<64x16xf32>
    %21 = arith.maximumf %19, %20 : vector<64x16xf32>
    %c2_i32 = arith.constant 2 : i32
    %22 = tpu.dynamic_rotate %21 by %c2_i32 dim 0 : vector<64x16xf32>, i32 -> vector<64x16xf32>
    %c-2_i32 = arith.constant -2 : i32
    %23 = vector.broadcast %c-2_i32 : i32 to vector<64x16xi32>
    %24 = arith.addi %6, %23 : vector<64x16xi32>
    %c0_i32 = arith.constant 0 : i32
    %25 = vector.broadcast %c0_i32 : i32 to vector<64x16xi32>
    %26 = arith.cmpi sge, %24, %25 : vector<64x16xi32>
    %c8_i32 = arith.constant 8 : i32
    %27 = vector.broadcast %c8_i32 : i32 to vector<64x16xi32>
    %28 = arith.cmpi slt, %24, %27 : vector<64x16xi32>
    %29 = arith.andi %26, %28 : vector<64x16xi1>
    %cst_16 = arith.constant 0.000000e+00 : f32
    %30 = vector.broadcast %cst_16 : f32 to vector<64x16xf32>
    %31 = arith.select %29, %22, %30 : vector<64x16xi1>, vector<64x16xf32>
    %32 = arith.truncf %31 : vector<64x16xf32> to vector<64x16xbf16>
    %c0_17 = arith.constant 0 : index
    %c16 = arith.constant 16 : index
    %c0_18 = arith.constant 0 : index
    %33 = vector.load %arg10[%c0_17, %c16, %c0_18] : memref<5x192x16xbf16, #tpu.memory_space<vmem>>, vector<1x64x16xbf16>
    %34 = vector.shape_cast %33 : vector<1x64x16xbf16> to vector<64x16xbf16>
    %35 = vector.shape_cast %32 : vector<64x16xbf16> to vector<1x64x16xbf16>
    tpu.vector_store %arg10[%c0_17, %c16, %c0_18], %35 {strides = array<i32>} : memref<5x192x16xbf16, #tpu.memory_space<vmem>>, vector<1x64x16xbf16>,
    %c1_i32 = arith.constant 1 : i32
    %36 = tpu.dynamic_rotate %21 by %c1_i32 dim 0 : vector<64x16xf32>, i32 -> vector<64x16xf32>
    %c-1_i32 = arith.constant -1 : i32
    %37 = vector.broadcast %c-1_i32 : i32 to vector<64x16xi32>
    %38 = arith.addi %6, %37 : vector<64x16xi32>
    %c0_i32_19 = arith.constant 0 : i32
    %39 = vector.broadcast %c0_i32_19 : i32 to vector<64x16xi32>
    %40 = arith.cmpi sge, %38, %39 : vector<64x16xi32>
    %c8_i32_20 = arith.constant 8 : i32
    %41 = vector.broadcast %c8_i32_20 : i32 to vector<64x16xi32>
    %42 = arith.cmpi slt, %38, %41 : vector<64x16xi32>
    %43 = arith.andi %40, %42 : vector<64x16xi1>
    %cst_21 = arith.constant 0.000000e+00 : f32
    %44 = vector.broadcast %cst_21 : f32 to vector<64x16xf32>
    %45 = arith.select %43, %36, %44 : vector<64x16xi1>, vector<64x16xf32>
    %46 = arith.truncf %45 : vector<64x16xf32> to vector<64x16xbf16>
    %c1 = arith.constant 1 : index
    %c16_22 = arith.constant 16 : index
    %c0_23 = arith.constant 0 : index
    %47 = vector.load %arg10[%c1, %c16_22, %c0_23] : memref<5x192x16xbf16, #tpu.memory_space<vmem>>, vector<1x64x16xbf16>
    %48 = vector.shape_cast %47 : vector<1x64x16xbf16> to vector<64x16xbf16>
    %49 = vector.shape_cast %46 : vector<64x16xbf16> to vector<1x64x16xbf16>
    tpu.vector_store %arg10[%c1, %c16_22, %c0_23], %49 {strides = array<i32>} : memref<5x192x16xbf16, #tpu.memory_space<vmem>>, vector<1x64x16xbf16>,
    %c0_i32_24 = arith.constant 0 : i32
    %50 = vector.broadcast %c0_i32_24 : i32 to vector<64x16xi32>
    %51 = arith.addi %6, %50 : vector<64x16xi32>
    %c0_i32_25 = arith.constant 0 : i32
    %52 = vector.broadcast %c0_i32_25 : i32 to vector<64x16xi32>
    %53 = arith.cmpi sge, %51, %52 : vector<64x16xi32>
    %c8_i32_26 = arith.constant 8 : i32
    %54 = vector.broadcast %c8_i32_26 : i32 to vector<64x16xi32>
    %55 = arith.cmpi slt, %51, %54 : vector<64x16xi32>
    %56 = arith.andi %53, %55 : vector<64x16xi1>
    %cst_27 = arith.constant 0.000000e+00 : f32
    %57 = vector.broadcast %cst_27 : f32 to vector<64x16xf32>
    %58 = arith.select %56, %21, %57 : vector<64x16xi1>, vector<64x16xf32>
    %59 = arith.truncf %58 : vector<64x16xf32> to vector<64x16xbf16>
    %c2 = arith.constant 2 : index
    %c16_28 = arith.constant 16 : index
    %c0_29 = arith.constant 0 : index
    %60 = vector.load %arg10[%c2, %c16_28, %c0_29] : memref<5x192x16xbf16, #tpu.memory_space<vmem>>, vector<1x64x16xbf16>
    %61 = vector.shape_cast %60 : vector<1x64x16xbf16> to vector<64x16xbf16>
    %62 = vector.shape_cast %59 : vector<64x16xbf16> to vector<1x64x16xbf16>
    tpu.vector_store %arg10[%c2, %c16_28, %c0_29], %62 {strides = array<i32>} : memref<5x192x16xbf16, #tpu.memory_space<vmem>>, vector<1x64x16xbf16>,
    %c63_i32 = arith.constant 63 : i32
    %63 = tpu.dynamic_rotate %21 by %c63_i32 dim 0 : vector<64x16xf32>, i32 -> vector<64x16xf32>
    %c1_i32_30 = arith.constant 1 : i32
    %64 = vector.broadcast %c1_i32_30 : i32 to vector<64x16xi32>
    %65 = arith.addi %6, %64 : vector<64x16xi32>
    %c0_i32_31 = arith.constant 0 : i32
    %66 = vector.broadcast %c0_i32_31 : i32 to vector<64x16xi32>
    %67 = arith.cmpi sge, %65, %66 : vector<64x16xi32>
    %c8_i32_32 = arith.constant 8 : i32
    %68 = vector.broadcast %c8_i32_32 : i32 to vector<64x16xi32>
    %69 = arith.cmpi slt, %65, %68 : vector<64x16xi32>
    %70 = arith.andi %67, %69 : vector<64x16xi1>
    %cst_33 = arith.constant 0.000000e+00 : f32
    %71 = vector.broadcast %cst_33 : f32 to vector<64x16xf32>
    %72 = arith.select %70, %63, %71 : vector<64x16xi1>, vector<64x16xf32>
    %73 = arith.truncf %72 : vector<64x16xf32> to vector<64x16xbf16>
    %c3 = arith.constant 3 : index
    %c16_34 = arith.constant 16 : index
    %c0_35 = arith.constant 0 : index
    %74 = vector.load %arg10[%c3, %c16_34, %c0_35] : memref<5x192x16xbf16, #tpu.memory_space<vmem>>, vector<1x64x16xbf16>
    %75 = vector.shape_cast %74 : vector<1x64x16xbf16> to vector<64x16xbf16>
    %76 = vector.shape_cast %73 : vector<64x16xbf16> to vector<1x64x16xbf16>
    tpu.vector_store %arg10[%c3, %c16_34, %c0_35], %76 {strides = array<i32>} : memref<5x192x16xbf16, #tpu.memory_space<vmem>>, vector<1x64x16xbf16>,
    %c62_i32 = arith.constant 62 : i32
    %77 = tpu.dynamic_rotate %21 by %c62_i32 dim 0 : vector<64x16xf32>, i32 -> vector<64x16xf32>
    %c2_i32_36 = arith.constant 2 : i32
    %78 = vector.broadcast %c2_i32_36 : i32 to vector<64x16xi32>
    %79 = arith.addi %6, %78 : vector<64x16xi32>
    %c0_i32_37 = arith.constant 0 : i32
    %80 = vector.broadcast %c0_i32_37 : i32 to vector<64x16xi32>
    %81 = arith.cmpi sge, %79, %80 : vector<64x16xi32>
    %c8_i32_38 = arith.constant 8 : i32
    %82 = vector.broadcast %c8_i32_38 : i32 to vector<64x16xi32>
    %83 = arith.cmpi slt, %79, %82 : vector<64x16xi32>
    %84 = arith.andi %81, %83 : vector<64x16xi1>
    %cst_39 = arith.constant 0.000000e+00 : f32
    %85 = vector.broadcast %cst_39 : f32 to vector<64x16xf32>
    %86 = arith.select %84, %77, %85 : vector<64x16xi1>, vector<64x16xf32>
    %87 = arith.truncf %86 : vector<64x16xf32> to vector<64x16xbf16>
    %c4 = arith.constant 4 : index
    %c16_40 = arith.constant 16 : index
    %c0_41 = arith.constant 0 : index
    %88 = vector.load %arg10[%c4, %c16_40, %c0_41] : memref<5x192x16xbf16, #tpu.memory_space<vmem>>, vector<1x64x16xbf16>
    %89 = vector.shape_cast %88 : vector<1x64x16xbf16> to vector<64x16xbf16>
    %90 = vector.shape_cast %87 : vector<64x16xbf16> to vector<1x64x16xbf16>
    tpu.vector_store %arg10[%c4, %c16_40, %c0_41], %90 {strides = array<i32>} : memref<5x192x16xbf16, #tpu.memory_space<vmem>>, vector<1x64x16xbf16>,
    %c256 = arith.constant 256 : index
    %c0_42 = arith.constant 0 : index
    %91 = vector.load %arg1[%c256, %c0_42] : memref<512x75xbf16, #tpu.memory_space<vmem>>, vector<64x75xbf16>
    %cst_43 = arith.constant dense<0.000000e+00> : vector<64x16xf32>
    %92 = tpu.matmul %91, %0, %cst_43 {dimension_numbers = #tpu.dot_dimension_numbers<[1], [0], [0], [1], [0, 0, 1, 1], [], []>} : vector<64x75xbf16>, vector<75x16xbf16>, vector<64x16xf32> -> vector<64x16xf32>
    %c320 = arith.constant 320 : index
    %c0_44 = arith.constant 0 : index
    %93 = vector.load %arg1[%c320, %c0_44] : memref<512x75xbf16, #tpu.memory_space<vmem>>, vector<64x75xbf16>
    %cst_45 = arith.constant dense<0.000000e+00> : vector<64x16xf32>
    %94 = tpu.matmul %93, %0, %cst_45 {dimension_numbers = #tpu.dot_dimension_numbers<[1], [0], [0], [1], [0, 0, 1, 1], [], []>} : vector<64x75xbf16>, vector<75x16xbf16>, vector<64x16xf32> -> vector<64x16xf32>
    %95 = arith.maximumf %92, %94 : vector<64x16xf32>
    %c384 = arith.constant 384 : index
    %c0_46 = arith.constant 0 : index
    %96 = vector.load %arg1[%c384, %c0_46] : memref<512x75xbf16, #tpu.memory_space<vmem>>, vector<64x75xbf16>
    %cst_47 = arith.constant dense<0.000000e+00> : vector<64x16xf32>
    %97 = tpu.matmul %96, %0, %cst_47 {dimension_numbers = #tpu.dot_dimension_numbers<[1], [0], [0], [1], [0, 0, 1, 1], [], []>} : vector<64x75xbf16>, vector<75x16xbf16>, vector<64x16xf32> -> vector<64x16xf32>
    %98 = arith.maximumf %95, %97 : vector<64x16xf32>
    %c448 = arith.constant 448 : index
    %c0_48 = arith.constant 0 : index
    %99 = vector.load %arg1[%c448, %c0_48] : memref<512x75xbf16, #tpu.memory_space<vmem>>, vector<64x75xbf16>
    %cst_49 = arith.constant dense<0.000000e+00> : vector<64x16xf32>
    %100 = tpu.matmul %99, %0, %cst_49 {dimension_numbers = #tpu.dot_dimension_numbers<[1], [0], [0], [1], [0, 0, 1, 1], [], []>} : vector<64x75xbf16>, vector<75x16xbf16>, vector<64x16xf32> -> vector<64x16xf32>
    %101 = arith.maximumf %98, %100 : vector<64x16xf32>
    %102 = vector.broadcast %1 : vector<1x16xf32> to vector<64x16xf32>
    %103 = arith.addf %101, %102 : vector<64x16xf32>
    %cst_50 = arith.constant 0.000000e+00 : f32
    %104 = vector.broadcast %cst_50 : f32 to vector<64x16xf32>
    %105 = arith.maximumf %103, %104 : vector<64x16xf32>
    %c2_i32_51 = arith.constant 2 : i32
    %106 = tpu.dynamic_rotate %105 by %c2_i32_51 dim 0 : vector<64x16xf32>, i32 -> vector<64x16xf32>
    %c-2_i32_52 = arith.constant -2 : i32
    %107 = vector.broadcast %c-2_i32_52 : i32 to vector<64x16xi32>
    %108 = arith.addi %6, %107 : vector<64x16xi32>
    %c0_i32_53 = arith.constant 0 : i32
    %109 = vector.broadcast %c0_i32_53 : i32 to vector<64x16xi32>
    %110 = arith.cmpi sge, %108, %109 : vector<64x16xi32>
    %c8_i32_54 = arith.constant 8 : i32
    %111 = vector.broadcast %c8_i32_54 : i32 to vector<64x16xi32>
    %112 = arith.cmpi slt, %108, %111 : vector<64x16xi32>
    %113 = arith.andi %110, %112 : vector<64x16xi1>
    %cst_55 = arith.constant 0.000000e+00 : f32
    %114 = vector.broadcast %cst_55 : f32 to vector<64x16xf32>
    %115 = arith.select %113, %106, %114 : vector<64x16xi1>, vector<64x16xf32>
    %116 = arith.truncf %115 : vector<64x16xf32> to vector<64x16xbf16>
    %c0_56 = arith.constant 0 : index
    %c112 = arith.constant 112 : index
    %c0_57 = arith.constant 0 : index
    %117 = vector.load %arg10[%c0_56, %c112, %c0_57] : memref<5x192x16xbf16, #tpu.memory_space<vmem>>, vector<1x64x16xbf16>
    %118 = vector.shape_cast %117 : vector<1x64x16xbf16> to vector<64x16xbf16>
    %119 = vector.shape_cast %116 : vector<64x16xbf16> to vector<1x64x16xbf16>
    tpu.vector_store %arg10[%c0_56, %c112, %c0_57], %119 {strides = array<i32>} : memref<5x192x16xbf16, #tpu.memory_space<vmem>>, vector<1x64x16xbf16>,
    %c1_i32_58 = arith.constant 1 : i32
    %120 = tpu.dynamic_rotate %105 by %c1_i32_58 dim 0 : vector<64x16xf32>, i32 -> vector<64x16xf32>
    %c-1_i32_59 = arith.constant -1 : i32
    %121 = vector.broadcast %c-1_i32_59 : i32 to vector<64x16xi32>
    %122 = arith.addi %6, %121 : vector<64x16xi32>
    %c0_i32_60 = arith.constant 0 : i32
    %123 = vector.broadcast %c0_i32_60 : i32 to vector<64x16xi32>
    %124 = arith.cmpi sge, %122, %123 : vector<64x16xi32>
    %c8_i32_61 = arith.constant 8 : i32
    %125 = vector.broadcast %c8_i32_61 : i32 to vector<64x16xi32>
    %126 = arith.cmpi slt, %122, %125 : vector<64x16xi32>
    %127 = arith.andi %124, %126 : vector<64x16xi1>
    %cst_62 = arith.constant 0.000000e+00 : f32
    %128 = vector.broadcast %cst_62 : f32 to vector<64x16xf32>
    %129 = arith.select %127, %120, %128 : vector<64x16xi1>, vector<64x16xf32>
    %130 = arith.truncf %129 : vector<64x16xf32> to vector<64x16xbf16>
    %c1_63 = arith.constant 1 : index
    %c112_64 = arith.constant 112 : index
    %c0_65 = arith.constant 0 : index
    %131 = vector.load %arg10[%c1_63, %c112_64, %c0_65] : memref<5x192x16xbf16, #tpu.memory_space<vmem>>, vector<1x64x16xbf16>
    %132 = vector.shape_cast %131 : vector<1x64x16xbf16> to vector<64x16xbf16>
    %133 = vector.shape_cast %130 : vector<64x16xbf16> to vector<1x64x16xbf16>
    tpu.vector_store %arg10[%c1_63, %c112_64, %c0_65], %133 {strides = array<i32>} : memref<5x192x16xbf16, #tpu.memory_space<vmem>>, vector<1x64x16xbf16>,
    %c0_i32_66 = arith.constant 0 : i32
    %134 = vector.broadcast %c0_i32_66 : i32 to vector<64x16xi32>
    %135 = arith.addi %6, %134 : vector<64x16xi32>
    %c0_i32_67 = arith.constant 0 : i32
    %136 = vector.broadcast %c0_i32_67 : i32 to vector<64x16xi32>
    %137 = arith.cmpi sge, %135, %136 : vector<64x16xi32>
    %c8_i32_68 = arith.constant 8 : i32
    %138 = vector.broadcast %c8_i32_68 : i32 to vector<64x16xi32>
    %139 = arith.cmpi slt, %135, %138 : vector<64x16xi32>
    %140 = arith.andi %137, %139 : vector<64x16xi1>
    %cst_69 = arith.constant 0.000000e+00 : f32
    %141 = vector.broadcast %cst_69 : f32 to vector<64x16xf32>
    %142 = arith.select %140, %105, %141 : vector<64x16xi1>, vector<64x16xf32>
    %143 = arith.truncf %142 : vector<64x16xf32> to vector<64x16xbf16>
    %c2_70 = arith.constant 2 : index
    %c112_71 = arith.constant 112 : index
    %c0_72 = arith.constant 0 : index
    %144 = vector.load %arg10[%c2_70, %c112_71, %c0_72] : memref<5x192x16xbf16, #tpu.memory_space<vmem>>, vector<1x64x16xbf16>
    %145 = vector.shape_cast %144 : vector<1x64x16xbf16> to vector<64x16xbf16>
    %146 = vector.shape_cast %143 : vector<64x16xbf16> to vector<1x64x16xbf16>
    tpu.vector_store %arg10[%c2_70, %c112_71, %c0_72], %146 {strides = array<i32>} : memref<5x192x16xbf16, #tpu.memory_space<vmem>>, vector<1x64x16xbf16>,
    %c63_i32_73 = arith.constant 63 : i32
    %147 = tpu.dynamic_rotate %105 by %c63_i32_73 dim 0 : vector<64x16xf32>, i32 -> vector<64x16xf32>
    %c1_i32_74 = arith.constant 1 : i32
    %148 = vector.broadcast %c1_i32_74 : i32 to vector<64x16xi32>
    %149 = arith.addi %6, %148 : vector<64x16xi32>
    %c0_i32_75 = arith.constant 0 : i32
    %150 = vector.broadcast %c0_i32_75 : i32 to vector<64x16xi32>
    %151 = arith.cmpi sge, %149, %150 : vector<64x16xi32>
    %c8_i32_76 = arith.constant 8 : i32
    %152 = vector.broadcast %c8_i32_76 : i32 to vector<64x16xi32>
    %153 = arith.cmpi slt, %149, %152 : vector<64x16xi32>
    %154 = arith.andi %151, %153 : vector<64x16xi1>
    %cst_77 = arith.constant 0.000000e+00 : f32
    %155 = vector.broadcast %cst_77 : f32 to vector<64x16xf32>
    %156 = arith.select %154, %147, %155 : vector<64x16xi1>, vector<64x16xf32>
    %157 = arith.truncf %156 : vector<64x16xf32> to vector<64x16xbf16>
    %c3_78 = arith.constant 3 : index
    %c112_79 = arith.constant 112 : index
    %c0_80 = arith.constant 0 : index
    %158 = vector.load %arg10[%c3_78, %c112_79, %c0_80] : memref<5x192x16xbf16, #tpu.memory_space<vmem>>, vector<1x64x16xbf16>
    %159 = vector.shape_cast %158 : vector<1x64x16xbf16> to vector<64x16xbf16>
    %160 = vector.shape_cast %157 : vector<64x16xbf16> to vector<1x64x16xbf16>
    tpu.vector_store %arg10[%c3_78, %c112_79, %c0_80], %160 {strides = array<i32>} : memref<5x192x16xbf16, #tpu.memory_space<vmem>>, vector<1x64x16xbf16>,
    %c62_i32_81 = arith.constant 62 : i32
    %161 = tpu.dynamic_rotate %105 by %c62_i32_81 dim 0 : vector<64x16xf32>, i32 -> vector<64x16xf32>
    %c2_i32_82 = arith.constant 2 : i32
    %162 = vector.broadcast %c2_i32_82 : i32 to vector<64x16xi32>
    %163 = arith.addi %6, %162 : vector<64x16xi32>
    %c0_i32_83 = arith.constant 0 : i32
    %164 = vector.broadcast %c0_i32_83 : i32 to vector<64x16xi32>
    %165 = arith.cmpi sge, %163, %164 : vector<64x16xi32>
    %c8_i32_84 = arith.constant 8 : i32
    %166 = vector.broadcast %c8_i32_84 : i32 to vector<64x16xi32>
    %167 = arith.cmpi slt, %163, %166 : vector<64x16xi32>
    %168 = arith.andi %165, %167 : vector<64x16xi1>
    %cst_85 = arith.constant 0.000000e+00 : f32
    %169 = vector.broadcast %cst_85 : f32 to vector<64x16xf32>
    %170 = arith.select %168, %161, %169 : vector<64x16xi1>, vector<64x16xf32>
    %171 = arith.truncf %170 : vector<64x16xf32> to vector<64x16xbf16>
    %c4_86 = arith.constant 4 : index
    %c112_87 = arith.constant 112 : index
    %c0_88 = arith.constant 0 : index
    %172 = vector.load %arg10[%c4_86, %c112_87, %c0_88] : memref<5x192x16xbf16, #tpu.memory_space<vmem>>, vector<1x64x16xbf16>
    %173 = vector.shape_cast %172 : vector<1x64x16xbf16> to vector<64x16xbf16>
    %174 = vector.shape_cast %171 : vector<64x16xbf16> to vector<1x64x16xbf16>
    tpu.vector_store %arg10[%c4_86, %c112_87, %c0_88], %174 {strides = array<i32>} : memref<5x192x16xbf16, #tpu.memory_space<vmem>>, vector<1x64x16xbf16>,
    %cst_89 = arith.constant 0.000000e+00 : f32
    %175 = vector.broadcast %cst_89 : f32 to vector<64x32xf32>
    %cst_90 = arith.constant 0.000000e+00 : f32
    %176 = vector.broadcast %cst_90 : f32 to vector<64x32xf32>
    %c0_91 = arith.constant 0 : index
    %c0_92 = arith.constant 0 : index
    %177 = vector.load %arg4[%c0_91, %c0_92] : memref<400x32xbf16, #tpu.memory_space<vmem>>, vector<16x32xbf16>
    %c0_93 = arith.constant 0 : index
    %c0_94 = arith.constant 0 : index
    %c0_95 = arith.constant 0 : index
    %178 = vector.load %arg10[%c0_93, %c0_94, %c0_95] : memref<5x192x16xbf16, #tpu.memory_space<vmem>>, vector<1x64x16xbf16>
    %179 = vector.shape_cast %178 : vector<1x64x16xbf16> to vector<64x16xbf16>
    %cst_96 = arith.constant dense<0.000000e+00> : vector<64x32xf32>
    %180 = tpu.matmul %179, %177, %cst_96 {dimension_numbers = #tpu.dot_dimension_numbers<[1], [0], [0], [1], [0, 0, 1, 1], [], []>} : vector<64x16xbf16>, vector<16x32xbf16>, vector<64x32xf32> -> vector<64x32xf32>
    %181 = arith.addf %175, %180 : vector<64x32xf32>
    %c0_97 = arith.constant 0 : index
    %c96 = arith.constant 96 : index
    %c0_98 = arith.constant 0 : index
    %182 = vector.load %arg10[%c0_97, %c96, %c0_98] : memref<5x192x16xbf16, #tpu.memory_space<vmem>>, vector<1x64x16xbf16>
    %183 = vector.shape_cast %182 : vector<1x64x16xbf16> to vector<64x16xbf16>
    %cst_99 = arith.constant dense<0.000000e+00> : vector<64x32xf32>
    %184 = tpu.matmul %183, %177, %cst_99 {dimension_numbers = #tpu.dot_dimension_numbers<[1], [0], [0], [1], [0, 0, 1, 1], [], []>} : vector<64x16xbf16>, vector<16x32xbf16>, vector<64x32xf32> -> vector<64x32xf32>
    %185 = arith.addf %176, %184 : vector<64x32xf32>
    %c16_100 = arith.constant 16 : index
    %c0_101 = arith.constant 0 : index
    %186 = vector.load %arg4[%c16_100, %c0_101] : memref<400x32xbf16, #tpu.memory_space<vmem>>, vector<16x32xbf16>
    %c1_102 = arith.constant 1 : index
    %c0_103 = arith.constant 0 : index
    %c0_104 = arith.constant 0 : index
    %187 = vector.load %arg10[%c1_102, %c0_103, %c0_104] : memref<5x192x16xbf16, #tpu.memory_space<vmem>>, vector<1x64x16xbf16>
    %188 = vector.shape_cast %187 : vector<1x64x16xbf16> to vector<64x16xbf16>
    %cst_105 = arith.constant dense<0.000000e+00> : vector<64x32xf32>
    %189 = tpu.matmul %188, %186, %cst_105 {dimension_numbers = #tpu.dot_dimension_numbers<[1], [0], [0], [1], [0, 0, 1, 1], [], []>} : vector<64x16xbf16>, vector<16x32xbf16>, vector<64x32xf32> -> vector<64x32xf32>
    %190 = arith.addf %181, %189 : vector<64x32xf32>
    %c1_106 = arith.constant 1 : index
    %c96_107 = arith.constant 96 : index
    %c0_108 = arith.constant 0 : index
    %191 = vector.load %arg10[%c1_106, %c96_107, %c0_108] : memref<5x192x16xbf16, #tpu.memory_space<vmem>>, vector<1x64x16xbf16>
    %192 = vector.shape_cast %191 : vector<1x64x16xbf16> to vector<64x16xbf16>
    %cst_109 = arith.constant dense<0.000000e+00> : vector<64x32xf32>
    %193 = tpu.matmul %192, %186, %cst_109 {dimension_numbers = #tpu.dot_dimension_numbers<[1], [0], [0], [1], [0, 0, 1, 1], [], []>} : vector<64x16xbf16>, vector<16x32xbf16>, vector<64x32xf32> -> vector<64x32xf32>
    %194 = arith.addf %185, %193 : vector<64x32xf32>
    %c32 = arith.constant 32 : index
    %c0_110 = arith.constant 0 : index
    %195 = vector.load %arg4[%c32, %c0_110] : memref<400x32xbf16, #tpu.memory_space<vmem>>, vector<16x32xbf16>
    %c2_111 = arith.constant 2 : index
    %c0_112 = arith.constant 0 : index
    %c0_113 = arith.constant 0 : index
    %196 = vector.load %arg10[%c2_111, %c0_112, %c0_113] : memref<5x192x16xbf16, #tpu.memory_space<vmem>>, vector<1x64x16xbf16>
    %197 = vector.shape_cast %196 : vector<1x64x16xbf16> to vector<64x16xbf16>
    %cst_114 = arith.constant dense<0.000000e+00> : vector<64x32xf32>
    %198 = tpu.matmul %197, %195, %cst_114 {dimension_numbers = #tpu.dot_dimension_numbers<[1], [0], [0], [1], [0, 0, 1, 1], [], []>} : vector<64x16xbf16>, vector<16x32xbf16>, vector<64x32xf32> -> vector<64x32xf32>
    %199 = arith.addf %190, %198 : vector<64x32xf32>
    %c2_115 = arith.constant 2 : index
    %c96_116 = arith.constant 96 : index
    %c0_117 = arith.constant 0 : index
    %200 = vector.load %arg10[%c2_115, %c96_116, %c0_117] : memref<5x192x16xbf16, #tpu.memory_space<vmem>>, vector<1x64x16xbf16>
    %201 = vector.shape_cast %200 : vector<1x64x16xbf16> to vector<64x16xbf16>
    %cst_118 = arith.constant dense<0.000000e+00> : vector<64x32xf32>
    %202 = tpu.matmul %201, %195, %cst_118 {dimension_numbers = #tpu.dot_dimension_numbers<[1], [0], [0], [1], [0, 0, 1, 1], [], []>} : vector<64x16xbf16>, vector<16x32xbf16>, vector<64x32xf32> -> vector<64x32xf32>
    %203 = arith.addf %194, %202 : vector<64x32xf32>
    %c48 = arith.constant 48 : index
    %c0_119 = arith.constant 0 : index
    %204 = vector.load %arg4[%c48, %c0_119] : memref<400x32xbf16, #tpu.memory_space<vmem>>, vector<16x32xbf16>
    %c3_120 = arith.constant 3 : index
    %c0_121 = arith.constant 0 : index
    %c0_122 = arith.constant 0 : index
    %205 = vector.load %arg10[%c3_120, %c0_121, %c0_122] : memref<5x192x16xbf16, #tpu.memory_space<vmem>>, vector<1x64x16xbf16>
    %206 = vector.shape_cast %205 : vector<1x64x16xbf16> to vector<64x16xbf16>
    %cst_123 = arith.constant dense<0.000000e+00> : vector<64x32xf32>
    %207 = tpu.matmul %206, %204, %cst_123 {dimension_numbers = #tpu.dot_dimension_numbers<[1], [0], [0], [1], [0, 0, 1, 1], [], []>} : vector<64x16xbf16>, vector<16x32xbf16>, vector<64x32xf32> -> vector<64x32xf32>
    %208 = arith.addf %199, %207 : vector<64x32xf32>
    %c3_124 = arith.constant 3 : index
    %c96_125 = arith.constant 96 : index
    %c0_126 = arith.constant 0 : index
    %209 = vector.load %arg10[%c3_124, %c96_125, %c0_126] : memref<5x192x16xbf16, #tpu.memory_space<vmem>>, vector<1x64x16xbf16>
    %210 = vector.shape_cast %209 : vector<1x64x16xbf16> to vector<64x16xbf16>
    %cst_127 = arith.constant dense<0.000000e+00> : vector<64x32xf32>
    %211 = tpu.matmul %210, %204, %cst_127 {dimension_numbers = #tpu.dot_dimension_numbers<[1], [0], [0], [1], [0, 0, 1, 1], [], []>} : vector<64x16xbf16>, vector<16x32xbf16>, vector<64x32xf32> -> vector<64x32xf32>
    %212 = arith.addf %203, %211 : vector<64x32xf32>
    %c64_128 = arith.constant 64 : index
    %c0_129 = arith.constant 0 : index
    %213 = vector.load %arg4[%c64_128, %c0_129] : memref<400x32xbf16, #tpu.memory_space<vmem>>, vector<16x32xbf16>
    %c4_130 = arith.constant 4 : index
    %c0_131 = arith.constant 0 : index
    %c0_132 = arith.constant 0 : index
    %214 = vector.load %arg10[%c4_130, %c0_131, %c0_132] : memref<5x192x16xbf16, #tpu.memory_space<vmem>>, vector<1x64x16xbf16>
    %215 = vector.shape_cast %214 : vector<1x64x16xbf16> to vector<64x16xbf16>
    %cst_133 = arith.constant dense<0.000000e+00> : vector<64x32xf32>
    %216 = tpu.matmul %215, %213, %cst_133 {dimension_numbers = #tpu.dot_dimension_numbers<[1], [0], [0], [1], [0, 0, 1, 1], [], []>} : vector<64x16xbf16>, vector<16x32xbf16>, vector<64x32xf32> -> vector<64x32xf32>
    %217 = arith.addf %208, %216 : vector<64x32xf32>
    %c4_134 = arith.constant 4 : index
    %c96_135 = arith.constant 96 : index
    %c0_136 = arith.constant 0 : index
    %218 = vector.load %arg10[%c4_134, %c96_135, %c0_136] : memref<5x192x16xbf16, #tpu.memory_space<vmem>>, vector<1x64x16xbf16>
    %219 = vector.shape_cast %218 : vector<1x64x16xbf16> to vector<64x16xbf16>
    %cst_137 = arith.constant dense<0.000000e+00> : vector<64x32xf32>
    %220 = tpu.matmul %219, %213, %cst_137 {dimension_numbers = #tpu.dot_dimension_numbers<[1], [0], [0], [1], [0, 0, 1, 1], [], []>} : vector<64x16xbf16>, vector<16x32xbf16>, vector<64x32xf32> -> vector<64x32xf32>
    %221 = arith.addf %212, %220 : vector<64x32xf32>
    %c80 = arith.constant 80 : index
    %c0_138 = arith.constant 0 : index
    %222 = vector.load %arg4[%c80, %c0_138] : memref<400x32xbf16, #tpu.memory_space<vmem>>, vector<16x32xbf16>
    %c0_139 = arith.constant 0 : index
    %c8 = arith.constant 8 : index
    %c0_140 = arith.constant 0 : index
    %223 = vector.load %arg10[%c0_139, %c8, %c0_140] : memref<5x192x16xbf16, #tpu.memory_space<vmem>>, vector<1x64x16xbf16>
    %224 = vector.shape_cast %223 : vector<1x64x16xbf16> to vector<64x16xbf16>
    %cst_141 = arith.constant dense<0.000000e+00> : vector<64x32xf32>
    %225 = tpu.matmul %224, %222, %cst_141 {dimension_numbers = #tpu.dot_dimension_numbers<[1], [0], [0], [1], [0, 0, 1, 1], [], []>} : vector<64x16xbf16>, vector<16x32xbf16>, vector<64x32xf32> -> vector<64x32xf32>
    %226 = arith.addf %217, %225 : vector<64x32xf32>
    %c0_142 = arith.constant 0 : index
    %c104 = arith.constant 104 : index
    %c0_143 = arith.constant 0 : index
    %227 = vector.load %arg10[%c0_142, %c104, %c0_143] : memref<5x192x16xbf16, #tpu.memory_space<vmem>>, vector<1x64x16xbf16>
    %228 = vector.shape_cast %227 : vector<1x64x16xbf16> to vector<64x16xbf16>
    %cst_144 = arith.constant dense<0.000000e+00> : vector<64x32xf32>
    %229 = tpu.matmul %228, %222, %cst_144 {dimension_numbers = #tpu.dot_dimension_numbers<[1], [0], [0], [1], [0, 0, 1, 1], [], []>} : vector<64x16xbf16>, vector<16x32xbf16>, vector<64x32xf32> -> vector<64x32xf32>
    %230 = arith.addf %221, %229 : vector<64x32xf32>
    %c96_145 = arith.constant 96 : index
    %c0_146 = arith.constant 0 : index
    %231 = vector.load %arg4[%c96_145, %c0_146] : memref<400x32xbf16, #tpu.memory_space<vmem>>, vector<16x32xbf16>
    %c1_147 = arith.constant 1 : index
    %c8_148 = arith.constant 8 : index
    %c0_149 = arith.constant 0 : index
    %232 = vector.load %arg10[%c1_147, %c8_148, %c0_149] : memref<5x192x16xbf16, #tpu.memory_space<vmem>>, vector<1x64x16xbf16>
    %233 = vector.shape_cast %232 : vector<1x64x16xbf16> to vector<64x16xbf16>
    %cst_150 = arith.constant dense<0.000000e+00> : vector<64x32xf32>
    %234 = tpu.matmul %233, %231, %cst_150 {dimension_numbers = #tpu.dot_dimension_numbers<[1], [0], [0], [1], [0, 0, 1, 1], [], []>} : vector<64x16xbf16>, vector<16x32xbf16>, vector<64x32xf32> -> vector<64x32xf32>
    %235 = arith.addf %226, %234 : vector<64x32xf32>
    %c1_151 = arith.constant 1 : index
    %c104_152 = arith.constant 104 : index
    %c0_153 = arith.constant 0 : index
    %236 = vector.load %arg10[%c1_151, %c104_152, %c0_153] : memref<5x192x16xbf16, #tpu.memory_space<vmem>>, vector<1x64x16xbf16>
    %237 = vector.shape_cast %236 : vector<1x64x16xbf16> to vector<64x16xbf16>
    %cst_154 = arith.constant dense<0.000000e+00> : vector<64x32xf32>
    %238 = tpu.matmul %237, %231, %cst_154 {dimension_numbers = #tpu.dot_dimension_numbers<[1], [0], [0], [1], [0, 0, 1, 1], [], []>} : vector<64x16xbf16>, vector<16x32xbf16>, vector<64x32xf32> -> vector<64x32xf32>
    %239 = arith.addf %230, %238 : vector<64x32xf32>
    %c112_155 = arith.constant 112 : index
    %c0_156 = arith.constant 0 : index
    %240 = vector.load %arg4[%c112_155, %c0_156] : memref<400x32xbf16, #tpu.memory_space<vmem>>, vector<16x32xbf16>
    %c2_157 = arith.constant 2 : index
    %c8_158 = arith.constant 8 : index
    %c0_159 = arith.constant 0 : index
    %241 = vector.load %arg10[%c2_157, %c8_158, %c0_159] : memref<5x192x16xbf16, #tpu.memory_space<vmem>>, vector<1x64x16xbf16>
    %242 = vector.shape_cast %241 : vector<1x64x16xbf16> to vector<64x16xbf16>
    %cst_160 = arith.constant dense<0.000000e+00> : vector<64x32xf32>
    %243 = tpu.matmul %242, %240, %cst_160 {dimension_numbers = #tpu.dot_dimension_numbers<[1], [0], [0], [1], [0, 0, 1, 1], [], []>} : vector<64x16xbf16>, vector<16x32xbf16>, vector<64x32xf32> -> vector<64x32xf32>
    %244 = arith.addf %235, %243 : vector<64x32xf32>
    %c2_161 = arith.constant 2 : index
    %c104_162 = arith.constant 104 : index
    %c0_163 = arith.constant 0 : index
    %245 = vector.load %arg10[%c2_161, %c104_162, %c0_163] : memref<5x192x16xbf16, #tpu.memory_space<vmem>>, vector<1x64x16xbf16>
    %246 = vector.shape_cast %245 : vector<1x64x16xbf16> to vector<64x16xbf16>
    %cst_164 = arith.constant dense<0.000000e+00> : vector<64x32xf32>
    %247 = tpu.matmul %246, %240, %cst_164 {dimension_numbers = #tpu.dot_dimension_numbers<[1], [0], [0], [1], [0, 0, 1, 1], [], []>} : vector<64x16xbf16>, vector<16x32xbf16>, vector<64x32xf32> -> vector<64x32xf32>
    %248 = arith.addf %239, %247 : vector<64x32xf32>
    %c128_165 = arith.constant 128 : index
    %c0_166 = arith.constant 0 : index
    %249 = vector.load %arg4[%c128_165, %c0_166] : memref<400x32xbf16, #tpu.memory_space<vmem>>, vector<16x32xbf16>
    %c3_167 = arith.constant 3 : index
    %c8_168 = arith.constant 8 : index
    %c0_169 = arith.constant 0 : index
    %250 = vector.load %arg10[%c3_167, %c8_168, %c0_169] : memref<5x192x16xbf16, #tpu.memory_space<vmem>>, vector<1x64x16xbf16>
    %251 = vector.shape_cast %250 : vector<1x64x16xbf16> to vector<64x16xbf16>
    %cst_170 = arith.constant dense<0.000000e+00> : vector<64x32xf32>
    %252 = tpu.matmul %251, %249, %cst_170 {dimension_numbers = #tpu.dot_dimension_numbers<[1], [0], [0], [1], [0, 0, 1, 1], [], []>} : vector<64x16xbf16>, vector<16x32xbf16>, vector<64x32xf32> -> vector<64x32xf32>
    %253 = arith.addf %244, %252 : vector<64x32xf32>
    %c3_171 = arith.constant 3 : index
    %c104_172 = arith.constant 104 : index
    %c0_173 = arith.constant 0 : index
    %254 = vector.load %arg10[%c3_171, %c104_172, %c0_173] : memref<5x192x16xbf16, #tpu.memory_space<vmem>>, vector<1x64x16xbf16>
    %255 = vector.shape_cast %254 : vector<1x64x16xbf16> to vector<64x16xbf16>
    %cst_174 = arith.constant dense<0.000000e+00> : vector<64x32xf32>
    %256 = tpu.matmul %255, %249, %cst_174 {dimension_numbers = #tpu.dot_dimension_numbers<[1], [0], [0], [1], [0, 0, 1, 1], [], []>} : vector<64x16xbf16>, vector<16x32xbf16>, vector<64x32xf32> -> vector<64x32xf32>
    %257 = arith.addf %248, %256 : vector<64x32xf32>
    %c144 = arith.constant 144 : index
    %c0_175 = arith.constant 0 : index
    %258 = vector.load %arg4[%c144, %c0_175] : memref<400x32xbf16, #tpu.memory_space<vmem>>, vector<16x32xbf16>
    %c4_176 = arith.constant 4 : index
    %c8_177 = arith.constant 8 : index
    %c0_178 = arith.constant 0 : index
    %259 = vector.load %arg10[%c4_176, %c8_177, %c0_178] : memref<5x192x16xbf16, #tpu.memory_space<vmem>>, vector<1x64x16xbf16>
    %260 = vector.shape_cast %259 : vector<1x64x16xbf16> to vector<64x16xbf16>
    %cst_179 = arith.constant dense<0.000000e+00> : vector<64x32xf32>
    %261 = tpu.matmul %260, %258, %cst_179 {dimension_numbers = #tpu.dot_dimension_numbers<[1], [0], [0], [1], [0, 0, 1, 1], [], []>} : vector<64x16xbf16>, vector<16x32xbf16>, vector<64x32xf32> -> vector<64x32xf32>
    %262 = arith.addf %253, %261 : vector<64x32xf32>
    %c4_180 = arith.constant 4 : index
    %c104_181 = arith.constant 104 : index
    %c0_182 = arith.constant 0 : index
    %263 = vector.load %arg10[%c4_180, %c104_181, %c0_182] : memref<5x192x16xbf16, #tpu.memory_space<vmem>>, vector<1x64x16xbf16>
    %264 = vector.shape_cast %263 : vector<1x64x16xbf16> to vector<64x16xbf16>
    %cst_183 = arith.constant dense<0.000000e+00> : vector<64x32xf32>
    %265 = tpu.matmul %264, %258, %cst_183 {dimension_numbers = #tpu.dot_dimension_numbers<[1], [0], [0], [1], [0, 0, 1, 1], [], []>} : vector<64x16xbf16>, vector<16x32xbf16>, vector<64x32xf32> -> vector<64x32xf32>
    %266 = arith.addf %257, %265 : vector<64x32xf32>
    %c160 = arith.constant 160 : index
    %c0_184 = arith.constant 0 : index
    %267 = vector.load %arg4[%c160, %c0_184] : memref<400x32xbf16, #tpu.memory_space<vmem>>, vector<16x32xbf16>
    %c0_185 = arith.constant 0 : index
    %c16_186 = arith.constant 16 : index
    %c0_187 = arith.constant 0 : index
    %268 = vector.load %arg10[%c0_185, %c16_186, %c0_187] : memref<5x192x16xbf16, #tpu.memory_space<vmem>>, vector<1x64x16xbf16>
    %269 = vector.shape_cast %268 : vector<1x64x16xbf16> to vector<64x16xbf16>
    %cst_188 = arith.constant dense<0.000000e+00> : vector<64x32xf32>
    %270 = tpu.matmul %269, %267, %cst_188 {dimension_numbers = #tpu.dot_dimension_numbers<[1], [0], [0], [1], [0, 0, 1, 1], [], []>} : vector<64x16xbf16>, vector<16x32xbf16>, vector<64x32xf32> -> vector<64x32xf32>
    %271 = arith.addf %262, %270 : vector<64x32xf32>
    %c0_189 = arith.constant 0 : index
    %c112_190 = arith.constant 112 : index
    %c0_191 = arith.constant 0 : index
    %272 = vector.load %arg10[%c0_189, %c112_190, %c0_191] : memref<5x192x16xbf16, #tpu.memory_space<vmem>>, vector<1x64x16xbf16>
    %273 = vector.shape_cast %272 : vector<1x64x16xbf16> to vector<64x16xbf16>
    %cst_192 = arith.constant dense<0.000000e+00> : vector<64x32xf32>
    %274 = tpu.matmul %273, %267, %cst_192 {dimension_numbers = #tpu.dot_dimension_numbers<[1], [0], [0], [1], [0, 0, 1, 1], [], []>} : vector<64x16xbf16>, vector<16x32xbf16>, vector<64x32xf32> -> vector<64x32xf32>
    %275 = arith.addf %266, %274 : vector<64x32xf32>
    %c176 = arith.constant 176 : index
    %c0_193 = arith.constant 0 : index
    %276 = vector.load %arg4[%c176, %c0_193] : memref<400x32xbf16, #tpu.memory_space<vmem>>, vector<16x32xbf16>
    %c1_194 = arith.constant 1 : index
    %c16_195 = arith.constant 16 : index
    %c0_196 = arith.constant 0 : index
    %277 = vector.load %arg10[%c1_194, %c16_195, %c0_196] : memref<5x192x16xbf16, #tpu.memory_space<vmem>>, vector<1x64x16xbf16>
    %278 = vector.shape_cast %277 : vector<1x64x16xbf16> to vector<64x16xbf16>
    %cst_197 = arith.constant dense<0.000000e+00> : vector<64x32xf32>
    %279 = tpu.matmul %278, %276, %cst_197 {dimension_numbers = #tpu.dot_dimension_numbers<[1], [0], [0], [1], [0, 0, 1, 1], [], []>} : vector<64x16xbf16>, vector<16x32xbf16>, vector<64x32xf32> -> vector<64x32xf32>
    %280 = arith.addf %271, %279 : vector<64x32xf32>
    %c1_198 = arith.constant 1 : index
    %c112_199 = arith.constant 112 : index
    %c0_200 = arith.constant 0 : index
    %281 = vector.load %arg10[%c1_198, %c112_199, %c0_200] : memref<5x192x16xbf16, #tpu.memory_space<vmem>>, vector<1x64x16xbf16>
    %282 = vector.shape_cast %281 : vector<1x64x16xbf16> to vector<64x16xbf16>
    %cst_201 = arith.constant dense<0.000000e+00> : vector<64x32xf32>
    %283 = tpu.matmul %282, %276, %cst_201 {dimension_numbers = #tpu.dot_dimension_numbers<[1], [0], [0], [1], [0, 0, 1, 1], [], []>} : vector<64x16xbf16>, vector<16x32xbf16>, vector<64x32xf32> -> vector<64x32xf32>
    %284 = arith.addf %275, %283 : vector<64x32xf32>
    %c192_202 = arith.constant 192 : index
    %c0_203 = arith.constant 0 : index
    %285 = vector.load %arg4[%c192_202, %c0_203] : memref<400x32xbf16, #tpu.memory_space<vmem>>, vector<16x32xbf16>
    %c2_204 = arith.constant 2 : index
    %c16_205 = arith.constant 16 : index
    %c0_206 = arith.constant 0 : index
    %286 = vector.load %arg10[%c2_204, %c16_205, %c0_206] : memref<5x192x16xbf16, #tpu.memory_space<vmem>>, vector<1x64x16xbf16>
    %287 = vector.shape_cast %286 : vector<1x64x16xbf16> to vector<64x16xbf16>
    %cst_207 = arith.constant dense<0.000000e+00> : vector<64x32xf32>
    %288 = tpu.matmul %287, %285, %cst_207 {dimension_numbers = #tpu.dot_dimension_numbers<[1], [0], [0], [1], [0, 0, 1, 1], [], []>} : vector<64x16xbf16>, vector<16x32xbf16>, vector<64x32xf32> -> vector<64x32xf32>
    %289 = arith.addf %280, %288 : vector<64x32xf32>
    %c2_208 = arith.constant 2 : index
    %c112_209 = arith.constant 112 : index
    %c0_210 = arith.constant 0 : index
    %290 = vector.load %arg10[%c2_208, %c112_209, %c0_210] : memref<5x192x16xbf16, #tpu.memory_space<vmem>>, vector<1x64x16xbf16>
    %291 = vector.shape_cast %290 : vector<1x64x16xbf16> to vector<64x16xbf16>
    %cst_211 = arith.constant dense<0.000000e+00> : vector<64x32xf32>
    %292 = tpu.matmul %291, %285, %cst_211 {dimension_numbers = #tpu.dot_dimension_numbers<[1], [0], [0], [1], [0, 0, 1, 1], [], []>} : vector<64x16xbf16>, vector<16x32xbf16>, vector<64x32xf32> -> vector<64x32xf32>
    %293 = arith.addf %284, %292 : vector<64x32xf32>
    %c208 = arith.constant 208 : index
    %c0_212 = arith.constant 0 : index
    %294 = vector.load %arg4[%c208, %c0_212] : memref<400x32xbf16, #tpu.memory_space<vmem>>, vector<16x32xbf16>
    %c3_213 = arith.constant 3 : index
    %c16_214 = arith.constant 16 : index
    %c0_215 = arith.constant 0 : index
    %295 = vector.load %arg10[%c3_213, %c16_214, %c0_215] : memref<5x192x16xbf16, #tpu.memory_space<vmem>>, vector<1x64x16xbf16>
    %296 = vector.shape_cast %295 : vector<1x64x16xbf16> to vector<64x16xbf16>
    %cst_216 = arith.constant dense<0.000000e+00> : vector<64x32xf32>
    %297 = tpu.matmul %296, %294, %cst_216 {dimension_numbers = #tpu.dot_dimension_numbers<[1], [0], [0], [1], [0, 0, 1, 1], [], []>} : vector<64x16xbf16>, vector<16x32xbf16>, vector<64x32xf32> -> vector<64x32xf32>
    %298 = arith.addf %289, %297 : vector<64x32xf32>
    %c3_217 = arith.constant 3 : index
    %c112_218 = arith.constant 112 : index
    %c0_219 = arith.constant 0 : index
    %299 = vector.load %arg10[%c3_217, %c112_218, %c0_219] : memref<5x192x16xbf16, #tpu.memory_space<vmem>>, vector<1x64x16xbf16>
    %300 = vector.shape_cast %299 : vector<1x64x16xbf16> to vector<64x16xbf16>
    %cst_220 = arith.constant dense<0.000000e+00> : vector<64x32xf32>
    %301 = tpu.matmul %300, %294, %cst_220 {dimension_numbers = #tpu.dot_dimension_numbers<[1], [0], [0], [1], [0, 0, 1, 1], [], []>} : vector<64x16xbf16>, vector<16x32xbf16>, vector<64x32xf32> -> vector<64x32xf32>
    %302 = arith.addf %293, %301 : vector<64x32xf32>
    %c224 = arith.constant 224 : index
    %c0_221 = arith.constant 0 : index
    %303 = vector.load %arg4[%c224, %c0_221] : memref<400x32xbf16, #tpu.memory_space<vmem>>, vector<16x32xbf16>
    %c4_222 = arith.constant 4 : index
    %c16_223 = arith.constant 16 : index
    %c0_224 = arith.constant 0 : index
    %304 = vector.load %arg10[%c4_222, %c16_223, %c0_224] : memref<5x192x16xbf16, #tpu.memory_space<vmem>>, vector<1x64x16xbf16>
    %305 = vector.shape_cast %304 : vector<1x64x16xbf16> to vector<64x16xbf16>
    %cst_225 = arith.constant dense<0.000000e+00> : vector<64x32xf32>
    %306 = tpu.matmul %305, %303, %cst_225 {dimension_numbers = #tpu.dot_dimension_numbers<[1], [0], [0], [1], [0, 0, 1, 1], [], []>} : vector<64x16xbf16>, vector<16x32xbf16>, vector<64x32xf32> -> vector<64x32xf32>
    %307 = arith.addf %298, %306 : vector<64x32xf32>
    %c4_226 = arith.constant 4 : index
    %c112_227 = arith.constant 112 : index
    %c0_228 = arith.constant 0 : index
    %308 = vector.load %arg10[%c4_226, %c112_227, %c0_228] : memref<5x192x16xbf16, #tpu.memory_space<vmem>>, vector<1x64x16xbf16>
    %309 = vector.shape_cast %308 : vector<1x64x16xbf16> to vector<64x16xbf16>
    %cst_229 = arith.constant dense<0.000000e+00> : vector<64x32xf32>
    %310 = tpu.matmul %309, %303, %cst_229 {dimension_numbers = #tpu.dot_dimension_numbers<[1], [0], [0], [1], [0, 0, 1, 1], [], []>} : vector<64x16xbf16>, vector<16x32xbf16>, vector<64x32xf32> -> vector<64x32xf32>
    %311 = arith.addf %302, %310 : vector<64x32xf32>
    %c240 = arith.constant 240 : index
    %c0_230 = arith.constant 0 : index
    %312 = vector.load %arg4[%c240, %c0_230] : memref<400x32xbf16, #tpu.memory_space<vmem>>, vector<16x32xbf16>
    %c0_231 = arith.constant 0 : index
    %c24 = arith.constant 24 : index
    %c0_232 = arith.constant 0 : index
    %313 = vector.load %arg10[%c0_231, %c24, %c0_232] : memref<5x192x16xbf16, #tpu.memory_space<vmem>>, vector<1x64x16xbf16>
    %314 = vector.shape_cast %313 : vector<1x64x16xbf16> to vector<64x16xbf16>
    %cst_233 = arith.constant dense<0.000000e+00> : vector<64x32xf32>
    %315 = tpu.matmul %314, %312, %cst_233 {dimension_numbers = #tpu.dot_dimension_numbers<[1], [0], [0], [1], [0, 0, 1, 1], [], []>} : vector<64x16xbf16>, vector<16x32xbf16>, vector<64x32xf32> -> vector<64x32xf32>
    %316 = arith.addf %307, %315 : vector<64x32xf32>
    %c0_234 = arith.constant 0 : index
    %c120 = arith.constant 120 : index
    %c0_235 = arith.constant 0 : index
    %317 = vector.load %arg10[%c0_234, %c120, %c0_235] : memref<5x192x16xbf16, #tpu.memory_space<vmem>>, vector<1x64x16xbf16>
    %318 = vector.shape_cast %317 : vector<1x64x16xbf16> to vector<64x16xbf16>
    %cst_236 = arith.constant dense<0.000000e+00> : vector<64x32xf32>
    %319 = tpu.matmul %318, %312, %cst_236 {dimension_numbers = #tpu.dot_dimension_numbers<[1], [0], [0], [1], [0, 0, 1, 1], [], []>} : vector<64x16xbf16>, vector<16x32xbf16>, vector<64x32xf32> -> vector<64x32xf32>
    %320 = arith.addf %311, %319 : vector<64x32xf32>
    %c256_237 = arith.constant 256 : index
    %c0_238 = arith.constant 0 : index
    %321 = vector.load %arg4[%c256_237, %c0_238] : memref<400x32xbf16, #tpu.memory_space<vmem>>, vector<16x32xbf16>
    %c1_239 = arith.constant 1 : index
    %c24_240 = arith.constant 24 : index
    %c0_241 = arith.constant 0 : index
    %322 = vector.load %arg10[%c1_239, %c24_240, %c0_241] : memref<5x192x16xbf16, #tpu.memory_space<vmem>>, vector<1x64x16xbf16>
    %323 = vector.shape_cast %322 : vector<1x64x16xbf16> to vector<64x16xbf16>
    %cst_242 = arith.constant dense<0.000000e+00> : vector<64x32xf32>
    %324 = tpu.matmul %323, %321, %cst_242 {dimension_numbers = #tpu.dot_dimension_numbers<[1], [0], [0], [1], [0, 0, 1, 1], [], []>} : vector<64x16xbf16>, vector<16x32xbf16>, vector<64x32xf32> -> vector<64x32xf32>
    %325 = arith.addf %316, %324 : vector<64x32xf32>
    %c1_243 = arith.constant 1 : index
    %c120_244 = arith.constant 120 : index
    %c0_245 = arith.constant 0 : index
    %326 = vector.load %arg10[%c1_243, %c120_244, %c0_245] : memref<5x192x16xbf16, #tpu.memory_space<vmem>>, vector<1x64x16xbf16>
    %327 = vector.shape_cast %326 : vector<1x64x16xbf16> to vector<64x16xbf16>
    %cst_246 = arith.constant dense<0.000000e+00> : vector<64x32xf32>
    %328 = tpu.matmul %327, %321, %cst_246 {dimension_numbers = #tpu.dot_dimension_numbers<[1], [0], [0], [1], [0, 0, 1, 1], [], []>} : vector<64x16xbf16>, vector<16x32xbf16>, vector<64x32xf32> -> vector<64x32xf32>
    %329 = arith.addf %320, %328 : vector<64x32xf32>
    %c272 = arith.constant 272 : index
    %c0_247 = arith.constant 0 : index
    %330 = vector.load %arg4[%c272, %c0_247] : memref<400x32xbf16, #tpu.memory_space<vmem>>, vector<16x32xbf16>
    %c2_248 = arith.constant 2 : index
    %c24_249 = arith.constant 24 : index
    %c0_250 = arith.constant 0 : index
    %331 = vector.load %arg10[%c2_248, %c24_249, %c0_250] : memref<5x192x16xbf16, #tpu.memory_space<vmem>>, vector<1x64x16xbf16>
    %332 = vector.shape_cast %331 : vector<1x64x16xbf16> to vector<64x16xbf16>
    %cst_251 = arith.constant dense<0.000000e+00> : vector<64x32xf32>
    %333 = tpu.matmul %332, %330, %cst_251 {dimension_numbers = #tpu.dot_dimension_numbers<[1], [0], [0], [1], [0, 0, 1, 1], [], []>} : vector<64x16xbf16>, vector<16x32xbf16>, vector<64x32xf32> -> vector<64x32xf32>
    %334 = arith.addf %325, %333 : vector<64x32xf32>
    %c2_252 = arith.constant 2 : index
    %c120_253 = arith.constant 120 : index
    %c0_254 = arith.constant 0 : index
    %335 = vector.load %arg10[%c2_252, %c120_253, %c0_254] : memref<5x192x16xbf16, #tpu.memory_space<vmem>>, vector<1x64x16xbf16>
    %336 = vector.shape_cast %335 : vector<1x64x16xbf16> to vector<64x16xbf16>
    %cst_255 = arith.constant dense<0.000000e+00> : vector<64x32xf32>
    %337 = tpu.matmul %336, %330, %cst_255 {dimension_numbers = #tpu.dot_dimension_numbers<[1], [0], [0], [1], [0, 0, 1, 1], [], []>} : vector<64x16xbf16>, vector<16x32xbf16>, vector<64x32xf32> -> vector<64x32xf32>
    %338 = arith.addf %329, %337 : vector<64x32xf32>
    %c288 = arith.constant 288 : index
    %c0_256 = arith.constant 0 : index
    %339 = vector.load %arg4[%c288, %c0_256] : memref<400x32xbf16, #tpu.memory_space<vmem>>, vector<16x32xbf16>
    %c3_257 = arith.constant 3 : index
    %c24_258 = arith.constant 24 : index
    %c0_259 = arith.constant 0 : index
    %340 = vector.load %arg10[%c3_257, %c24_258, %c0_259] : memref<5x192x16xbf16, #tpu.memory_space<vmem>>, vector<1x64x16xbf16>
    %341 = vector.shape_cast %340 : vector<1x64x16xbf16> to vector<64x16xbf16>
    %cst_260 = arith.constant dense<0.000000e+00> : vector<64x32xf32>
    %342 = tpu.matmul %341, %339, %cst_260 {dimension_numbers = #tpu.dot_dimension_numbers<[1], [0], [0], [1], [0, 0, 1, 1], [], []>} : vector<64x16xbf16>, vector<16x32xbf16>, vector<64x32xf32> -> vector<64x32xf32>
    %343 = arith.addf %334, %342 : vector<64x32xf32>
    %c3_261 = arith.constant 3 : index
    %c120_262 = arith.constant 120 : index
    %c0_263 = arith.constant 0 : index
    %344 = vector.load %arg10[%c3_261, %c120_262, %c0_263] : memref<5x192x16xbf16, #tpu.memory_space<vmem>>, vector<1x64x16xbf16>
    %345 = vector.shape_cast %344 : vector<1x64x16xbf16> to vector<64x16xbf16>
    %cst_264 = arith.constant dense<0.000000e+00> : vector<64x32xf32>
    %346 = tpu.matmul %345, %339, %cst_264 {dimension_numbers = #tpu.dot_dimension_numbers<[1], [0], [0], [1], [0, 0, 1, 1], [], []>} : vector<64x16xbf16>, vector<16x32xbf16>, vector<64x32xf32> -> vector<64x32xf32>
    %347 = arith.addf %338, %346 : vector<64x32xf32>
    %c304 = arith.constant 304 : index
    %c0_265 = arith.constant 0 : index
    %348 = vector.load %arg4[%c304, %c0_265] : memref<400x32xbf16, #tpu.memory_space<vmem>>, vector<16x32xbf16>
    %c4_266 = arith.constant 4 : index
    %c24_267 = arith.constant 24 : index
    %c0_268 = arith.constant 0 : index
    %349 = vector.load %arg10[%c4_266, %c24_267, %c0_268] : memref<5x192x16xbf16, #tpu.memory_space<vmem>>, vector<1x64x16xbf16>
    %350 = vector.shape_cast %349 : vector<1x64x16xbf16> to vector<64x16xbf16>
    %cst_269 = arith.constant dense<0.000000e+00> : vector<64x32xf32>
    %351 = tpu.matmul %350, %348, %cst_269 {dimension_numbers = #tpu.dot_dimension_numbers<[1], [0], [0], [1], [0, 0, 1, 1], [], []>} : vector<64x16xbf16>, vector<16x32xbf16>, vector<64x32xf32> -> vector<64x32xf32>
    %352 = arith.addf %343, %351 : vector<64x32xf32>
    %c4_270 = arith.constant 4 : index
    %c120_271 = arith.constant 120 : index
    %c0_272 = arith.constant 0 : index
    %353 = vector.load %arg10[%c4_270, %c120_271, %c0_272] : memref<5x192x16xbf16, #tpu.memory_space<vmem>>, vector<1x64x16xbf16>
    %354 = vector.shape_cast %353 : vector<1x64x16xbf16> to vector<64x16xbf16>
    %cst_273 = arith.constant dense<0.000000e+00> : vector<64x32xf32>
    %355 = tpu.matmul %354, %348, %cst_273 {dimension_numbers = #tpu.dot_dimension_numbers<[1], [0], [0], [1], [0, 0, 1, 1], [], []>} : vector<64x16xbf16>, vector<16x32xbf16>, vector<64x32xf32> -> vector<64x32xf32>
    %356 = arith.addf %347, %355 : vector<64x32xf32>
    %c320_274 = arith.constant 320 : index
    %c0_275 = arith.constant 0 : index
    %357 = vector.load %arg4[%c320_274, %c0_275] : memref<400x32xbf16, #tpu.memory_space<vmem>>, vector<16x32xbf16>
    %c0_276 = arith.constant 0 : index
    %c32_277 = arith.constant 32 : index
    %c0_278 = arith.constant 0 : index
    %358 = vector.load %arg10[%c0_276, %c32_277, %c0_278] : memref<5x192x16xbf16, #tpu.memory_space<vmem>>, vector<1x64x16xbf16>
    %359 = vector.shape_cast %358 : vector<1x64x16xbf16> to vector<64x16xbf16>
    %cst_279 = arith.constant dense<0.000000e+00> : vector<64x32xf32>
    %360 = tpu.matmul %359, %357, %cst_279 {dimension_numbers = #tpu.dot_dimension_numbers<[1], [0], [0], [1], [0, 0, 1, 1], [], []>} : vector<64x16xbf16>, vector<16x32xbf16>, vector<64x32xf32> -> vector<64x32xf32>
    %361 = arith.addf %352, %360 : vector<64x32xf32>
    %c0_280 = arith.constant 0 : index
    %c128_281 = arith.constant 128 : index
    %c0_282 = arith.constant 0 : index
    %362 = vector.load %arg10[%c0_280, %c128_281, %c0_282] : memref<5x192x16xbf16, #tpu.memory_space<vmem>>, vector<1x64x16xbf16>
    %363 = vector.shape_cast %362 : vector<1x64x16xbf16> to vector<64x16xbf16>
    %cst_283 = arith.constant dense<0.000000e+00> : vector<64x32xf32>
    %364 = tpu.matmul %363, %357, %cst_283 {dimension_numbers = #tpu.dot_dimension_numbers<[1], [0], [0], [1], [0, 0, 1, 1], [], []>} : vector<64x16xbf16>, vector<16x32xbf16>, vector<64x32xf32> -> vector<64x32xf32>
    %365 = arith.addf %356, %364 : vector<64x32xf32>
    %c336 = arith.constant 336 : index
    %c0_284 = arith.constant 0 : index
    %366 = vector.load %arg4[%c336, %c0_284] : memref<400x32xbf16, #tpu.memory_space<vmem>>, vector<16x32xbf16>
    %c1_285 = arith.constant 1 : index
    %c32_286 = arith.constant 32 : index
    %c0_287 = arith.constant 0 : index
    %367 = vector.load %arg10[%c1_285, %c32_286, %c0_287] : memref<5x192x16xbf16, #tpu.memory_space<vmem>>, vector<1x64x16xbf16>
    %368 = vector.shape_cast %367 : vector<1x64x16xbf16> to vector<64x16xbf16>
    %cst_288 = arith.constant dense<0.000000e+00> : vector<64x32xf32>
    %369 = tpu.matmul %368, %366, %cst_288 {dimension_numbers = #tpu.dot_dimension_numbers<[1], [0], [0], [1], [0, 0, 1, 1], [], []>} : vector<64x16xbf16>, vector<16x32xbf16>, vector<64x32xf32> -> vector<64x32xf32>
    %370 = arith.addf %361, %369 : vector<64x32xf32>
    %c1_289 = arith.constant 1 : index
    %c128_290 = arith.constant 128 : index
    %c0_291 = arith.constant 0 : index
    %371 = vector.load %arg10[%c1_289, %c128_290, %c0_291] : memref<5x192x16xbf16, #tpu.memory_space<vmem>>, vector<1x64x16xbf16>
    %372 = vector.shape_cast %371 : vector<1x64x16xbf16> to vector<64x16xbf16>
    %cst_292 = arith.constant dense<0.000000e+00> : vector<64x32xf32>
    %373 = tpu.matmul %372, %366, %cst_292 {dimension_numbers = #tpu.dot_dimension_numbers<[1], [0], [0], [1], [0, 0, 1, 1], [], []>} : vector<64x16xbf16>, vector<16x32xbf16>, vector<64x32xf32> -> vector<64x32xf32>
    %374 = arith.addf %365, %373 : vector<64x32xf32>
    %c352 = arith.constant 352 : index
    %c0_293 = arith.constant 0 : index
    %375 = vector.load %arg4[%c352, %c0_293] : memref<400x32xbf16, #tpu.memory_space<vmem>>, vector<16x32xbf16>
    %c2_294 = arith.constant 2 : index
    %c32_295 = arith.constant 32 : index
    %c0_296 = arith.constant 0 : index
    %376 = vector.load %arg10[%c2_294, %c32_295, %c0_296] : memref<5x192x16xbf16, #tpu.memory_space<vmem>>, vector<1x64x16xbf16>
    %377 = vector.shape_cast %376 : vector<1x64x16xbf16> to vector<64x16xbf16>
    %cst_297 = arith.constant dense<0.000000e+00> : vector<64x32xf32>
    %378 = tpu.matmul %377, %375, %cst_297 {dimension_numbers = #tpu.dot_dimension_numbers<[1], [0], [0], [1], [0, 0, 1, 1], [], []>} : vector<64x16xbf16>, vector<16x32xbf16>, vector<64x32xf32> -> vector<64x32xf32>
    %379 = arith.addf %370, %378 : vector<64x32xf32>
    %c2_298 = arith.constant 2 : index
    %c128_299 = arith.constant 128 : index
    %c0_300 = arith.constant 0 : index
    %380 = vector.load %arg10[%c2_298, %c128_299, %c0_300] : memref<5x192x16xbf16, #tpu.memory_space<vmem>>, vector<1x64x16xbf16>
    %381 = vector.shape_cast %380 : vector<1x64x16xbf16> to vector<64x16xbf16>
    %cst_301 = arith.constant dense<0.000000e+00> : vector<64x32xf32>
    %382 = tpu.matmul %381, %375, %cst_301 {dimension_numbers = #tpu.dot_dimension_numbers<[1], [0], [0], [1], [0, 0, 1, 1], [], []>} : vector<64x16xbf16>, vector<16x32xbf16>, vector<64x32xf32> -> vector<64x32xf32>
    %383 = arith.addf %374, %382 : vector<64x32xf32>
    %c368 = arith.constant 368 : index
    %c0_302 = arith.constant 0 : index
    %384 = vector.load %arg4[%c368, %c0_302] : memref<400x32xbf16, #tpu.memory_space<vmem>>, vector<16x32xbf16>
    %c3_303 = arith.constant 3 : index
    %c32_304 = arith.constant 32 : index
    %c0_305 = arith.constant 0 : index
    %385 = vector.load %arg10[%c3_303, %c32_304, %c0_305] : memref<5x192x16xbf16, #tpu.memory_space<vmem>>, vector<1x64x16xbf16>
    %386 = vector.shape_cast %385 : vector<1x64x16xbf16> to vector<64x16xbf16>
    %cst_306 = arith.constant dense<0.000000e+00> : vector<64x32xf32>
    %387 = tpu.matmul %386, %384, %cst_306 {dimension_numbers = #tpu.dot_dimension_numbers<[1], [0], [0], [1], [0, 0, 1, 1], [], []>} : vector<64x16xbf16>, vector<16x32xbf16>, vector<64x32xf32> -> vector<64x32xf32>
    %388 = arith.addf %379, %387 : vector<64x32xf32>
    %c3_307 = arith.constant 3 : index
    %c128_308 = arith.constant 128 : index
    %c0_309 = arith.constant 0 : index
    %389 = vector.load %arg10[%c3_307, %c128_308, %c0_309] : memref<5x192x16xbf16, #tpu.memory_space<vmem>>, vector<1x64x16xbf16>
    %390 = vector.shape_cast %389 : vector<1x64x16xbf16> to vector<64x16xbf16>
    %cst_310 = arith.constant dense<0.000000e+00> : vector<64x32xf32>
    %391 = tpu.matmul %390, %384, %cst_310 {dimension_numbers = #tpu.dot_dimension_numbers<[1], [0], [0], [1], [0, 0, 1, 1], [], []>} : vector<64x16xbf16>, vector<16x32xbf16>, vector<64x32xf32> -> vector<64x32xf32>
    %392 = arith.addf %383, %391 : vector<64x32xf32>
    %c384_311 = arith.constant 384 : index
    %c0_312 = arith.constant 0 : index
    %393 = vector.load %arg4[%c384_311, %c0_312] : memref<400x32xbf16, #tpu.memory_space<vmem>>, vector<16x32xbf16>
    %c4_313 = arith.constant 4 : index
    %c32_314 = arith.constant 32 : index
    %c0_315 = arith.constant 0 : index
    %394 = vector.load %arg10[%c4_313, %c32_314, %c0_315] : memref<5x192x16xbf16, #tpu.memory_space<vmem>>, vector<1x64x16xbf16>
    %395 = vector.shape_cast %394 : vector<1x64x16xbf16> to vector<64x16xbf16>
    %cst_316 = arith.constant dense<0.000000e+00> : vector<64x32xf32>
    %396 = tpu.matmul %395, %393, %cst_316 {dimension_numbers = #tpu.dot_dimension_numbers<[1], [0], [0], [1], [0, 0, 1, 1], [], []>} : vector<64x16xbf16>, vector<16x32xbf16>, vector<64x32xf32> -> vector<64x32xf32>
    %397 = arith.addf %388, %396 : vector<64x32xf32>
    %c4_317 = arith.constant 4 : index
    %c128_318 = arith.constant 128 : index
    %c0_319 = arith.constant 0 : index
    %398 = vector.load %arg10[%c4_317, %c128_318, %c0_319] : memref<5x192x16xbf16, #tpu.memory_space<vmem>>, vector<1x64x16xbf16>
    %399 = vector.shape_cast %398 : vector<1x64x16xbf16> to vector<64x16xbf16>
    %cst_320 = arith.constant dense<0.000000e+00> : vector<64x32xf32>
    %400 = tpu.matmul %399, %393, %cst_320 {dimension_numbers = #tpu.dot_dimension_numbers<[1], [0], [0], [1], [0, 0, 1, 1], [], []>} : vector<64x16xbf16>, vector<16x32xbf16>, vector<64x32xf32> -> vector<64x32xf32>
    %401 = arith.addf %392, %400 : vector<64x32xf32>
    %c0_321 = arith.constant 0 : index
    %c0_322 = arith.constant 0 : index
    %402 = vector.load %arg6[%c0_321, %c0_322] : memref<64x64xf32, #tpu.memory_space<vmem>>, vector<64x64xf32>
    %c0_323 = arith.constant 0 : index
    %c0_324 = arith.constant 0 : index
    %403 = vector.load %arg5[%c0_323, %c0_324] : memref<1x32xf32, #tpu.memory_space<vmem>>, vector<1x32xf32>
    %cst_325 = arith.constant dense<0.000000e+00> : vector<64x32xf32>
    %404 = tpu.matmul %402, %397, %cst_325 {dimension_numbers = #tpu.dot_dimension_numbers<[1], [0], [0], [1], [0, 0, 1, 1], [], []>} : vector<64x64xf32>, vector<64x32xf32>, vector<64x32xf32> -> vector<64x32xf32>
    %405 = vector.extract_strided_slice %404 {offsets = [0, 0], sizes = [16, 32], strides = [1, 1]} : vector<64x32xf32> to vector<16x32xf32>
    %406 = vector.extract_strided_slice %404 {offsets = [16, 0], sizes = [16, 32], strides = [1, 1]} : vector<64x32xf32> to vector<16x32xf32>
    %407 = arith.maximumf %405, %406 : vector<16x32xf32>
    %408 = vector.extract_strided_slice %404 {offsets = [32, 0], sizes = [16, 32], strides = [1, 1]} : vector<64x32xf32> to vector<16x32xf32>
    %409 = arith.maximumf %407, %408 : vector<16x32xf32>
    %410 = vector.extract_strided_slice %404 {offsets = [48, 0], sizes = [16, 32], strides = [1, 1]} : vector<64x32xf32> to vector<16x32xf32>
    %411 = arith.maximumf %409, %410 : vector<16x32xf32>
    %412 = vector.broadcast %403 : vector<1x32xf32> to vector<16x32xf32>
    %413 = arith.addf %411, %412 : vector<16x32xf32>
    %cst_326 = arith.constant 0.000000e+00 : f32
    %414 = vector.broadcast %cst_326 : f32 to vector<16x32xf32>
    %415 = arith.maximumf %413, %414 : vector<16x32xf32>
    %416 = vector.extract_strided_slice %415 {offsets = [0, 0], sizes = [1, 32], strides = [1, 1]} : vector<16x32xf32> to vector<1x32xf32>
    %c0_327 = arith.constant 0 : index
    %c0_328 = arith.constant 0 : index
    %417 = vector.load %arg11[%c0_327, %c0_328] : memref<2x512xf32, #tpu.memory_space<vmem>>, vector<1x32xf32>
    tpu.vector_store %arg11[%c0_327, %c0_328], %416 {strides = array<i32>} : memref<2x512xf32, #tpu.memory_space<vmem>>, vector<1x32xf32>,
    %418 = vector.extract_strided_slice %415 {offsets = [1, 0], sizes = [1, 32], strides = [1, 1]} : vector<16x32xf32> to vector<1x32xf32>
    %c0_329 = arith.constant 0 : index
    %c32_330 = arith.constant 32 : index
    %419 = vector.load %arg11[%c0_329, %c32_330] : memref<2x512xf32, #tpu.memory_space<vmem>>, vector<1x32xf32>
    tpu.vector_store %arg11[%c0_329, %c32_330], %418 {strides = array<i32>} : memref<2x512xf32, #tpu.memory_space<vmem>>, vector<1x32xf32>,
    %420 = vector.extract_strided_slice %415 {offsets = [2, 0], sizes = [1, 32], strides = [1, 1]} : vector<16x32xf32> to vector<1x32xf32>
    %c0_331 = arith.constant 0 : index
    %c64_332 = arith.constant 64 : index
    %421 = vector.load %arg11[%c0_331, %c64_332] : memref<2x512xf32, #tpu.memory_space<vmem>>, vector<1x32xf32>
    tpu.vector_store %arg11[%c0_331, %c64_332], %420 {strides = array<i32>} : memref<2x512xf32, #tpu.memory_space<vmem>>, vector<1x32xf32>,
    %422 = vector.extract_strided_slice %415 {offsets = [3, 0], sizes = [1, 32], strides = [1, 1]} : vector<16x32xf32> to vector<1x32xf32>
    %c0_333 = arith.constant 0 : index
    %c96_334 = arith.constant 96 : index
    %423 = vector.load %arg11[%c0_333, %c96_334] : memref<2x512xf32, #tpu.memory_space<vmem>>, vector<1x32xf32>
    tpu.vector_store %arg11[%c0_333, %c96_334], %422 {strides = array<i32>} : memref<2x512xf32, #tpu.memory_space<vmem>>, vector<1x32xf32>,
    %424 = vector.extract_strided_slice %415 {offsets = [4, 0], sizes = [1, 32], strides = [1, 1]} : vector<16x32xf32> to vector<1x32xf32>
    %c0_335 = arith.constant 0 : index
    %c128_336 = arith.constant 128 : index
    %425 = vector.load %arg11[%c0_335, %c128_336] : memref<2x512xf32, #tpu.memory_space<vmem>>, vector<1x32xf32>
    tpu.vector_store %arg11[%c0_335, %c128_336], %424 {strides = array<i32>} : memref<2x512xf32, #tpu.memory_space<vmem>>, vector<1x32xf32>,
    %426 = vector.extract_strided_slice %415 {offsets = [5, 0], sizes = [1, 32], strides = [1, 1]} : vector<16x32xf32> to vector<1x32xf32>
    %c0_337 = arith.constant 0 : index
    %c160_338 = arith.constant 160 : index
    %427 = vector.load %arg11[%c0_337, %c160_338] : memref<2x512xf32, #tpu.memory_space<vmem>>, vector<1x32xf32>
    tpu.vector_store %arg11[%c0_337, %c160_338], %426 {strides = array<i32>} : memref<2x512xf32, #tpu.memory_space<vmem>>, vector<1x32xf32>,
    %428 = vector.extract_strided_slice %415 {offsets = [6, 0], sizes = [1, 32], strides = [1, 1]} : vector<16x32xf32> to vector<1x32xf32>
    %c0_339 = arith.constant 0 : index
    %c192_340 = arith.constant 192 : index
    %429 = vector.load %arg11[%c0_339, %c192_340] : memref<2x512xf32, #tpu.memory_space<vmem>>, vector<1x32xf32>
    tpu.vector_store %arg11[%c0_339, %c192_340], %428 {strides = array<i32>} : memref<2x512xf32, #tpu.memory_space<vmem>>, vector<1x32xf32>,
    %430 = vector.extract_strided_slice %415 {offsets = [7, 0], sizes = [1, 32], strides = [1, 1]} : vector<16x32xf32> to vector<1x32xf32>
    %c0_341 = arith.constant 0 : index
    %c224_342 = arith.constant 224 : index
    %431 = vector.load %arg11[%c0_341, %c224_342] : memref<2x512xf32, #tpu.memory_space<vmem>>, vector<1x32xf32>
    tpu.vector_store %arg11[%c0_341, %c224_342], %430 {strides = array<i32>} : memref<2x512xf32, #tpu.memory_space<vmem>>, vector<1x32xf32>,
    %432 = vector.extract_strided_slice %415 {offsets = [8, 0], sizes = [1, 32], strides = [1, 1]} : vector<16x32xf32> to vector<1x32xf32>
    %c0_343 = arith.constant 0 : index
    %c256_344 = arith.constant 256 : index
    %433 = vector.load %arg11[%c0_343, %c256_344] : memref<2x512xf32, #tpu.memory_space<vmem>>, vector<1x32xf32>
    tpu.vector_store %arg11[%c0_343, %c256_344], %432 {strides = array<i32>} : memref<2x512xf32, #tpu.memory_space<vmem>>, vector<1x32xf32>,
    %434 = vector.extract_strided_slice %415 {offsets = [9, 0], sizes = [1, 32], strides = [1, 1]} : vector<16x32xf32> to vector<1x32xf32>
    %c0_345 = arith.constant 0 : index
    %c288_346 = arith.constant 288 : index
    %435 = vector.load %arg11[%c0_345, %c288_346] : memref<2x512xf32, #tpu.memory_space<vmem>>, vector<1x32xf32>
    tpu.vector_store %arg11[%c0_345, %c288_346], %434 {strides = array<i32>} : memref<2x512xf32, #tpu.memory_space<vmem>>, vector<1x32xf32>,
    %436 = vector.extract_strided_slice %415 {offsets = [10, 0], sizes = [1, 32], strides = [1, 1]} : vector<16x32xf32> to vector<1x32xf32>
    %c0_347 = arith.constant 0 : index
    %c320_348 = arith.constant 320 : index
    %437 = vector.load %arg11[%c0_347, %c320_348] : memref<2x512xf32, #tpu.memory_space<vmem>>, vector<1x32xf32>
    tpu.vector_store %arg11[%c0_347, %c320_348], %436 {strides = array<i32>} : memref<2x512xf32, #tpu.memory_space<vmem>>, vector<1x32xf32>,
    %438 = vector.extract_strided_slice %415 {offsets = [11, 0], sizes = [1, 32], strides = [1, 1]} : vector<16x32xf32> to vector<1x32xf32>
    %c0_349 = arith.constant 0 : index
    %c352_350 = arith.constant 352 : index
    %439 = vector.load %arg11[%c0_349, %c352_350] : memref<2x512xf32, #tpu.memory_space<vmem>>, vector<1x32xf32>
    tpu.vector_store %arg11[%c0_349, %c352_350], %438 {strides = array<i32>} : memref<2x512xf32, #tpu.memory_space<vmem>>, vector<1x32xf32>,
    %440 = vector.extract_strided_slice %415 {offsets = [12, 0], sizes = [1, 32], strides = [1, 1]} : vector<16x32xf32> to vector<1x32xf32>
    %c0_351 = arith.constant 0 : index
    %c384_352 = arith.constant 384 : index
    %441 = vector.load %arg11[%c0_351, %c384_352] : memref<2x512xf32, #tpu.memory_space<vmem>>, vector<1x32xf32>
    tpu.vector_store %arg11[%c0_351, %c384_352], %440 {strides = array<i32>} : memref<2x512xf32, #tpu.memory_space<vmem>>, vector<1x32xf32>,
    %442 = vector.extract_strided_slice %415 {offsets = [13, 0], sizes = [1, 32], strides = [1, 1]} : vector<16x32xf32> to vector<1x32xf32>
    %c0_353 = arith.constant 0 : index
    %c416 = arith.constant 416 : index
    %443 = vector.load %arg11[%c0_353, %c416] : memref<2x512xf32, #tpu.memory_space<vmem>>, vector<1x32xf32>
    tpu.vector_store %arg11[%c0_353, %c416], %442 {strides = array<i32>} : memref<2x512xf32, #tpu.memory_space<vmem>>, vector<1x32xf32>,
    %444 = vector.extract_strided_slice %415 {offsets = [14, 0], sizes = [1, 32], strides = [1, 1]} : vector<16x32xf32> to vector<1x32xf32>
    %c0_354 = arith.constant 0 : index
    %c448_355 = arith.constant 448 : index
    %445 = vector.load %arg11[%c0_354, %c448_355] : memref<2x512xf32, #tpu.memory_space<vmem>>, vector<1x32xf32>
    tpu.vector_store %arg11[%c0_354, %c448_355], %444 {strides = array<i32>} : memref<2x512xf32, #tpu.memory_space<vmem>>, vector<1x32xf32>,
    %446 = vector.extract_strided_slice %415 {offsets = [15, 0], sizes = [1, 32], strides = [1, 1]} : vector<16x32xf32> to vector<1x32xf32>
    %c0_356 = arith.constant 0 : index
    %c480 = arith.constant 480 : index
    %447 = vector.load %arg11[%c0_356, %c480] : memref<2x512xf32, #tpu.memory_space<vmem>>, vector<1x32xf32>
    tpu.vector_store %arg11[%c0_356, %c480], %446 {strides = array<i32>} : memref<2x512xf32, #tpu.memory_space<vmem>>, vector<1x32xf32>,
    %cst_357 = arith.constant dense<0.000000e+00> : vector<64x32xf32>
    %448 = tpu.matmul %402, %401, %cst_357 {dimension_numbers = #tpu.dot_dimension_numbers<[1], [0], [0], [1], [0, 0, 1, 1], [], []>} : vector<64x64xf32>, vector<64x32xf32>, vector<64x32xf32> -> vector<64x32xf32>
    %449 = vector.extract_strided_slice %448 {offsets = [0, 0], sizes = [16, 32], strides = [1, 1]} : vector<64x32xf32> to vector<16x32xf32>
    %450 = vector.extract_strided_slice %448 {offsets = [16, 0], sizes = [16, 32], strides = [1, 1]} : vector<64x32xf32> to vector<16x32xf32>
    %451 = arith.maximumf %449, %450 : vector<16x32xf32>
    %452 = vector.extract_strided_slice %448 {offsets = [32, 0], sizes = [16, 32], strides = [1, 1]} : vector<64x32xf32> to vector<16x32xf32>
    %453 = arith.maximumf %451, %452 : vector<16x32xf32>
    %454 = vector.extract_strided_slice %448 {offsets = [48, 0], sizes = [16, 32], strides = [1, 1]} : vector<64x32xf32> to vector<16x32xf32>
    %455 = arith.maximumf %453, %454 : vector<16x32xf32>
    %456 = vector.broadcast %403 : vector<1x32xf32> to vector<16x32xf32>
    %457 = arith.addf %455, %456 : vector<16x32xf32>
    %cst_358 = arith.constant 0.000000e+00 : f32
    %458 = vector.broadcast %cst_358 : f32 to vector<16x32xf32>
    %459 = arith.maximumf %457, %458 : vector<16x32xf32>
    %460 = vector.extract_strided_slice %459 {offsets = [0, 0], sizes = [1, 32], strides = [1, 1]} : vector<16x32xf32> to vector<1x32xf32>
    %c1_359 = arith.constant 1 : index
    %c0_360 = arith.constant 0 : index
    %461 = vector.load %arg11[%c1_359, %c0_360] : memref<2x512xf32, #tpu.memory_space<vmem>>, vector<1x32xf32>
    tpu.vector_store %arg11[%c1_359, %c0_360], %460 {strides = array<i32>} : memref<2x512xf32, #tpu.memory_space<vmem>>, vector<1x32xf32>,
    %462 = vector.extract_strided_slice %459 {offsets = [1, 0], sizes = [1, 32], strides = [1, 1]} : vector<16x32xf32> to vector<1x32xf32>
    %c1_361 = arith.constant 1 : index
    %c32_362 = arith.constant 32 : index
    %463 = vector.load %arg11[%c1_361, %c32_362] : memref<2x512xf32, #tpu.memory_space<vmem>>, vector<1x32xf32>
    tpu.vector_store %arg11[%c1_361, %c32_362], %462 {strides = array<i32>} : memref<2x512xf32, #tpu.memory_space<vmem>>, vector<1x32xf32>,
    %464 = vector.extract_strided_slice %459 {offsets = [2, 0], sizes = [1, 32], strides = [1, 1]} : vector<16x32xf32> to vector<1x32xf32>
    %c1_363 = arith.constant 1 : index
    %c64_364 = arith.constant 64 : index
    %465 = vector.load %arg11[%c1_363, %c64_364] : memref<2x512xf32, #tpu.memory_space<vmem>>, vector<1x32xf32>
    tpu.vector_store %arg11[%c1_363, %c64_364], %464 {strides = array<i32>} : memref<2x512xf32, #tpu.memory_space<vmem>>, vector<1x32xf32>,
    %466 = vector.extract_strided_slice %459 {offsets = [3, 0], sizes = [1, 32], strides = [1, 1]} : vector<16x32xf32> to vector<1x32xf32>
    %c1_365 = arith.constant 1 : index
    %c96_366 = arith.constant 96 : index
    %467 = vector.load %arg11[%c1_365, %c96_366] : memref<2x512xf32, #tpu.memory_space<vmem>>, vector<1x32xf32>
    tpu.vector_store %arg11[%c1_365, %c96_366], %466 {strides = array<i32>} : memref<2x512xf32, #tpu.memory_space<vmem>>, vector<1x32xf32>,
    %468 = vector.extract_strided_slice %459 {offsets = [4, 0], sizes = [1, 32], strides = [1, 1]} : vector<16x32xf32> to vector<1x32xf32>
    %c1_367 = arith.constant 1 : index
    %c128_368 = arith.constant 128 : index
    %469 = vector.load %arg11[%c1_367, %c128_368] : memref<2x512xf32, #tpu.memory_space<vmem>>, vector<1x32xf32>
    tpu.vector_store %arg11[%c1_367, %c128_368], %468 {strides = array<i32>} : memref<2x512xf32, #tpu.memory_space<vmem>>, vector<1x32xf32>,
    %470 = vector.extract_strided_slice %459 {offsets = [5, 0], sizes = [1, 32], strides = [1, 1]} : vector<16x32xf32> to vector<1x32xf32>
    %c1_369 = arith.constant 1 : index
    %c160_370 = arith.constant 160 : index
    %471 = vector.load %arg11[%c1_369, %c160_370] : memref<2x512xf32, #tpu.memory_space<vmem>>, vector<1x32xf32>
    tpu.vector_store %arg11[%c1_369, %c160_370], %470 {strides = array<i32>} : memref<2x512xf32, #tpu.memory_space<vmem>>, vector<1x32xf32>,
    %472 = vector.extract_strided_slice %459 {offsets = [6, 0], sizes = [1, 32], strides = [1, 1]} : vector<16x32xf32> to vector<1x32xf32>
    %c1_371 = arith.constant 1 : index
    %c192_372 = arith.constant 192 : index
    %473 = vector.load %arg11[%c1_371, %c192_372] : memref<2x512xf32, #tpu.memory_space<vmem>>, vector<1x32xf32>
    tpu.vector_store %arg11[%c1_371, %c192_372], %472 {strides = array<i32>} : memref<2x512xf32, #tpu.memory_space<vmem>>, vector<1x32xf32>,
    %474 = vector.extract_strided_slice %459 {offsets = [7, 0], sizes = [1, 32], strides = [1, 1]} : vector<16x32xf32> to vector<1x32xf32>
    %c1_373 = arith.constant 1 : index
    %c224_374 = arith.constant 224 : index
    %475 = vector.load %arg11[%c1_373, %c224_374] : memref<2x512xf32, #tpu.memory_space<vmem>>, vector<1x32xf32>
    tpu.vector_store %arg11[%c1_373, %c224_374], %474 {strides = array<i32>} : memref<2x512xf32, #tpu.memory_space<vmem>>, vector<1x32xf32>,
    %476 = vector.extract_strided_slice %459 {offsets = [8, 0], sizes = [1, 32], strides = [1, 1]} : vector<16x32xf32> to vector<1x32xf32>
    %c1_375 = arith.constant 1 : index
    %c256_376 = arith.constant 256 : index
    %477 = vector.load %arg11[%c1_375, %c256_376] : memref<2x512xf32, #tpu.memory_space<vmem>>, vector<1x32xf32>
    tpu.vector_store %arg11[%c1_375, %c256_376], %476 {strides = array<i32>} : memref<2x512xf32, #tpu.memory_space<vmem>>, vector<1x32xf32>,
    %478 = vector.extract_strided_slice %459 {offsets = [9, 0], sizes = [1, 32], strides = [1, 1]} : vector<16x32xf32> to vector<1x32xf32>
    %c1_377 = arith.constant 1 : index
    %c288_378 = arith.constant 288 : index
    %479 = vector.load %arg11[%c1_377, %c288_378] : memref<2x512xf32, #tpu.memory_space<vmem>>, vector<1x32xf32>
    tpu.vector_store %arg11[%c1_377, %c288_378], %478 {strides = array<i32>} : memref<2x512xf32, #tpu.memory_space<vmem>>, vector<1x32xf32>,
    %480 = vector.extract_strided_slice %459 {offsets = [10, 0], sizes = [1, 32], strides = [1, 1]} : vector<16x32xf32> to vector<1x32xf32>
    %c1_379 = arith.constant 1 : index
    %c320_380 = arith.constant 320 : index
    %481 = vector.load %arg11[%c1_379, %c320_380] : memref<2x512xf32, #tpu.memory_space<vmem>>, vector<1x32xf32>
    tpu.vector_store %arg11[%c1_379, %c320_380], %480 {strides = array<i32>} : memref<2x512xf32, #tpu.memory_space<vmem>>, vector<1x32xf32>,
    %482 = vector.extract_strided_slice %459 {offsets = [11, 0], sizes = [1, 32], strides = [1, 1]} : vector<16x32xf32> to vector<1x32xf32>
    %c1_381 = arith.constant 1 : index
    %c352_382 = arith.constant 352 : index
    %483 = vector.load %arg11[%c1_381, %c352_382] : memref<2x512xf32, #tpu.memory_space<vmem>>, vector<1x32xf32>
    tpu.vector_store %arg11[%c1_381, %c352_382], %482 {strides = array<i32>} : memref<2x512xf32, #tpu.memory_space<vmem>>, vector<1x32xf32>,
    %484 = vector.extract_strided_slice %459 {offsets = [12, 0], sizes = [1, 32], strides = [1, 1]} : vector<16x32xf32> to vector<1x32xf32>
    %c1_383 = arith.constant 1 : index
    %c384_384 = arith.constant 384 : index
    %485 = vector.load %arg11[%c1_383, %c384_384] : memref<2x512xf32, #tpu.memory_space<vmem>>, vector<1x32xf32>
    tpu.vector_store %arg11[%c1_383, %c384_384], %484 {strides = array<i32>} : memref<2x512xf32, #tpu.memory_space<vmem>>, vector<1x32xf32>,
    %486 = vector.extract_strided_slice %459 {offsets = [13, 0], sizes = [1, 32], strides = [1, 1]} : vector<16x32xf32> to vector<1x32xf32>
    %c1_385 = arith.constant 1 : index
    %c416_386 = arith.constant 416 : index
    %487 = vector.load %arg11[%c1_385, %c416_386] : memref<2x512xf32, #tpu.memory_space<vmem>>, vector<1x32xf32>
    tpu.vector_store %arg11[%c1_385, %c416_386], %486 {strides = array<i32>} : memref<2x512xf32, #tpu.memory_space<vmem>>, vector<1x32xf32>,
    %488 = vector.extract_strided_slice %459 {offsets = [14, 0], sizes = [1, 32], strides = [1, 1]} : vector<16x32xf32> to vector<1x32xf32>
    %c1_387 = arith.constant 1 : index
    %c448_388 = arith.constant 448 : index
    %489 = vector.load %arg11[%c1_387, %c448_388] : memref<2x512xf32, #tpu.memory_space<vmem>>, vector<1x32xf32>
    tpu.vector_store %arg11[%c1_387, %c448_388], %488 {strides = array<i32>} : memref<2x512xf32, #tpu.memory_space<vmem>>, vector<1x32xf32>,
    %490 = vector.extract_strided_slice %459 {offsets = [15, 0], sizes = [1, 32], strides = [1, 1]} : vector<16x32xf32> to vector<1x32xf32>
    %c1_389 = arith.constant 1 : index
    %c480_390 = arith.constant 480 : index
    %491 = vector.load %arg11[%c1_389, %c480_390] : memref<2x512xf32, #tpu.memory_space<vmem>>, vector<1x32xf32>
    tpu.vector_store %arg11[%c1_389, %c480_390], %490 {strides = array<i32>} : memref<2x512xf32, #tpu.memory_space<vmem>>, vector<1x32xf32>,
    %c0_391 = arith.constant 0 : index
    %c0_392 = arith.constant 0 : index
    %492 = vector.load %arg11[%c0_391, %c0_392] : memref<2x512xf32, #tpu.memory_space<vmem>>, vector<2x512xf32>
    %493 = arith.truncf %492 : vector<2x512xf32> to vector<2x512xbf16>
    %c0_393 = arith.constant 0 : index
    %c0_394 = arith.constant 0 : index
    %494 = vector.load %arg7[%c0_393, %c0_394] : memref<512x5xbf16, #tpu.memory_space<vmem>>, vector<512x5xbf16>
    %cst_395 = arith.constant dense<0.000000e+00> : vector<2x5xf32>
    %495 = tpu.matmul %493, %494, %cst_395 {dimension_numbers = #tpu.dot_dimension_numbers<[1], [0], [0], [1], [0, 0, 1, 1], [], []>} : vector<2x512xbf16>, vector<512x5xbf16>, vector<2x5xf32> -> vector<2x5xf32>
    %c0_396 = arith.constant 0 : index
    %c0_397 = arith.constant 0 : index
    %496 = vector.load %arg8[%c0_396, %c0_397] : memref<1x5xf32, #tpu.memory_space<vmem>>, vector<1x5xf32>
    %497 = vector.broadcast %496 : vector<1x5xf32> to vector<2x5xf32>
    %498 = arith.addf %495, %497 : vector<2x5xf32>
    %c0_398 = arith.constant 0 : index
    %c0_399 = arith.constant 0 : index
    %499 = vector.load %arg9[%c0_398, %c0_399] : memref<2x5xf32, #tpu.memory_space<vmem>>, vector<2x5xf32>
    tpu.vector_store %arg9[%c0_398, %c0_399], %498 {strides = array<i32>} : memref<2x5xf32, #tpu.memory_space<vmem>>, vector<2x5xf32>,
    return
  }
  func.func @transform_0(%arg0: i32) -> (i32, i32) {
    %c0_i32 = arith.constant 0 : i32
    %c0_i32_0 = arith.constant 0 : i32
    %c0_i32_1 = arith.constant 0 : i32
    return %c0_i32, %c0_i32_0 : i32, i32
  }
  func.func @transform_1(%arg0: i32) -> (i32, i32) {
    %c0_i32 = arith.constant 0 : i32
    %c0_i32_0 = arith.constant 0 : i32
    %c0_i32_1 = arith.constant 0 : i32
    return %c0_i32, %c0_i32_0 : i32, i32
  }
  func.func @transform_2(%arg0: i32) -> (i32, i32) {
    %c0_i32 = arith.constant 0 : i32
    %c0_i32_0 = arith.constant 0 : i32
    %c0_i32_1 = arith.constant 0 : i32
    return %c0_i32, %c0_i32_0 : i32, i32
  }
  func.func @transform_3(%arg0: i32) -> (i32, i32) {
    %c0_i32 = arith.constant 0 : i32
    %c0_i32_0 = arith.constant 0 : i32
    %c0_i32_1 = arith.constant 0 : i32
    return %c0_i32, %c0_i32_0 : i32, i32
  }
  func.func @transform_4(%arg0: i32) -> (i32, i32) {
    %c0_i32 = arith.constant 0 : i32
    %c0_i32_0 = arith.constant 0 : i32
    %c0_i32_1 = arith.constant 0 : i32
    return %c0_i32, %c0_i32_0 : i32, i32
  }
  func.func @transform_5(%arg0: i32) -> (i32, i32) {
    %c0_i32 = arith.constant 0 : i32
    %c0_i32_0 = arith.constant 0 : i32
    %c0_i32_1 = arith.constant 0 : i32
    return %c0_i32, %c0_i32_0 : i32, i32
  }
  func.func @transform_6(%arg0: i32) -> (i32, i32) {
    %c0_i32 = arith.constant 0 : i32
    %c0_i32_0 = arith.constant 0 : i32
    %c0_i32_1 = arith.constant 0 : i32
    return %c0_i32, %c0_i32_0 : i32, i32
  }
  func.func @transform_7(%arg0: i32) -> (i32, i32) {
    %c0_i32 = arith.constant 0 : i32
    %c0_i32_0 = arith.constant 0 : i32
    %c0_i32_1 = arith.constant 0 : i32
    return %c0_i32, %c0_i32_0 : i32, i32
  }
  func.func @transform_8(%arg0: i32) -> (i32, i32) {
    %c0_i32 = arith.constant 0 : i32
    %c0_i32_0 = arith.constant 0 : i32
    %c0_i32_1 = arith.constant 0 : i32
    return %c0_i32, %c0_i32_0 : i32, i32
  }
}

</mosaic_0001>

<bundles_post_ra>
// kernel: cnn_forward.1
= control target key start
LH: loop header
LB: loop body
LE: loop exit
PB: predicated region body
PF: predicated region fallthrough
CT: control target
= control target key end

     0   :  { %vm190_vm0 = vcmask 1044480   ;;  %vm191_vm1 = vcmask 1045504   ;;  %v9267_v3 = vmov 65535   ;;  %vm177_vm2 = vcmask 613376   ;;  %s11494_s0 = inlined_call_operand.vmem [shape: bf16[512,75], index: 0, kind: input, shape index: {}]   ;;  %s11495_s1 = inlined_call_operand.vmem [shape: bf16[75,16], index: 1, kind: input, shape index: {}]   ;;  %s11496_s2 = inlined_call_operand.vmem [shape: f32[1,16], index: 2, kind: input, shape index: {}]   ;;  %s11497_s3 = inlined_call_operand.vmem [shape: bf16[400,32], index: 3, kind: input, shape index: {}]   ;;  %s11498_s4 = inlined_call_operand.vmem [shape: f32[1,32], index: 4, kind: input, shape index: {}]   ;;  %s11499_s5 = inlined_call_operand.vmem [shape: f32[64,64], index: 5, kind: input, shape index: {}]   ;;  %s11500_s6 = inlined_call_operand.vmem [shape: bf16[512,5], index: 6, kind: input, shape index: {}]   ;;  %s11501_s7 = inlined_call_operand.vmem [shape: f32[1,5], index: 7, kind: input, shape index: {}]   ;;  %s11502_s8 = inlined_call_operand.hbm [shape: f32[2,5], index: 8, kind: output, shape index: {}]  }
   0x1   :  { %v9322_v0 = vld [vmem:[%s11495_s1] sm:$0xff]   ;;  %v9327_v1 = vld [vmem:[%s11495_s1 + $0x8] sm:$0xff]   ;;  %v9338_v2 = vld [vmem:[%s11495_s1 + $0x10] sm:$0xff]   ;;  %v192_v4 = vsel %vm190_vm0, 4294967295, %v9267_v3 }
   0x2   :  { %8021 = vmatprep.subr.bf16.mxu0 %v9322_v0  ;;  %8039 = vmatprep.subr.bf16.mxu1 %v9322_v0  ;;  %v9149_v5 = vld [vmem:[%s11494_s0] sm:$0xff]   ;;  %v9351_v7 = vld [vmem:[%s11495_s1 + $0x18] sm:$0xff]   ;;  %v193_v9 = vsel %vm191_vm1, %v192_v4, 0  ;;  %v9151_v11 = vld [vmem:[%s11494_s0 + $0x8] sm:$0xff]  }
   0x3   :  { %8022 = vmatpush3.bf16.msra.mxu0 %v9322_v0  ;;  %8040 = vmatpush3.bf16.msra.mxu1 %v9322_v0  ;;  %v9150_v6 = vld [vmem:[%s11494_s0 + $0x20] sm:$0xff]   ;;  %v9152_v12 = vld [vmem:[%s11494_s0 + $0x28] sm:$0xff]   ;;  %v9153_v13 = vld [vmem:[%s11494_s0 + $0x10] sm:$0xff]  }
   0x4   :  { %8023 = vmatprep.subr.bf16.mxu0 %v9327_v1  ;;  %8041 = vmatprep.subr.bf16.mxu1 %v9327_v1  ;;  %v9148_v8 = vld [vmem:[%s11495_s1 + $0x20] sm:$0x3f]   ;;  %v9154_v14 = vld [vmem:[%s11494_s0 + $0x30] sm:$0xff]   ;;  %v9155_v15 = vld [vmem:[%s11494_s0 + $0x18] sm:$0xff]  }
   0x5   :  { %8031 = vmatprep.mubr.msk.bf16.mxu0 %vm177_vm2, %v9149_v5  ;;  %8049 = vmatprep.mubr.msk.bf16.mxu1 %vm177_vm2, %v9150_v6  ;;  %v9364_v10 = vand.u32 %v9148_v8, %v193_v9  ;;  %v9156_v16 = vld [vmem:[%s11494_s0 + $0x38] sm:$0xff]   ;;  %v9157_v17 = vld [vmem:[%s11494_s0 + $0x40] sm:$0xff]   ;;  %v9159_v19 = vld [vmem:[%s11494_s0 + $0x48] sm:$0xff]  }
   0x6   :  { %v9158_v18 = vld [vmem:[%s11494_s0 + $0x60] sm:$0xff]   ;;  %v9160_v20 = vld [vmem:[%s11494_s0 + $0x68] sm:$0xff]   ;;  %v9161_v21 = vld [vmem:[%s11494_s0 + $0x50] sm:$0xff]  }
   0x7   :  { %8024 = vmatpush3.bf16.msra.mxu0 %v9327_v1  ;;  %8042 = vmatpush3.bf16.msra.mxu1 %v9327_v1  ;;  %v9163_v22 = vld [vmem:[%s11494_s0 + $0x70] sm:$0xff]   ;;  %v9162_v23 = vld [vmem:[%s11494_s0 + $0x58] sm:$0xff]   ;;  %v9165_v25 = vld [vmem:[%s11494_s0 + $0x80] sm:$0xff]  }
   0x8   :  { %8025 = vmatprep.subr.bf16.mxu0 %v9338_v2  ;;  %8043 = vmatprep.subr.bf16.mxu1 %v9338_v2  ;;  %v9164_v24 = vld [vmem:[%s11494_s0 + $0x78] sm:$0xff]   ;;  %v9166_v26 = vld [vmem:[%s11494_s0 + $0xa0] sm:$0xff]   ;;  %v9167_v27 = vld [vmem:[%s11494_s0 + $0x88] sm:$0xff]  }
   0x9   :  { %v9168_v28 = vld [vmem:[%s11494_s0 + $0xa8] sm:$0xff]   ;;  %v9169_v29 = vld [vmem:[%s11494_s0 + $0x90] sm:$0xff]   ;;  %v9171_v31 = vld [vmem:[%s11494_s0 + $0x98] sm:$0xff]  }
   0xa   :  { %v9170_v30 = vld [vmem:[%s11494_s0 + $0xb0] sm:$0xff]   ;;  %v9172_v32 = vld [vmem:[%s11494_s0 + $0xb8] sm:$0xff]   ;;  %v9173_v33 = vld [vmem:[%s11494_s0 + $0xc0] sm:$0xff]  }
   0xb   :  { %8026 = vmatpush3.bf16.msra.mxu0 %v9338_v2  ;;  %8044 = vmatpush3.bf16.msra.mxu1 %v9338_v2  ;;  %v9174_v34 = vld [vmem:[%s11494_s0 + $0xe0] sm:$0xff]  }
   0xc   :  { %8027 = vmatprep.subr.bf16.mxu0 %v9351_v7  ;;  %8045 = vmatprep.subr.bf16.mxu1 %v9351_v7 }
   0xf   :  { %8028 = vmatpush3.bf16.msra.mxu0 %v9351_v7  ;;  %8046 = vmatpush3.bf16.msra.mxu1 %v9351_v7 }
  0x10   :  { %8029 = vmatprep.subr.bf16.mxu0 %v9364_v10  ;;  %8047 = vmatprep.subr.bf16.mxu1 %v9364_v10 }
  0x13   :  { %8030 = vmatpush3.bf16.msra.mxu0 %v9364_v10  ;;  %8048 = vmatpush3.bf16.msra.mxu1 %v9364_v10 }
  0x14   :  { %8057 = vmatprep.subr.bf16.mxu0 %v9322_v0  ;;  %8075 = vmatprep.subr.bf16.mxu1 %v9322_v0 }
  0x16   :  { %8032 = vmatmul.mubr.msk.bf16.vlgmr.msra.gmra.mrb[0].mxu0 %vm177_vm2, %v9151_v11  ;;  %8050 = vmatmul.mubr.msk.bf16.vlgmr.msra.gmra.mrb[0].mxu1 %vm177_vm2, %v9152_v12 }
  0x17   :  { %8058 = vmatpush3.bf16.msra.mxu0 %v9322_v0  ;;  %8076 = vmatpush3.bf16.msra.mxu1 %v9322_v0 }
  0x18   :  { %8059 = vmatprep.subr.bf16.mxu0 %v9327_v1  ;;  %8077 = vmatprep.subr.bf16.mxu1 %v9327_v1 }
  0x19   :  { %8035 = vmatprep.mubr.msk.bf16.mxu0 %vm177_vm2, %v9153_v13  ;;  %8053 = vmatprep.mubr.msk.bf16.mxu1 %vm177_vm2, %v9154_v14 }
  0x1b   :  { %8060 = vmatpush3.bf16.msra.mxu0 %v9327_v1  ;;  %8078 = vmatpush3.bf16.msra.mxu1 %v9327_v1 }
  0x1c   :  { %8061 = vmatprep.subr.bf16.mxu0 %v9338_v2  ;;  %8079 = vmatprep.subr.bf16.mxu1 %v9338_v2 }
  0x1e   :  { %8036 = vmatmul.mubr.msk.bf16.gmra.mrb[4].mxu0 %vm177_vm2, %v9155_v15  ;;  %8054 = vmatmul.mubr.msk.bf16.gmra.mrb[4].mxu1 %vm177_vm2, %v9156_v16 }
  0x1f   :  { %8062 = vmatpush3.bf16.msra.mxu0 %v9338_v2  ;;  %8080 = vmatpush3.bf16.msra.mxu1 %v9338_v2 }
  0x20   :  { %8063 = vmatprep.subr.bf16.mxu0 %v9351_v7  ;;  %8081 = vmatprep.subr.bf16.mxu1 %v9351_v7 }
  0x21   :  { %8067 = vmatprep.mubr.msk.bf16.mxu0 %vm177_vm2, %v9157_v17  ;;  %8085 = vmatprep.mubr.msk.bf16.mxu1 %vm177_vm2, %v9158_v18 }
  0x23   :  { %8064 = vmatpush3.bf16.msra.mxu0 %v9351_v7  ;;  %8082 = vmatpush3.bf16.msra.mxu1 %v9351_v7 }
  0x24   :  { %8065 = vmatprep.subr.bf16.mxu0 %v9364_v10  ;;  %8083 = vmatprep.subr.bf16.mxu1 %v9364_v10 }
  0x27   :  { %8066 = vmatpush3.bf16.msra.mxu0 %v9364_v10  ;;  %8084 = vmatpush3.bf16.msra.mxu1 %v9364_v10 }
  0x28   :  { %8093 = vmatprep.subr.bf16.mxu0 %v9322_v0  ;;  %8111 = vmatprep.subr.bf16.mxu1 %v9322_v0 }
  0x2a   :  { %8068 = vmatmul.mubr.msk.bf16.vlgmr.msra.gmra.mrb[8].mxu0 %vm177_vm2, %v9159_v19  ;;  %8086 = vmatmul.mubr.msk.bf16.vlgmr.msra.gmra.mrb[8].mxu1 %vm177_vm2, %v9160_v20 }
  0x2b   :  { %8094 = vmatpush3.bf16.msra.mxu0 %v9322_v0  ;;  %8112 = vmatpush3.bf16.msra.mxu1 %v9322_v0 }
  0x2c   :  { %8095 = vmatprep.subr.bf16.mxu0 %v9327_v1  ;;  %8113 = vmatprep.subr.bf16.mxu1 %v9327_v1 }
  0x2d   :  { %8071 = vmatprep.mubr.msk.bf16.mxu0 %vm177_vm2, %v9161_v21  ;;  %8089 = vmatprep.mubr.msk.bf16.mxu1 %vm177_vm2, %v9163_v22 }
  0x2f   :  { %8096 = vmatpush3.bf16.msra.mxu0 %v9327_v1  ;;  %8114 = vmatpush3.bf16.msra.mxu1 %v9327_v1 }
  0x30   :  { %8097 = vmatprep.subr.bf16.mxu0 %v9338_v2  ;;  %8115 = vmatprep.subr.bf16.mxu1 %v9338_v2 }
  0x32   :  { %8072 = vmatmul.mubr.msk.bf16.gmra.mrb[12].mxu0 %vm177_vm2, %v9162_v23  ;;  %8090 = vmatmul.mubr.msk.bf16.gmra.mrb[12].mxu1 %vm177_vm2, %v9164_v24 }
  0x33   :  { %8098 = vmatpush3.bf16.msra.mxu0 %v9338_v2  ;;  %8116 = vmatpush3.bf16.msra.mxu1 %v9338_v2 }
  0x34   :  { %8099 = vmatprep.subr.bf16.mxu0 %v9351_v7  ;;  %8117 = vmatprep.subr.bf16.mxu1 %v9351_v7 }
  0x35   :  { %8103 = vmatprep.mubr.msk.bf16.mxu0 %vm177_vm2, %v9165_v25  ;;  %8121 = vmatprep.mubr.msk.bf16.mxu1 %vm177_vm2, %v9166_v26 }
  0x37   :  { %8100 = vmatpush3.bf16.msra.mxu0 %v9351_v7  ;;  %8118 = vmatpush3.bf16.msra.mxu1 %v9351_v7 }
  0x38   :  { %8101 = vmatprep.subr.bf16.mxu0 %v9364_v10  ;;  %8119 = vmatprep.subr.bf16.mxu1 %v9364_v10 }
  0x3b   :  { %8102 = vmatpush3.bf16.msra.mxu0 %v9364_v10  ;;  %8120 = vmatpush3.bf16.msra.mxu1 %v9364_v10 }
  0x3c   :  { %8129 = vmatprep.subr.bf16.mxu0 %v9322_v0  ;;  %8147 = vmatprep.subr.bf16.mxu1 %v9322_v0 }
  0x3e   :  { %8104 = vmatmul.mubr.msk.bf16.vlgmr.msra.gmra.mrb[16].mxu0 %vm177_vm2, %v9167_v27  ;;  %8122 = vmatmul.mubr.msk.bf16.vlgmr.msra.gmra.mrb[16].mxu1 %vm177_vm2, %v9168_v28 }
  0x3f   :  { %8130 = vmatpush3.bf16.msra.mxu0 %v9322_v0  ;;  %8148 = vmatpush3.bf16.msra.mxu1 %v9322_v0 }
  0x40   :  { %8131 = vmatprep.subr.bf16.mxu0 %v9327_v1  ;;  %8149 = vmatprep.subr.bf16.mxu1 %v9327_v1 }
  0x41   :  { %8107 = vmatprep.mubr.msk.bf16.mxu0 %vm177_vm2, %v9169_v29  ;;  %8125 = vmatprep.mubr.msk.bf16.mxu1 %vm177_vm2, %v9170_v30 }
  0x43   :  { %8132 = vmatpush3.bf16.msra.mxu0 %v9327_v1  ;;  %8150 = vmatpush3.bf16.msra.mxu1 %v9327_v1 }
  0x44   :  { %8133 = vmatprep.subr.bf16.mxu0 %v9338_v2  ;;  %8151 = vmatprep.subr.bf16.mxu1 %v9338_v2 }
  0x46   :  { %8108 = vmatmul.mubr.msk.bf16.gmra.mrb[20].mxu0 %vm177_vm2, %v9171_v31  ;;  %8126 = vmatmul.mubr.msk.bf16.gmra.mrb[20].mxu1 %vm177_vm2, %v9172_v32 }
  0x47   :  { %8134 = vmatpush3.bf16.msra.mxu0 %v9338_v2  ;;  %8152 = vmatpush3.bf16.msra.mxu1 %v9338_v2 }
  0x48   :  { %8135 = vmatprep.subr.bf16.mxu0 %v9351_v7  ;;  %8153 = vmatprep.subr.bf16.mxu1 %v9351_v7 }
  0x49   :  { %8139 = vmatprep.mubr.msk.bf16.mxu0 %vm177_vm2, %v9173_v33  ;;  %8157 = vmatprep.mubr.msk.bf16.mxu1 %vm177_vm2, %v9174_v34 }
  0x4b   :  { %8136 = vmatpush3.bf16.msra.mxu0 %v9351_v7  ;;  %8154 = vmatpush3.bf16.msra.mxu1 %v9351_v7 }
  0x4c   :  { %13 = vsyncpa [#allocation5], 0  ;;  %8137 = vmatprep.subr.bf16.mxu0 %v9364_v10  ;;  %8155 = vmatprep.subr.bf16.mxu1 %v9364_v10  ;;  %v9175_v35 = vld [vmem:[%s11494_s0 + $0xc8] sm:$0xff]   ;;  %v9177_v37 = vld [vmem:[%s11494_s0 + $0xd0] sm:$0xff]   ;;  %vm42_vm3 = vcmask 130048   ;;  %v9268_v41 = vmov 0   ;;  %v103_v51 = vlaneseq }
  0x4d   :  { %v9176_v36 = vld [vmem:[%s11494_s0 + $0xe8] sm:$0xff]   ;;  %v9178_v38 = vld [vmem:[%s11494_s0 + $0xf0] sm:$0xff]   ;;  %v9179_v39 = vld [vmem:[%s11494_s0 + $0xd8] sm:$0xff]   ;;  %69 = vst.msk [vmem:[#allocation2 + $0xd0] sm:$0xff] %vm42_vm3, %v9268_v41  ;;  %s9271_s27 = smov 32   ;;  %s9272_s28 = smov 96  }
  0x4e   :  { %v9180_v40 = vld [vmem:[%s11494_s0 + $0xf8] sm:$0xff]   ;;  %43 = vst.msk [vmem:[#allocation2] sm:$0xff] %vm42_vm3, %v9268_v41  ;;  %44 = vst.msk [vmem:[#allocation2 + $0x8] sm:$0xff] %vm42_vm3, %v9268_v41  ;;  %v9181_v42 = vld [vmem:[%s11497_s3 + $0x8] sm:$0xff]   ;;  %v9633_v59 = vshrl.u32 %v103_v51, 7  ;;  %s9273_s16 = smov [#allocation4]  }
  0x4f   :  { %8138 = vmatpush3.bf16.msra.mxu0 %v9364_v10  ;;  %8156 = vmatpush3.bf16.msra.mxu1 %v9364_v10  ;;  %45 = vst.msk [vmem:[#allocation2 + $0x10] sm:$0xff] %vm42_vm3, %v9268_v41  ;;  %46 = vst.msk [vmem:[#allocation2 + $0x18] sm:$0xff] %vm42_vm3, %v9268_v41  ;;  %v9619_v44 = vld [vmem:[%s11497_s3] sm:$0xff]   ;;  %s7254_s17 = sshll.u32 %s9273_s16, 4  ;;  %s7255_s17 = int_to_ptr.vmem [resolvable:$true] %s7254_s17 }
  0x50   :  { %47 = vst.msk [vmem:[#allocation2 + $0x20] sm:$0xff] %vm42_vm3, %v9268_v41  ;;  %48 = vst.msk [vmem:[#allocation2 + $0x28] sm:$0xff] %vm42_vm3, %v9268_v41  ;;  %8165 = vmatprep.subr.bf16.mxu0 %v9181_v42  ;;  %8185 = vmatprep.subr.bf16.mxu1 %v9181_v42  ;;  %v106_v1 = vadd.s32 16, %v9633_v59  ;;  %v107_v2 = vadd.s32 24, %v9633_v59  ;;  %v105_v9 = vadd.s32 8, %v9633_v59  ;;  %v108_v11 = vadd.s32 32, %v9633_v59  ;;  %p9248_p1 = scmp.lt.s32.totalorder %s7255_s17, %s7255_s17 }
  0x51   :  { %49 = vst.msk [vmem:[#allocation2 + $0x30] sm:$0xff] %vm42_vm3, %v9268_v41  ;;  %50 = vst.msk [vmem:[#allocation2 + $0x38] sm:$0xff] %vm42_vm3, %v9268_v41  ;;  %v111_v14 = vadd.s32 56, %v9633_v59  ;;  %v112_v15 = vand.u32 7, %v9633_v59  ;;  %v110_v18 = vadd.s32 48, %v9633_v59  ;;  %v109_v26 = vadd.s32 40, %v9633_v59 }
  0x52   :  { %8140 = vmatmul.mubr.msk.bf16.vlgmr.msra.gmra.mrb[24].mxu0 %vm177_vm2, %v9175_v35  ;;  %8158 = vmatmul.mubr.msk.bf16.vlgmr.msra.gmra.mrb[24].mxu1 %vm177_vm2, %v9176_v36  ;;  %51 = vst.msk [vmem:[#allocation2 + $0x40] sm:$0xff] %vm42_vm3, %v9268_v41  ;;  %52 = vst.msk [vmem:[#allocation2 + $0x48] sm:$0xff] %vm42_vm3, %v9268_v41  ;;  %v114_v12 = vand.u32 7, %v106_v1  ;;  %v115_v13 = vand.u32 7, %v107_v2  ;;  %v113_v16 = vand.u32 7, %v105_v9  ;;  %v9665_v17 = vand.u32 7, %v108_v11 }
  0x53   :  { %8143 = vmatprep.mubr.msk.bf16.mxu0 %vm177_vm2, %v9177_v37  ;;  %8161 = vmatprep.mubr.msk.bf16.mxu1 %vm177_vm2, %v9178_v38  ;;  %53 = vst.msk [vmem:[#allocation2 + $0x50] sm:$0xff] %vm42_vm3, %v9268_v41  ;;  %54 = vst.msk [vmem:[#allocation2 + $0x58] sm:$0xff] %vm42_vm3, %v9268_v41  ;;  %v119_v25 = vand.u32 7, %v111_v14  ;;  %v9685_v29 = vadd.s32 1, %v112_v15  ;;  %v9692_v32 = vld [vmem:[%s11496_s2] ss:$0 sm:$0xff] }
  0x54   :  { %55 = vst.msk [vmem:[#allocation2 + $0x60] sm:$0xff] %vm42_vm3, %v9268_v41  ;;  %56 = vst.msk [vmem:[#allocation2 + $0x68] sm:$0xff] %vm42_vm3, %v9268_v41  ;;  %8166 = vmatpush3.bf16.msra.mxu0 %v9181_v42  ;;  %8186 = vmatpush3.bf16.msra.mxu1 %v9181_v42  ;;  %v9668_v19 = vadd.s32 4294967294, %v115_v13  ;;  %v9670_v20 = vadd.s32 4294967295, %v115_v13  ;;  %v9672_v21 = vadd.s32 1, %v114_v12  ;;  %v9674_v22 = vadd.s32 2, %v114_v12 }
  0x55   :  { %57 = vst.msk [vmem:[#allocation2 + $0x70] sm:$0xff] %vm42_vm3, %v9268_v41  ;;  %58 = vst.msk [vmem:[#allocation2 + $0x78] sm:$0xff] %vm42_vm3, %v9268_v41  ;;  %8175 = vmatprep.subr.bf16.mxu0 %v9619_v44  ;;  %8195 = vmatprep.subr.bf16.mxu1 %v9619_v44  ;;  %v9676_v23 = vadd.s32 4294967294, %v114_v12  ;;  %v9678_v24 = vadd.s32 4294967295, %v114_v12  ;;  %v9681_v27 = vadd.s32 4294967294, %v113_v16  ;;  %v9683_v28 = vadd.s32 4294967295, %v113_v16 }
  0x56   :  { %59 = vst.msk [vmem:[#allocation2 + $0x80] sm:$0xff] %vm42_vm3, %v9268_v41  ;;  %60 = vst.msk [vmem:[#allocation2 + $0x88] sm:$0xff] %vm42_vm3, %v9268_v41  ;;  %v9687_v30 = vadd.s32 1, %v113_v16  ;;  %v9694_v34 = vadd.s32 2, %v112_v15  ;;  %v9696_v35 = vadd.s32 2, %v113_v16  ;;  %v9699_v36 = vadd.s32 4294967294, %v9665_v17 }
  0x57   :  { %61 = vst.msk [vmem:[#allocation2 + $0x90] sm:$0xff] %vm42_vm3, %v9268_v41  ;;  %62 = vst.msk [vmem:[#allocation2 + $0x98] sm:$0xff] %vm42_vm3, %v9268_v41  ;;  %v118_v37 = vand.u32 7, %v110_v18  ;;  %v9704_v42 = vadd.s32 1, %v115_v13  ;;  %v117_v51 = vand.u32 7, %v109_v26  ;;  %v9712_v2 = vadd.s32 4294967295, %v112_v15 }
  0x58   :  { %63 = vst.msk [vmem:[#allocation2 + $0xa0] sm:$0xff] %vm42_vm3, %v9268_v41  ;;  %64 = vst.msk [vmem:[#allocation2 + $0xa8] sm:$0xff] %vm42_vm3, %v9268_v41  ;;  %v9714_v9 = vadd.s32 4294967295, %v119_v25  ;;  %vm631_vm4 = vcmp.lt.s32.totalorder %v9633_v59, 2  ;;  %vm696_vm5 = vcmp.lt.s32.totalorder %v9633_v59, 1  ;;  %vm803_vm6 = vcmp.lt.s32.totalorder %v9633_v59, 7 }
  0x59   :  { %65 = vst.msk [vmem:[#allocation2 + $0xb0] sm:$0xff] %vm42_vm3, %v9268_v41  ;;  %66 = vst.msk [vmem:[#allocation2 + $0xb8] sm:$0xff] %vm42_vm3, %v9268_v41  ;;  %v9722_v12 = vadd.s32 1, %v118_v37  ;;  %vm11517_vm7 = vcmp.ge.s32.totalorder %v9668_v19, 0  ;;  %vm11516_vm8 = vcmp.ge.s32.totalorder %v9670_v20, 0  ;;  %vm11511_vm9 = vcmp.lt.s32.totalorder %v9672_v21, 8 }
  0x5a   :  { %8144 = vmatmul.mubr.msk.bf16.gmra.mrb[28].mxu0 %vm177_vm2, %v9179_v39  ;;  %8162 = vmatmul.mubr.msk.bf16.gmra.mrb[28].mxu1 %vm177_vm2, %v9180_v40  ;;  %67 = vst.msk [vmem:[#allocation2 + $0xc0] sm:$0xff] %vm42_vm3, %v9268_v41  ;;  %68 = vst.msk [vmem:[#allocation2 + $0xc8] sm:$0xff] %vm42_vm3, %v9268_v41  ;;  %vm869_vm10 = vcmp.lt.s32.totalorder %v9633_v59, 6  ;;  %v9733_v16 = vadd.s32 2, %v119_v25  ;;  %vm11510_vm11 = vcmp.lt.s32.totalorder %v9674_v22, 8  ;;  %v9739_v18 = vadd.s32 4294967294, %v118_v37 }
  0x5b   :  { %70 = vst.msk [vmem:[#allocation2 + $0xd8] sm:$0xff] %vm42_vm3, %v9268_v41  ;;  %71 = vst.msk [vmem:[#allocation2 + $0xe0] sm:$0xff] %vm42_vm3, %v9268_v41  ;;  %v1543_v43 = vld [vmem:[#allocation2 + $0x60] sm:$0xff]  ;;  %vm11509_vm12 = vcmp.ge.s32.totalorder %v9681_v27, 0  ;;  %vm11512_vm13 = vcmp.ge.s32.totalorder %v9676_v23, 0  ;;  %vm11515_vm14 = vcmp.ge.s32.totalorder %v9678_v24, 0 }
  0x5c   :  { %72 = vst.msk [vmem:[#allocation2 + $0xe8] sm:$0xff] %vm42_vm3, %v9268_v41  ;;  %73 = vst.msk [vmem:[#allocation2 + $0xf0] sm:$0xff] %vm42_vm3, %v9268_v41  ;;  %8167 = vmatprep.mubr.msk.bf16.mxu0 %vm42_vm3, %v1543_v43  ;;  %v9706_v43 = vadd.s32 2, %v115_v13  ;;  %vm11513_vm15 = vcmp.ge.s32.totalorder %v9683_v28, 0  ;;  %vm11514_vm0 = vcmp.lt.s32.totalorder %v9687_v30, 8  ;;  %vm11518_vm2 = vcmp.lt.s32.totalorder %v9694_v34, 8 }
  0x5d   :  { %74 = vst.msk [vmem:[#allocation2 + $0xf8] sm:$0xff] %vm42_vm3, %v9268_v41  ;;  %75 = vst.msk [vmem:[#allocation2 + $0x100] sm:$0xff] %vm42_vm3, %v9268_v41  ;;  %vm11519_vm1 = vcmp.lt.s32.totalorder %v9696_v35, 8  ;;  %s9243_s18 = scalar_lea.vmem %s7255_s17, 32 }
  0x5e   :  { %76 = vst.msk [vmem:[#allocation2 + $0x108] sm:$0xff] %vm42_vm3, %v9268_v41  ;;  %77 = vst.msk [vmem:[#allocation2 + $0x110] sm:$0xff] %vm42_vm3, %v9268_v41  ;;  %v1713_v45 = vld [vmem:[#allocation2 + $0x90] sm:$0xff]  ;;  %p9244_p0 = scmp.ne.s32.totalorder %s7255_s17, %s9243_s18  ;;  %p9249_p2 = scmp.lt.s32.totalorder %s9243_s18, %s9243_s18 }
  0x5f   :  { %78 = vst.msk [vmem:[#allocation2 + $0x118] sm:$0xff] %vm42_vm3, %v9268_v41  ;;  %79 = vst.msk [vmem:[#allocation2 + $0x120] sm:$0xff] %vm42_vm3, %v9268_v41  ;;  %8187 = vmatprep.mubr.msk.bf16.mxu1 %vm42_vm3, %v1713_v45 }
  0x60   :  { %80 = vst.msk [vmem:[#allocation2 + $0x128] sm:$0xff] %vm42_vm3, %v9268_v41  ;;  %81 = vst.msk [vmem:[#allocation2 + $0x130] sm:$0xff] %vm42_vm3, %v9268_v41  ;;  %p9250_p3 = por %p9249_p2, %p9248_p1 }
  0x61   :  { %82 = vst.msk [vmem:[#allocation2 + $0x138] sm:$0xff] %vm42_vm3, %v9268_v41  ;;  %83 = vst.msk [vmem:[#allocation2 + $0x140] sm:$0xff] %vm42_vm3, %v9268_v41 }
  0x62   :  { %84 = vst.msk [vmem:[#allocation2 + $0x148] sm:$0xff] %vm42_vm3, %v9268_v41  ;;  %85 = vst.msk [vmem:[#allocation2 + $0x150] sm:$0xff] %vm42_vm3, %v9268_v41  ;;  %p9251_p4 = pnand %p9250_p3, %p9244_p0 }
  0x63   :  { %86 = vst.msk [vmem:[#allocation2 + $0x158] sm:$0xff] %vm42_vm3, %v9268_v41  ;;  %87 = vst.msk [vmem:[#allocation2 + $0x160] sm:$0xff] %vm42_vm3, %v9268_v41 }
  0x64   :  { %88 = vst.msk [vmem:[#allocation2 + $0x168] sm:$0xff] %vm42_vm3, %v9268_v41  ;;  %89 = vst.msk [vmem:[#allocation2 + $0x170] sm:$0xff] %vm42_vm3, %v9268_v41 }
  0x65   :  { %90 = vst.msk [vmem:[#allocation2 + $0x178] sm:$0xff] %vm42_vm3, %v9268_v41  ;;  %91 = vst.msk [vmem:[#allocation2 + $0x180] sm:$0xff] %vm42_vm3, %v9268_v41 }
  0x66   :  { %92 = vst.msk [vmem:[#allocation2 + $0x188] sm:$0xff] %vm42_vm3, %v9268_v41  ;;  %93 = vst.msk [vmem:[#allocation2 + $0x190] sm:$0xff] %vm42_vm3, %v9268_v41 }
  0x67   :  { %94 = vst.msk [vmem:[#allocation2 + $0x198] sm:$0xff] %vm42_vm3, %v9268_v41  ;;  %95 = vst.msk [vmem:[#allocation2 + $0x1a0] sm:$0xff] %vm42_vm3, %v9268_v41 }
  0x68   :  { %96 = vst.msk [vmem:[#allocation2 + $0x1a8] sm:$0xff] %vm42_vm3, %v9268_v41  ;;  %97 = vst.msk [vmem:[#allocation2 + $0x1b0] sm:$0xff] %vm42_vm3, %v9268_v41 }
  0x69   :  { %98 = vst.msk [vmem:[#allocation2 + $0x1b8] sm:$0xff] %vm42_vm3, %v9268_v41  ;;  %99 = vst.msk [vmem:[#allocation2 + $0x1c0] sm:$0xff] %vm42_vm3, %v9268_v41 }
  0x6a   :  { %100 = vst.msk [vmem:[#allocation2 + $0x1c8] sm:$0xff] %vm42_vm3, %v9268_v41  ;;  %101 = vst.msk [vmem:[#allocation2 + $0x1d0] sm:$0xff] %vm42_vm3, %v9268_v41 }
  0x6b   :  { %102 = vst.msk [vmem:[#allocation2 + $0x1d8] sm:$0xff] %vm42_vm3, %v9268_v41  ;;  %11540 = vst [vmem:[#allocation7_spill] sm:$0xff] %v9619_v44  ;;  %v9702_v41 = vadd.s32 4294967295, %v9665_v17 }
  0x6c   :  { %11541 = vst [vmem:[#allocation8_spill] sm:$0xff] %v9672_v21  ;;  %11542 = vst [vmem:[#allocation9_spill] sm:$0xff] %v9674_v22 }
  0x6d   :  { %11543 = vst [vmem:[#allocation10_spill] sm:$0xff] %v9681_v27  ;;  %11544 = vst [vmem:[#allocation11_spill] sm:$0xff] %v9683_v28 }
  0x6e   :  { %11545 = vst [vmem:[#allocation12_spill] sm:$0xff] %v9696_v35  ;;  %11546 = vst [vmem:[#allocation13_spill] sm:$0xff] %v9699_v36 }
  0x6f   :  { %11547 = vst [vmem:[#allocation14_spill] sm:$0xff] %v9702_v41  ;;  %11548 = vst [vmem:[#allocation15_spill] sm:$0xff] %v9704_v42 }
  0x70   :  { %11549 = vst [vmem:[#allocation16_spill] sm:$0xff] %v9706_v43 }
  0xe9   :  { %v8033_v46 = vpop.f32.mrb[0].mxu0  ;;  %v8051_v47 = vpop.f32.mrb[0].mxu1 }
  0xea   :  { %v369_v48 = vmax.f32 %v8033_v46, %v8051_v47  ;;  %v231_v49 = vpop.f32.mrb[1].mxu0  ;;  %v336_v50 = vpop.f32.mrb[1].mxu1 }
  0xeb   :  { %v367_v52 = vmax.f32 %v231_v49, %v336_v50  ;;  %v9624_v53 = vpop.f32.mrb[2].mxu0  ;;  %v8052_v54 = vpop.f32.mrb[2].mxu1  ;;  %v9708_v49 = vadd.s32 4294967294, %v112_v15  ;;  %v9710_v50 = vadd.s32 4294967294, %v119_v25  ;;  %v9731_v15 = vadd.s32 2, %v118_v37 }
  0xec   :  { %v370_v55 = vmax.f32 %v9624_v53, %v8052_v54  ;;  %v9627_v56 = vpop.f32.mrb[3].mxu0  ;;  %v9629_v57 = vpop.f32.mrb[3].mxu1 }
  0xed   :  { %v368_v58 = vmax.f32 %v9627_v56, %v9629_v57 }
  0xf1   :  { %v9635_v60 = vpop.f32.mrb[4].mxu0  ;;  %v9637_v61 = vpop.f32.mrb[4].mxu1 }
  0xf2   :  { %v373_v62 = vmax.f32 %v9635_v60, %v9637_v61  ;;  %v9641_v63 = vpop.f32.mrb[5].mxu0  ;;  %v9643_v0 = vpop.f32.mrb[5].mxu1 }
  0xf3   :  { %v9649_v4 = vpop.f32.mrb[6].mxu0  ;;  %v9651_v5 = vpop.f32.mrb[6].mxu1 }
  0xf4   :  { %v9655_v7 = vpop.f32.mrb[7].mxu0  ;;  %v9657_v8 = vpop.f32.mrb[7].mxu1  ;;  %v11552_v60 = vmax.f32 %v9649_v4, %v9651_v5 }
  0xfd   :  { %v8069_v31 = vpop.f32.mrb[8].mxu0  ;;  %v8087_v33 = vpop.f32.mrb[8].mxu1 }
  0xfe   :  { %v482_v38 = vmax.f32 %v369_v48, %v8069_v31  ;;  %v449_v39 = vpop.f32.mrb[9].mxu0  ;;  %v562_v40 = vpop.f32.mrb[9].mxu1 }
  0xff   :  { %v480_v45 = vmax.f32 %v367_v52, %v449_v39  ;;  %v8070_v46 = vpop.f32.mrb[10].mxu0  ;;  %v8088_v47 = vpop.f32.mrb[10].mxu1 }
 0x100   :  { %v595_v53 = vmax.f32 %v482_v38, %v8087_v33  ;;  %v483_v54 = vmax.f32 %v370_v55, %v8070_v46  ;;  %v452_v48 = vpop.f32.mrb[11].mxu0  ;;  %v565_v1 = vpop.f32.mrb[11].mxu1  ;;  %v9724_v55 = vadd.s32 1, %v119_v25  ;;  %v9747_v25 = vadd.s32 4294967295, %v117_v51 }
 0x101   :  { %v593_v11 = vmax.f32 %v480_v45, %v562_v40  ;;  %v481_v52 = vmax.f32 %v368_v58, %v452_v48  ;;  %v9737_v58 = vadd.s32 4294967294, %v117_v51  ;;  %v9749_v33 = vadd.s32 4294967295, %v118_v37 }
 0x102   :  { %v609_v13 = vadd.f32 %v9692_v32, %v595_v53  ;;  %v596_v14 = vmax.f32 %v483_v54, %v8088_v47  ;;  %v9758_v46 = vadd.s32 1, %v9665_v17  ;;  %v9760_v47 = vadd.s32 1, %v117_v51 }
 0x103   :  { %v607_v56 = vadd.f32 %v9692_v32, %v593_v11  ;;  %v594_v57 = vmax.f32 %v481_v52, %v565_v1  ;;  %11550 = vst [vmem:[#allocation17_spill] sm:$0xff] %v9749_v33  ;;  %v9768_v1 = vadd.s32 2, %v9665_v17  ;;  %v9770_v11 = vadd.s32 2, %v117_v51 }
 0x104   :  { %v9741_v26 = vmax.f32 %v609_v13, 0.0  ;;  %v610_v31 = vadd.f32 %v9692_v32, %v596_v14  ;;  %v11551_v51 = vmax.f32 %v9641_v63, %v9643_v0 }
 0x105   :  { %v9751_v38 = vmax.f32 %v607_v56, 0.0  ;;  %v608_v39 = vadd.f32 %v9692_v32, %v594_v57  ;;  %v8073_v40 = vpop.f32.mrb[12].mxu0  ;;  %v9755_v45 = vpop.f32.mrb[12].mxu1 }
 0x106   :  { %v625_v53 = vrot.slane %v9741_v26, 6  ;;  %v690_v54 = vrot.slane %v9741_v26, 7  ;;  %v465_v37 = vpop.f32.mrb[13].mxu0  ;;  %v9765_v48 = vpop.f32.mrb[13].mxu1  ;;  %v797_v52 = vrot.slane %v9741_v26, 1  ;;  %v9779_v6 = vmax.f32 %v610_v31, 0.0 }
 0x107   :  { %v8074_v57 = vpop.f32.mrb[14].mxu0  ;;  %v9777_v10 = vpop.f32.mrb[14].mxu1  ;;  %v9781_v3 = vmax.f32 %v608_v39, 0.0  ;;  %v9786_v17 = vmax.f32 %v373_v62, %v8073_v40  ;;  %v9791_v14 = vmax.f32 %v11551_v51, %v465_v37  ;;  %v11553_v62 = vmax.f32 %v9655_v7, %v9657_v8 }
 0x108   :  { %v468_v56 = vpop.f32.mrb[15].mxu0  ;;  %v9793_v13 = vpop.f32.mrb[15].mxu1  ;;  %v9802_v61 = vmax.f32 %v11552_v60, %v8074_v57  ;;  %v11504_v0 = vrot.slane %v9779_v6, 6  ;;  %v11505_v39 = vrot.slane %v9779_v6, 7  ;;  %v787_v40 = vpack.c.bf16 %v9779_v6, %v9741_v26 }
 0x109   :  { %v9807_v63 = vmax.f32 %v11553_v62, %v468_v56  ;;  %v11506_v37 = vrot.slane %v9779_v6, 1  ;;  %v11507_v51 = vrot.slane %v9779_v6, 2  ;;  %v624_v4 = vrot.slane %v9781_v3, 6 }
 0x10a   :  { %v689_v5 = vrot.slane %v9781_v3, 7  ;;  %v786_v7 = vpack.c.bf16 %v9781_v3, %v9751_v38  ;;  %v636_v8 = vsel %vm631_vm4, %v625_v53, %v11504_v0  ;;  %v701_v56 = vsel %vm696_vm5, %v690_v54, %v11505_v39  ;;  %792 = vst.msk [vmem:[#allocation2 + $0xd0] sm:$0xff] %vm42_vm3, %v787_v40 }
 0x10b   :  { %v808_v57 = vsel %vm803_vm6, %v797_v52, %v11506_v37  ;;  %v796_v60 = vrot.slane %v9781_v3, 1  ;;  %v675_v62 = vsel %vm11517_vm7, %v636_v8, 0.0  ;;  %v740_v0 = vsel %vm11516_vm8, %v701_v56, 0.0 }
 0x10c   :  { %v9839_v31 = vsel %vm11511_vm9, %v808_v57, 0.0  ;;  %v11554_v40 = vrot.slane %v9741_v26, 2  ;;  %791 = vst.msk [vmem:[#allocation2 + $0xc8] sm:$0xff] %vm42_vm3, %v786_v7  ;;  %v637_v8 = vsel %vm631_vm4, %v624_v4, %v625_v53  ;;  %v11555_v56 = vrot.slane %v9751_v38, 6 }
 0x10d   :  { %v702_v44 = vsel %vm696_vm5, %v689_v5, %v690_v54  ;;  %v674_v7 = vsel %vm11512_vm13, %v637_v8, 0.0  ;;  %vm11536_vm9 = vcmp.lt.s32.totalorder %v9704_v42, 8  ;;  %vm11534_vm13 = vcmp.lt.s32.totalorder %v9706_v43, 8 }
 0x10e   :  { %v874_v39 = vsel %vm869_vm10, %v11554_v40, %v11507_v51  ;;  %v638_v57 = vsel %vm631_vm4, %v11555_v56, %v624_v4  ;;  %v739_v51 = vsel %vm11515_vm14, %v702_v44, 0.0  ;;  %v681_v22 = vpack.c.bf16 %v675_v62, %v674_v7 }
 0x10f   :  { %v9850_v37 = vsel %vm11510_vm11, %v874_v39, 0.0  ;;  %v9862_v40 = vsel %vm11509_vm12, %v638_v57, 0.0  ;;  %v11556_v39 = vrot.slane %v9751_v38, 7  ;;  %v746_v54 = vpack.c.bf16 %v740_v0, %v739_v51 }
 0x110   :  { %v809_v56 = vsel %vm803_vm6, %v796_v60, %v797_v52  ;;  %vm11532_vm12 = vcmp.ge.s32.totalorder %v9699_v36, 0  ;;  %vm11531_vm11 = vcmp.ge.s32.totalorder %v9702_v41, 0  ;;  %v862_v0 = vrot.slane %v9781_v3, 2  ;;  %685 = vst.msk [vmem:[#allocation2 + $0x10] sm:$0xff] %vm42_vm3, %v681_v22 }
 0x111   :  { %v703_v53 = vsel %vm696_vm5, %v11556_v39, %v689_v5  ;;  %v11557_v5 = vrot.slane %v9751_v38, 1  ;;  %v845_v62 = vsel %vm11514_vm0, %v809_v56, 0.0  ;;  %v599_v52 = vmax.f32 %v9786_v17, %v9755_v45  ;;  %v9891_v51 = vpop.f32.mrb[16].mxu0  ;;  %v9893_v8 = vpop.f32.mrb[16].mxu1  ;;  %751 = vst.msk [vmem:[#allocation2 + $0x70] sm:$0xff] %vm42_vm3, %v746_v54 }
 0x112   :  { %v9874_v4 = vsel %vm11513_vm15, %v703_v53, 0.0  ;;  %vm11558_vm15 = vcmp.lt.s32.totalorder %v9685_v29, 8  ;;  %v600_v3 = vmax.f32 %v9802_v61, %v9777_v10  ;;  %vm11533_vm0 = vcmp.ge.s32.totalorder %v9708_v49, 0  ;;  %v9907_v17 = vpop.f32.mrb[17].mxu0  ;;  %v9909_v22 = vpop.f32.mrb[17].mxu1 }
 0x113   :  { %v810_v44 = vsel %vm803_vm6, %v11557_v5, %v796_v60  ;;  %v597_v60 = vmax.f32 %v9791_v14, %v9765_v48  ;;  %vm11535_vm14 = vcmp.ge.s32.totalorder %v9710_v50, 0  ;;  %v598_v45 = vmax.f32 %v9807_v63, %v9793_v13  ;;  %v9922_v13 = vpop.f32.mrb[18].mxu0  ;;  %v9924_v63 = vpop.f32.mrb[18].mxu1 }
 0x114   :  { %v844_v57 = vsel %vm11558_vm15, %v810_v44, 0.0  ;;  %v11559_v39 = vrot.slane %v9741_v26, 2  ;;  %v11560_v14 = vrot.slane %v9751_v38, 2  ;;  %v613_v61 = vadd.f32 %v9692_v32, %v599_v52  ;;  %v9933_v5 = vpop.f32.mrb[19].mxu0  ;;  %v9935_v44 = vpop.f32.mrb[19].mxu1 }
 0x115   :  { %v852_v7 = vpack.c.bf16 %v845_v62, %v844_v57  ;;  %vm713_vm15 = vcmp.ge.s32.totalorder %v9712_v2, 0  ;;  %v611_v54 = vadd.f32 %v9692_v32, %v597_v60  ;;  %v614_v56 = vadd.f32 %v9692_v32, %v600_v3  ;;  %v10417_v2 = vld [vmem:[#allocation2 + $0xc8] sm:$0xff] }
 0x116   :  { %v875_v48 = vsel %vm869_vm10, %v862_v0, %v11559_v39  ;;  %v876_v10 = vsel %vm869_vm10, %v11560_v14, %v862_v0  ;;  %v9938_v0 = vmax.f32 %v613_v61, 0.0  ;;  %v9942_v52 = vadd.f32 %v9692_v32, %v598_v45 }
 0x117   :  { %v910_v26 = vsel %vm11518_vm2, %v876_v10, 0.0  ;;  %v911_v53 = vsel %vm11519_vm1, %v875_v48, 0.0  ;;  %857 = vst.msk [vmem:[#allocation2 + $0x128] sm:$0xff] %vm42_vm3, %v852_v7  ;;  %v9946_v60 = vmax.f32 %v611_v54, 0.0  ;;  %v9948_v3 = vmax.f32 %v614_v56, 0.0 }
 0x118   :  { %v918_v62 = vpack.c.bf16 %v911_v53, %v910_v26  ;;  %v11561_v14 = vrot.slane %v9779_v6, 6  ;;  %v11562_v48 = vrot.slane %v9779_v6, 7  ;;  %v11563_v28 = vrot.slane %v9779_v6, 1 }
 0x119   :  { %v11526_v61 = vrot.slane %v9946_v60, 6  ;;  %v11524_v26 = vrot.slane %v9946_v60, 7  ;;  %v11525_v53 = vrot.slane %v9946_v60, 1  ;;  %v630_v56 = vrot.slane %v9948_v3, 6  ;;  %v9970_v57 = vpop.f32.mrb[20].mxu0  ;;  %v9972_v10 = vpop.f32.mrb[20].mxu1 }
 0x11a   :  { %923 = vst.msk [vmem:[#allocation2 + $0x188] sm:$0xff] %vm42_vm3, %v918_v62  ;;  %v695_v62 = vrot.slane %v9948_v3, 7  ;;  %v789_v7 = vpack.c.bf16 %v9948_v3, %v9938_v0  ;;  %v802_v39 = vrot.slane %v9948_v3, 1  ;;  %v11564_v21 = vrot.slane %v9946_v60, 2 }
 0x11b   :  { %v635_v45 = vsel %vm631_vm4, %v11561_v14, %v11526_v61  ;;  %v700_v54 = vsel %vm696_vm5, %v11562_v48, %v11524_v26  ;;  %v807_v27 = vsel %vm803_vm6, %v11563_v28, %v11525_v53  ;;  %v11565_v35 = vrot.slane %v9779_v6, 2  ;;  %v10002_v48 = vpop.f32.mrb[21].mxu0  ;;  %v10004_v26 = vpop.f32.mrb[21].mxu1 }
 0x11c   :  { %vm653_vm2 = vcmp.ge.s32.totalorder %v9737_v58, 0  ;;  %vm654_vm1 = vcmp.ge.s32.totalorder %v9739_v18, 0  ;;  %vm718_vm7 = vcmp.ge.s32.totalorder %v9747_v25, 0  ;;  %vm719_vm8 = vcmp.ge.s32.totalorder %v9749_v33, 0  ;;  %794 = vst.msk [vmem:[#allocation2 + $0xe0] sm:$0xff] %vm42_vm3, %v789_v7  ;;  %v10019_v53 = vpop.f32.mrb[22].mxu0 }
 0x11d   :  { %v873_v14 = vsel %vm869_vm10, %v11565_v35, %v11564_v21  ;;  %v10008_v28 = vsel %vm11532_vm12, %v635_v45, 0.0  ;;  %v10012_v6 = vsel %vm11531_vm11, %v700_v54, 0.0  ;;  %v847_v21 = vsel %vm11536_vm9, %v807_v27, 0.0  ;;  %v10021_v61 = vpop.f32.mrb[22].mxu1  ;;  %v10033_v43 = vpop.f32.mrb[23].mxu0 }
 0x11e   :  { %v913_v35 = vsel %vm11534_vm13, %v873_v14, 0.0  ;;  %v853_v36 = vpack.c.bf16 %v847_v21, %v9839_v31  ;;  %v11566_v41 = vrot.slane %v9938_v0, 6  ;;  %v11567_v27 = vrot.slane %v9751_v38, 6  ;;  %v10035_v7 = vpop.f32.mrb[23].mxu1 }
 0x11f   :  { %v919_v45 = vpack.c.bf16 %v913_v35, %v9850_v37  ;;  %v11568_v37 = vrot.slane %v9938_v0, 7  ;;  %v11569_v21 = vrot.slane %v9751_v38, 7  ;;  %vm832_vm11 = vcmp.lt.s32.totalorder %v9758_v46, 8  ;;  %v9239_v46 = vld [vmem:[%s11497_s3] sm:$0xff]  }
 0x120   :  { %v632_v54 = vsel %vm631_vm4, %v11566_v41, %v630_v56  ;;  %v639_v14 = vsel %vm631_vm4, %v630_v56, %v11567_v27  ;;  %vm833_vm12 = vcmp.lt.s32.totalorder %v9760_v47, 8  ;;  %vm11538_vm13 = vcmp.lt.s32.totalorder %v9770_v11, 8  ;;  %858 = vst.msk [vmem:[#allocation2 + $0x130] sm:$0xff] %vm42_vm3, %v853_v36  ;;  %v10520_v47 = vld [vmem:[#allocation2 + $0x128] sm:$0xff] }
 0x121   :  { %v672_v42 = vsel %vm11533_vm0, %v639_v14, 0.0  ;;  %v10041_v31 = vsel %vm11535_vm14, %v632_v54, 0.0  ;;  %v697_v41 = vsel %vm696_vm5, %v11568_v37, %v695_v62  ;;  %v704_v56 = vsel %vm696_vm5, %v695_v62, %v11569_v21  ;;  %924 = vst.msk [vmem:[#allocation2 + $0x190] sm:$0xff] %vm42_vm3, %v919_v45 }
 0x122   :  { %vm11539_vm0 = vcmp.lt.s32.totalorder %v9768_v1, 8  ;;  %v680_v35 = vpack.c.bf16 %v9862_v40, %v672_v42  ;;  %v737_v54 = vsel %vm713_vm15, %v704_v56, 0.0  ;;  %vm11570_vm14 = vcmp.ge.s32.totalorder %v9714_v9, 0 }
 0x123   :  { %v744_v62 = vsel %vm11570_vm14, %v697_v41, 0.0  ;;  %v11571_v27 = vrot.slane %v9938_v0, 1  ;;  %v745_v37 = vpack.c.bf16 %v9874_v4, %v737_v54  ;;  %v11572_v21 = vrot.slane %v9751_v38, 1 }
 0x124   :  { %vm11573_vm9 = vcmp.lt.s32.totalorder %v9722_v12, 8  ;;  %v868_v40 = vrot.slane %v9948_v3, 2  ;;  %684 = vst.msk [vmem:[#allocation2 + $0x8] sm:$0xff] %vm42_vm3, %v680_v35  ;;  %vm11574_vm14 = vcmp.lt.s32.totalorder %v9724_v55, 8  ;;  %v620_v41 = vmax.f32 %v9942_v52, 0.0 }
 0x125   :  { %v804_v14 = vsel %vm803_vm6, %v11571_v27, %v802_v39  ;;  %v811_v36 = vsel %vm803_vm6, %v802_v39, %v11572_v21  ;;  %v1138_v4 = vmax.f32 %v9933_v5, %v9935_v44  ;;  %750 = vst.msk [vmem:[#allocation2 + $0x68] sm:$0xff] %vm42_vm3, %v745_v37  ;;  %v11575_v54 = vrot.slane %v9938_v0, 2 }
 0x126   :  { %v850_v42 = vsel %vm11573_vm9, %v804_v14, 0.0  ;;  %v851_v45 = vsel %vm11574_vm14, %v811_v36, 0.0  ;;  %v11576_v35 = vrot.slane %v9751_v38, 2  ;;  %vm11577_vm9 = vcmp.lt.s32.totalorder %v9731_v15, 8 }
 0x127   :  { %v855_v39 = vpack.c.bf16 %v851_v45, %v850_v42  ;;  %v870_v3 = vsel %vm869_vm10, %v11575_v54, %v868_v40  ;;  %vm11578_vm14 = vcmp.lt.s32.totalorder %v9733_v16, 8  ;;  %v628_v14 = vrot.slane %v620_v41, 6 }
 0x128   :  { %v877_v27 = vsel %vm869_vm10, %v868_v40, %v11576_v35  ;;  %v916_v5 = vsel %vm11577_vm9, %v870_v3, 0.0  ;;  %v693_v37 = vrot.slane %v620_v41, 7  ;;  %v788_v36 = vpack.c.bf16 %v620_v41, %v9946_v60 }
 0x129   :  { %v917_v44 = vsel %vm11578_vm14, %v877_v27, 0.0  ;;  %860 = vst.msk [vmem:[#allocation2 + $0x140] sm:$0xff] %vm42_vm3, %v855_v39  ;;  %v800_v38 = vrot.slane %v620_v41, 1  ;;  %v866_v42 = vrot.slane %v620_v41, 2  ;;  %v11579_v40 = vrot.slane %v9938_v0, 6 }
 0x12a   :  { %v921_v21 = vpack.c.bf16 %v917_v44, %v916_v5  ;;  %v11580_v54 = vrot.slane %v9946_v60, 6  ;;  %v11581_v35 = vrot.slane %v9938_v0, 7  ;;  %v11582_v27 = vrot.slane %v9946_v60, 7  ;;  %793 = vst.msk [vmem:[#allocation2 + $0xd8] sm:$0xff] %vm42_vm3, %v788_v36 }
 0x12b   :  { %v633_v45 = vsel %vm631_vm4, %v628_v14, %v11579_v40  ;;  %v11585_v33 = vrot.slane %v9938_v0, 2  ;;  %vm11593_vm9 = vcmp.ge.s32.totalorder %v9668_v19, 0  ;;  %vm11594_vm14 = vcmp.ge.s32.totalorder %v9670_v20, 0 }
 0x12c   :  { %v634_v3 = vsel %vm631_vm4, %v11580_v54, %v628_v14  ;;  %v698_v39 = vsel %vm696_vm5, %v693_v37, %v11581_v35  ;;  %v699_v41 = vsel %vm696_vm5, %v11582_v27, %v693_v37  ;;  %926 = vst.msk [vmem:[#allocation2 + $0x1a0] sm:$0xff] %vm42_vm3, %v921_v21  ;;  %v678_v44 = vsel %vm654_vm1, %v633_v45, 0.0  ;;  %v8141_v54 = vpop.f32.mrb[24].mxu0  ;;  %v8159_v35 = vpop.f32.mrb[24].mxu1 }
 0x12d   :  { %v677_v5 = vsel %vm653_vm2, %v634_v3, 0.0  ;;  %v742_v14 = vsel %vm718_vm7, %v699_v41, 0.0  ;;  %v743_v40 = vsel %vm719_vm8, %v698_v39, 0.0  ;;  %v683_v21 = vpack.c.bf16 %v10041_v31, %v678_v44  ;;  %v1219_v52 = vpop.f32.mrb[25].mxu0  ;;  %v1332_v56 = vpop.f32.mrb[25].mxu1  ;;  %v10147_v44 = vld [vmem:[%s11497_s3 + $0x10] sm:$0xff]  }
 0x12e   :  { %v682_v37 = vpack.c.bf16 %v677_v5, %v10008_v28  ;;  %v747_v27 = vpack.c.bf16 %v742_v14, %v10012_v6  ;;  %v748_v3 = vpack.c.bf16 %v744_v62, %v743_v40  ;;  %v11583_v45 = vrot.slane %v9938_v0, 1  ;;  %v8142_v62 = vpop.f32.mrb[26].mxu0  ;;  %v8160_v5 = vpop.f32.mrb[26].mxu1 }
 0x12f   :  { %v11584_v39 = vrot.slane %v9946_v60, 1  ;;  %v871_v28 = vsel %vm869_vm10, %v866_v42, %v11585_v33  ;;  %v11586_v6 = vrot.slane %v9946_v60, 2  ;;  %687 = vst.msk [vmem:[#allocation2 + $0x20] sm:$0xff] %vm42_vm3, %v683_v21  ;;  %v1222_v14 = vpop.f32.mrb[27].mxu0  ;;  %v1144_v21 = vmax.f32 %v10019_v53, %v10021_v61 }
 0x130   :  { %v805_v41 = vsel %vm803_vm6, %v800_v38, %v11583_v45  ;;  %686 = vst.msk [vmem:[#allocation2 + $0x18] sm:$0xff] %vm42_vm3, %v682_v37  ;;  %752 = vst.msk [vmem:[#allocation2 + $0x78] sm:$0xff] %vm42_vm3, %v747_v27  ;;  %v1142_v27 = vmax.f32 %v10033_v43, %v10035_v7  ;;  %v1335_v45 = vpop.f32.mrb[27].mxu1  ;;  %v11589_v43 = vmax.f32 %v9922_v13, %v9924_v63 }
 0x131   :  { %v806_v36 = vsel %vm803_vm6, %v11584_v39, %v800_v38  ;;  %v872_v31 = vsel %vm869_vm10, %v11586_v6, %v866_v42  ;;  %753 = vst.msk [vmem:[#allocation2 + $0x80] sm:$0xff] %vm42_vm3, %v748_v3  ;;  %v849_v0 = vsel %vm833_vm12, %v805_v41, 0.0  ;;  %v915_v38 = vsel %vm11538_vm13, %v871_v28, 0.0  ;;  %v10161_v42 = vld [vmem:[#allocation2 + $0x68] sm:$0xff]  ;;  %v10169_v3 = vld [vmem:[#allocation2 + $0x70] sm:$0xff] }
 0x132   :  { %v848_v33 = vsel %vm832_vm11, %v806_v36, 0.0  ;;  %v914_v60 = vsel %vm11539_vm0, %v872_v31, 0.0  ;;  %8168 = vmatmul.mubr.msk.bf16.vlgmr.msra.gmra.mrb[32].mxu0 %vm42_vm3, %v10161_v42  ;;  %v11587_v41 = vmax.f32 %v9891_v51, %v9893_v8  ;;  %v11588_v36 = vmax.f32 %v9907_v17, %v9909_v22  ;;  %v11590_v28 = vld [vmem:[#allocation7_spill] sm:$0xff]  ;;  %v8145_v8 = vpop.f32.mrb[28].mxu0  ;;  %v10186_v17 = vpop.f32.mrb[28].mxu1 }
 0x133   :  { %v854_v40 = vpack.c.bf16 %v849_v0, %v848_v33  ;;  %v920_v37 = vpack.c.bf16 %v915_v38, %v914_v60  ;;  %8171 = vmatprep.mubr.msk.bf16.mxu0 %vm42_vm3, %v10169_v3  ;;  %v1253_v53 = vmax.f32 %v11589_v43, %v8142_v62  ;;  %v1251_v7 = vmax.f32 %v1138_v4, %v1222_v14 }
 0x134   :  { %v1252_v39 = vmax.f32 %v11587_v41, %v8141_v54  ;;  %v1250_v61 = vmax.f32 %v11588_v36, %v1219_v52  ;;  %8176 = vmatpush3.bf16.msra.mxu0 %v11590_v28  ;;  %v1235_v52 = vpop.f32.mrb[29].mxu0  ;;  %v10192_v54 = vpop.f32.mrb[29].mxu1  ;;  %v11592_v0 = vmax.f32 %v10002_v48, %v10004_v26 }
 0x135   :  { %859 = vst.msk [vmem:[#allocation2 + $0x138] sm:$0xff] %vm42_vm3, %v854_v40  ;;  %925 = vst.msk [vmem:[#allocation2 + $0x198] sm:$0xff] %vm42_vm3, %v920_v37  ;;  %v1366_v33 = vmax.f32 %v1253_v53, %v8160_v5  ;;  %v1364_v51 = vmax.f32 %v1251_v7, %v1335_v45  ;;  %8205 = vmatprep.subr.bf16.mxu0 %v10147_v44  ;;  %v1533_v5 = vld [vmem:[#allocation2] sm:$0xff]  ;;  %v8146_v38 = vpop.f32.mrb[30].mxu0  ;;  %v10204_v14 = vpop.f32.mrb[30].mxu1 }
 0x136   :  { %v1365_v6 = vmax.f32 %v1252_v39, %v8159_v35  ;;  %v1363_v31 = vmax.f32 %v1250_v61, %v1332_v56  ;;  %v11591_v56 = vmax.f32 %v9970_v57, %v9972_v10  ;;  %v10202_v60 = vmax.f32 %v11592_v0, %v1235_v52  ;;  %v1238_v39 = vpop.f32.mrb[31].mxu0  ;;  %v10214_v57 = vpop.f32.mrb[31].mxu1 }
 0x137   :  { %v1374_v63 = vadd.f32 %v9692_v32, %v1366_v33  ;;  %v1372_v4 = vadd.f32 %v9692_v32, %v1364_v51  ;;  %v10194_v35 = vld [vmem:[#allocation2 + $0x78] sm:$0xff]  ;;  %v1257_v48 = vmax.f32 %v1144_v21, %v8146_v38  ;;  %v10221_v36 = vmax.f32 %v1142_v27, %v1238_v39 }
 0x138   :  { %v1373_v22 = vadd.f32 %v9692_v32, %v1365_v6  ;;  %v1371_v13 = vadd.f32 %v9692_v32, %v1363_v31  ;;  %v1256_v62 = vmax.f32 %v11591_v56, %v8145_v8  ;;  %v1367_v26 = vmax.f32 %v10202_v60, %v10192_v54  ;;  %v10276_v60 = vld [vmem:[#allocation2 + $0x8] sm:$0xff] }
 0x139   :  { %v10210_v45 = vmax.f32 %v1374_v63, 0.0  ;;  %v10212_v41 = vmax.f32 %v1372_v4, 0.0 }
 0x13a   :  { %v10206_v40 = vmax.f32 %v1373_v22, 0.0  ;;  %v10208_v37 = vmax.f32 %v1371_v13, 0.0  ;;  %8172 = vmatmul.mubr.msk.bf16.gmra.mrb[36].mxu0 %vm42_vm3, %v10194_v35  ;;  %v1369_v10 = vmax.f32 %v1256_v62, %v10186_v17 }
 0x13b   :  { %8177 = vmatprep.mubr.msk.bf16.mxu0 %vm42_vm3, %v1533_v5  ;;  %v1390_v6 = vrot.slane %v10210_v45, 6  ;;  %v1422_v31 = vrot.slane %v10210_v45, 7  ;;  %v1470_v27 = vrot.slane %v10210_v45, 1  ;;  %v1502_v33 = vrot.slane %v10210_v45, 2  ;;  %v10266_v5 = vld [vmem:[%s11497_s3 + $0x18] sm:$0xff]  }
 0x13c   :  { %v1389_v61 = vrot.slane %v10206_v40, 6  ;;  %v1421_v43 = vrot.slane %v10206_v40, 7  ;;  %v1469_v53 = vrot.slane %v10206_v40, 1  ;;  %v1501_v7 = vrot.slane %v10206_v40, 2 }
 0x13d   :  { %v1387_v28 = vrot.slane %v10208_v37, 6  ;;  %v1460_v21 = vpack.c.bf16 %v10210_v45, %v10206_v40  ;;  %v1388_v51 = vrot.slane %v10212_v41, 6  ;;  %v1420_v8 = vrot.slane %v10212_v41, 7 }
 0x13e   :  { %v1459_v17 = vpack.c.bf16 %v10212_v41, %v10208_v37  ;;  %v1399_v22 = vsel %vm631_vm4, %v1389_v61, %v1390_v6  ;;  %v1431_v13 = vsel %vm696_vm5, %v1421_v43, %v1422_v31  ;;  %v1479_v63 = vsel %vm803_vm6, %v1469_v53, %v1470_v27 }
 0x13f   :  { %1464 = vst.msk [vmem:[#allocation2 + $0x100] sm:$0xff] %vm42_vm3, %v1460_v21  ;;  %v1468_v4 = vrot.slane %v10212_v41, 1  ;;  %v1419_v52 = vrot.slane %v10208_v37, 7  ;;  %v1406_v54 = vsel %vm11593_vm9, %v1399_v22, 0.0  ;;  %v1438_v56 = vsel %vm11594_vm14, %v1431_v13, 0.0 }
 0x140   :  { %v1511_v62 = vsel %vm869_vm10, %v1501_v7, %v1502_v33  ;;  %1463 = vst.msk [vmem:[#allocation2 + $0xf8] sm:$0xff] %vm42_vm3, %v1459_v17  ;;  %v1400_v0 = vsel %vm631_vm4, %v1388_v51, %v1389_v61  ;;  %v1401_v19 = vsel %vm631_vm4, %v1387_v28, %v1388_v51  ;;  %v1432_v20 = vsel %vm696_vm5, %v1420_v8, %v1421_v43  ;;  %v10291_v43 = vld [vmem:[#allocation2 + $0x10] sm:$0xff] }
 0x141   :  { %v1467_v38 = vrot.slane %v10208_v37, 1  ;;  %vm11595_vm9 = vcmp.ge.s32.totalorder %v9676_v23, 0  ;;  %v10285_v39 = vsel %vm696_vm5, %v1419_v52, %v1420_v8  ;;  %vm11596_vm14 = vcmp.ge.s32.totalorder %v9678_v24, 0 }
 0x142   :  { %v1405_v40 = vsel %vm11595_vm9, %v1400_v0, 0.0  ;;  %v1437_v61 = vsel %vm11596_vm14, %v1432_v20, 0.0  ;;  %8178 = vmatmul.mubr.msk.bf16.vlgmr.msra.gmra.mrb[32].mxu0 %vm42_vm3, %v10276_v60  ;;  %v1499_v21 = vrot.slane %v10208_v37, 2  ;;  %v1480_v23 = vsel %vm803_vm6, %v1468_v4, %v1469_v53 }
 0x143   :  { %v1412_v51 = vpack.c.bf16 %v1406_v54, %v1405_v40  ;;  %v1444_v17 = vpack.c.bf16 %v1438_v56, %v1437_v61  ;;  %8181 = vmatprep.mubr.msk.bf16.mxu0 %vm42_vm3, %v10291_v43  ;;  %8206 = vmatpush3.bf16.msra.mxu0 %v10147_v44  ;;  %v1481_v24 = vsel %vm803_vm6, %v1467_v38, %v1468_v4  ;;  %vm11597_vm9 = vcmp.lt.s32.totalorder %v9687_v30, 8  ;;  %v1873_v40 = vld [vmem:[#allocation2 + $0xc0] sm:$0xff] }
 0x144   :  { %v1484_v8 = vsel %vm11597_vm9, %v1480_v23, 0.0  ;;  %v1500_v22 = vrot.slane %v10212_v41, 2  ;;  %v1377_v13 = vadd.f32 %v9692_v32, %v1369_v10  ;;  %8225 = vmatprep.subr.bf16.mxu0 %v10266_v5  ;;  %vm11598_vm14 = vcmp.lt.s32.totalorder %v9685_v29, 8  ;;  %v11604_v61 = vld [vmem:[#allocation9_spill] sm:$0xff] }
 0x145   :  { %1416 = vst.msk [vmem:[#allocation2 + $0x40] sm:$0xff] %vm42_vm3, %v1412_v51  ;;  %1448 = vst.msk [vmem:[#allocation2 + $0xa0] sm:$0xff] %vm42_vm3, %v1444_v17  ;;  %v1483_v53 = vsel %vm11598_vm14, %v1481_v24, 0.0  ;;  %v1375_v54 = vadd.f32 %v9692_v32, %v1367_v26  ;;  %v1370_v4 = vmax.f32 %v1257_v48, %v10204_v14  ;;  %v1368_v30 = vmax.f32 %v10221_v36, %v10214_v57  ;;  %v11600_v26 = vld [vmem:[#allocation12_spill] sm:$0xff] }
 0x146   :  { %v1491_v56 = vpack.c.bf16 %v1484_v8, %v1483_v53  ;;  %v1512_v41 = vsel %vm869_vm10, %v1500_v22, %v1501_v7  ;;  %v1513_v10 = vsel %vm869_vm10, %v1499_v21, %v1500_v22  ;;  %v10322_v0 = vmax.f32 %v1377_v13, 0.0  ;;  %v11602_v36 = vld [vmem:[#allocation8_spill] sm:$0xff]  ;;  %v11606_v8 = vld [vmem:[#allocation10_spill] sm:$0xff] }
 0x147   :  { %vm11599_vm9 = vcmp.lt.s32.totalorder %v9694_v34, 8  ;;  %vm11601_vm14 = vcmp.lt.s32.totalorder %v11600_v26, 8  ;;  %v10328_v48 = vmax.f32 %v1375_v54, 0.0  ;;  %v1378_v57 = vadd.f32 %v9692_v32, %v1370_v4  ;;  %v10339_v24 = vld [vmem:[#allocation2 + $0x18] sm:$0xff] }
 0x148   :  { %v1515_v29 = vsel %vm11599_vm9, %v1513_v10, 0.0  ;;  %v1516_v14 = vsel %vm11601_vm14, %v1512_v41, 0.0  ;;  %vm11603_vm13 = vcmp.lt.s32.totalorder %v11602_v36, 8  ;;  %1495 = vst.msk [vmem:[#allocation2 + $0x158] sm:$0xff] %vm42_vm3, %v1491_v56  ;;  %vm11605_vm0 = vcmp.lt.s32.totalorder %v11604_v61, 8  ;;  %v11610_v10 = vld [vmem:[#allocation16_spill] sm:$0xff] }
 0x149   :  { %v1485_v7 = vsel %vm11603_vm13, %v1479_v63, 0.0  ;;  %v1523_v20 = vpack.c.bf16 %v1516_v14, %v1515_v29  ;;  %v1517_v51 = vsel %vm11605_vm0, %v1511_v62, 0.0  ;;  %v1391_v34 = vrot.slane %v10328_v48, 6  ;;  %v11612_v61 = vld [vmem:[#allocation11_spill] sm:$0xff] }
 0x14a   :  { %v1423_v17 = vrot.slane %v10328_v48, 7  ;;  %v1471_v23 = vrot.slane %v10328_v48, 1  ;;  %vm11607_vm9 = vcmp.ge.s32.totalorder %v11606_v8, 0  ;;  %v1503_v63 = vrot.slane %v10328_v48, 2  ;;  %8182 = vmatmul.mubr.msk.bf16.gmra.mrb[36].mxu0 %vm42_vm3, %v10339_v24 }
 0x14b   :  { %v1404_v22 = vsel %vm11607_vm9, %v1401_v19, 0.0  ;;  %1527 = vst.msk [vmem:[#allocation2 + $0x1b8] sm:$0xff] %vm42_vm3, %v1523_v20  ;;  %v1386_v13 = vmax.f32 %v1378_v57, 0.0  ;;  %v1376_v53 = vadd.f32 %v9692_v32, %v1368_v30  ;;  %v1393_v62 = vrot.slane %v10322_v0, 6  ;;  %8207 = vmatprep.mubr.msk.bf16.mxu0 %vm42_vm3, %v1873_v40  ;;  %v11608_v30 = vld [vmem:[#allocation15_spill] sm:$0xff] }
 0x14c   :  { %v1398_v54 = vsel %vm631_vm4, %v1390_v6, %v1391_v34  ;;  %v1430_v19 = vsel %vm696_vm5, %v1422_v31, %v1423_v17  ;;  %v1478_v32 = vsel %vm803_vm6, %v1470_v27, %v1471_v23  ;;  %v1425_v4 = vrot.slane %v10322_v0, 7 }
 0x14d   :  { %v1473_v6 = vrot.slane %v10322_v0, 1  ;;  %vm11609_vm13 = vcmp.lt.s32.totalorder %v11608_v30, 8  ;;  %v1510_v31 = vsel %vm869_vm10, %v1502_v33, %v1503_v63  ;;  %vm11611_vm0 = vcmp.lt.s32.totalorder %v11610_v10, 8 }
 0x14e   :  { %v1486_v56 = vsel %vm11609_vm13, %v1478_v32, 0.0  ;;  %v1518_v27 = vsel %vm11611_vm0, %v1510_v31, 0.0  ;;  %v1394_v29 = vrot.slane %v1386_v13, 6  ;;  %v1426_v26 = vrot.slane %v1386_v13, 7 }
 0x14f   :  { %v1492_v41 = vpack.c.bf16 %v1486_v56, %v1485_v7  ;;  %v1524_v14 = vpack.c.bf16 %v1518_v27, %v1517_v51  ;;  %v1462_v57 = vpack.c.bf16 %v1386_v13, %v10322_v0  ;;  %v1474_v36 = vrot.slane %v1386_v13, 1 }
 0x150   :  { %v1506_v20 = vrot.slane %v1386_v13, 2  ;;  %v1395_v40 = vsel %vm631_vm4, %v1393_v62, %v1394_v29  ;;  %v1402_v45 = vsel %vm631_vm4, %v1394_v29, %v1387_v28  ;;  %v1427_v33 = vsel %vm696_vm5, %v1425_v4, %v1426_v26 }
 0x151   :  { %1496 = vst.msk [vmem:[#allocation2 + $0x160] sm:$0xff] %vm42_vm3, %v1492_v41  ;;  %v1434_v7 = vsel %vm696_vm5, %v1426_v26, %v1419_v52  ;;  %vm11613_vm14 = vcmp.ge.s32.totalorder %v11612_v61, 0  ;;  %v1505_v8 = vrot.slane %v10322_v0, 2  ;;  %1528 = vst.msk [vmem:[#allocation2 + $0x1c0] sm:$0xff] %vm42_vm3, %v1524_v14  ;;  %vm11614_vm9 = vcmp.ge.s32.totalorder %v9708_v49, 0  ;;  %v10407_v52 = vld [vmem:[%s11497_s3 + $0x20] sm:$0xff]  }
 0x152   :  { %v1436_v51 = vsel %vm11613_vm14, %v10285_v39, 0.0  ;;  %v1403_v13 = vsel %vm11614_vm9, %v1402_v45, 0.0  ;;  %v1435_v28 = vsel %vm713_vm15, %v1434_v7, 0.0  ;;  %1466 = vst.msk [vmem:[#allocation2 + $0x110] sm:$0xff] %vm42_vm3, %v1462_v57  ;;  %v1475_v39 = vsel %vm803_vm6, %v1473_v6, %v1474_v36  ;;  %8208 = vmatmul.mubr.msk.bf16.vlgmr.msra.gmra.mrb[32].mxu0 %vm42_vm3, %v10417_v2  ;;  %v11621_v26 = vld [vmem:[#allocation14_spill] sm:$0xff] }
 0x153   :  { %v1411_v32 = vpack.c.bf16 %v1404_v22, %v1403_v13  ;;  %v1443_v30 = vpack.c.bf16 %v1436_v51, %v1435_v28  ;;  %v1482_v49 = vsel %vm803_vm6, %v1474_v36, %v1467_v38  ;;  %vm11615_vm15 = vcmp.lt.s32.totalorder %v9722_v12, 8  ;;  %v10431_v38 = vld [vmem:[#allocation2 + $0xd0] sm:$0xff]  ;;  %8226 = vmatpush3.bf16.msra.mxu0 %v10266_v5 }
 0x154   :  { %v1489_v56 = vsel %vm11615_vm15, %v1475_v39, 0.0  ;;  %vm11616_vm13 = vcmp.lt.s32.totalorder %v9724_v55, 8  ;;  %v1507_v22 = vsel %vm869_vm10, %v1505_v8, %v1506_v20  ;;  %v1514_v41 = vsel %vm869_vm10, %v1506_v20, %v1499_v21  ;;  %8211 = vmatprep.mubr.msk.bf16.mxu0 %vm42_vm3, %v10431_v38  ;;  %v11619_v21 = vld [vmem:[#allocation13_spill] sm:$0xff]  ;;  %8245 = vmatprep.subr.bf16.mxu0 %v10407_v52 }
 0x155   :  { %v1490_v31 = vsel %vm11616_vm13, %v1482_v49, 0.0  ;;  %1415 = vst.msk [vmem:[#allocation2 + $0x38] sm:$0xff] %vm42_vm3, %v1411_v32  ;;  %1447 = vst.msk [vmem:[#allocation2 + $0x98] sm:$0xff] %vm42_vm3, %v1443_v30  ;;  %vm11617_vm0 = vcmp.lt.s32.totalorder %v9731_v15, 8  ;;  %vm11618_vm14 = vcmp.lt.s32.totalorder %v9733_v16, 8  ;;  %v1384_v37 = vmax.f32 %v1376_v53, 0.0 }
 0x156   :  { %v1494_v12 = vpack.c.bf16 %v1490_v31, %v1489_v56  ;;  %v1521_v55 = vsel %vm11617_vm0, %v1507_v22, 0.0  ;;  %v1522_v10 = vsel %vm11618_vm14, %v1514_v41, 0.0  ;;  %vm11620_vm9 = vcmp.ge.s32.totalorder %v11619_v21, 0  ;;  %v10531_v56 = vld [vmem:[#allocation2 + $0x130] sm:$0xff]  ;;  %v2245_v31 = vld [vmem:[#allocation2 + $0x180] sm:$0xff]  ;;  %v10540_v22 = vld [vmem:[#allocation2 + $0x138] sm:$0xff] }
 0x157   :  { %v1407_v27 = vsel %vm11620_vm9, %v1398_v54, 0.0  ;;  %v1526_v29 = vpack.c.bf16 %v1522_v10, %v1521_v55  ;;  %vm11622_vm15 = vcmp.ge.s32.totalorder %v11621_v26, 0  ;;  %v1392_v15 = vrot.slane %v1384_v37, 6  ;;  %v10555_v55 = vld [vmem:[#allocation2 + $0x188] sm:$0xff]  ;;  %v1968_v10 = vld [vmem:[#allocation2 + $0xf0] sm:$0xff] }
 0x158   :  { %v1439_v14 = vsel %vm11622_vm15, %v1430_v19, 0.0  ;;  %1498 = vst.msk [vmem:[#allocation2 + $0x170] sm:$0xff] %vm42_vm3, %v1494_v12  ;;  %v1424_v16 = vrot.slane %v1384_v37, 7  ;;  %v1461_v53 = vpack.c.bf16 %v1384_v37, %v10328_v48  ;;  %vm11623_vm13 = vcmp.ge.s32.totalorder %v9710_v50, 0  ;;  %v10548_v12 = vld [vmem:[#allocation2 + $0x40] sm:$0xff] }
 0x159   :  { %v1410_v57 = vsel %vm11623_vm13, %v1395_v40, 0.0  ;;  %vm11624_vm0 = vcmp.ge.s32.totalorder %v9714_v9, 0  ;;  %1530 = vst.msk [vmem:[#allocation2 + $0x1d0] sm:$0xff] %vm42_vm3, %v1526_v29  ;;  %v1472_v54 = vrot.slane %v1384_v37, 1  ;;  %v1504_v20 = vrot.slane %v1384_v37, 2  ;;  %v10560_v37 = vld [vmem:[%s11497_s3 + $0x30] sm:$0xff]  }
 0x15a   :  { %v1442_v36 = vsel %vm11624_vm0, %v1427_v33, 0.0  ;;  %v1396_v45 = vsel %vm631_vm4, %v1392_v15, %v1393_v62  ;;  %v1397_v19 = vsel %vm631_vm4, %v1391_v34, %v1392_v15  ;;  %v1428_v7 = vsel %vm696_vm5, %v1424_v16, %v1425_v4  ;;  %1465 = vst.msk [vmem:[#allocation2 + $0x108] sm:$0xff] %vm42_vm3, %v1461_v53  ;;  %v2059_v4 = vld [vmem:[#allocation2 + $0x120] sm:$0xff]  ;;  %v10578_v15 = vld [vmem:[#allocation2 + $0xf8] sm:$0xff] }
 0x15b   :  { %v1429_v50 = vsel %vm696_vm5, %v1423_v17, %v1424_v16  ;;  %v1408_v9 = vsel %vm653_vm2, %v1397_v19, 0.0  ;;  %v1409_v62 = vsel %vm654_vm1, %v1396_v45, 0.0  ;;  %v1441_v33 = vsel %vm719_vm8, %v1428_v7, 0.0  ;;  %v10475_v17 = vld [vmem:[#allocation2 + $0xd8] sm:$0xff]  ;;  %v10585_v53 = vld [vmem:[#allocation2 + $0x100] sm:$0xff] }
 0x15c   :  { %v1440_v40 = vsel %vm718_vm7, %v1429_v50, 0.0  ;;  %v1413_v61 = vpack.c.bf16 %v1408_v9, %v1407_v27  ;;  %v1414_v51 = vpack.c.bf16 %v1410_v57, %v1409_v62  ;;  %v1446_v28 = vpack.c.bf16 %v1442_v36, %v1441_v33  ;;  %v10491_v30 = vld [vmem:[#allocation2 + $0x98] sm:$0xff]  ;;  %8212 = vmatmul.mubr.msk.bf16.gmra.mrb[36].mxu0 %vm42_vm3, %v10475_v17  ;;  %v10566_v27 = vld [vmem:[#allocation2 + $0x190] sm:$0xff]  ;;  %v2435_v7 = vld [vmem:[#allocation2 + $0x20] sm:$0xf] }
 0x15d   :  { %v1445_v13 = vpack.c.bf16 %v1440_v40, %v1439_v14  ;;  %v1476_v58 = vsel %vm803_vm6, %v1472_v54, %v1473_v6  ;;  %v1477_v18 = vsel %vm803_vm6, %v1471_v23, %v1472_v54  ;;  %v1508_v25 = vsel %vm869_vm10, %v1504_v20, %v1505_v8  ;;  %8188 = vmatmul.mubr.msk.bf16.vlgmr.msra.gmra.mrb[32].mxu1 %vm42_vm3, %v10491_v30  ;;  %v10509_v6 = vld [vmem:[#allocation2 + $0xa0] sm:$0xff]  ;;  %v10542_v41 = vld [vmem:[#allocation2 + $0x38] sm:$0xff] }
 0x15e   :  { %v1509_v32 = vsel %vm869_vm10, %v1503_v63, %v1504_v20  ;;  %1417 = vst.msk [vmem:[#allocation2 + $0x48] sm:$0xff] %vm42_vm3, %v1413_v61  ;;  %1418 = vst.msk [vmem:[#allocation2 + $0x50] sm:$0xff] %vm42_vm3, %v1414_v51  ;;  %v1487_v0 = vsel %vm832_vm11, %v1477_v18, 0.0  ;;  %v1488_v48 = vsel %vm833_vm12, %v1476_v58, 0.0  ;;  %vm11626_vm4 = vcmp.lt.s32.totalorder %v9768_v1, 8  ;;  %8227 = vmatprep.mubr.msk.bf16.mxu0 %vm42_vm3, %v2059_v4  ;;  %8191 = vmatprep.mubr.msk.bf16.mxu1 %vm42_vm3, %v10509_v6  ;;  %v1537_v1 = vld [vmem:[#allocation2 + $0x30] sm:$0xff] }
 0x15f   :  { %1449 = vst.msk [vmem:[#allocation2 + $0xa8] sm:$0xff] %vm42_vm3, %v1445_v13  ;;  %1450 = vst.msk [vmem:[#allocation2 + $0xb0] sm:$0xff] %vm42_vm3, %v1446_v28  ;;  %v1519_v23 = vsel %vm11626_vm4, %v1509_v32, 0.0  ;;  %vm11627_vm5 = vcmp.lt.s32.totalorder %v9770_v11, 8  ;;  %v1493_v8 = vpack.c.bf16 %v1488_v48, %v1487_v0  ;;  %8196 = vmatpush3.bf16.msra.mxu1 %v9239_v46  ;;  %v10525_v11 = vld [vmem:[%s11497_s3 + $0x28] sm:$0xff]   ;;  %v2443_v26 = vrot.slane %v10276_v60, 4 }
 0x160   :  { %v1520_v63 = vsel %vm11627_vm5, %v1508_v25, 0.0  ;;  %8215 = vmatprep.subr.bf16.mxu1 %v10147_v44  ;;  %v10576_v14 = vld [vmem:[#allocation2 + $0x198] sm:$0xff]  ;;  %vm2441_vm6 = vcmask 1043456   ;;  %v10593_v57 = vrot.slane %v10339_v24, 4  ;;  %v10596_v36 = vrot.slane %v10291_v43, 4  ;;  %v2154_v20 = vld [vmem:[#allocation2 + $0x150] sm:$0xff] }
 0x161   :  { %v1525_v39 = vpack.c.bf16 %v1520_v63, %v1519_v23  ;;  %1497 = vst.msk [vmem:[#allocation2 + $0x168] sm:$0xff] %vm42_vm3, %v1493_v8  ;;  %v10603_v45 = vld [vmem:[%s11497_s3 + $0x38] sm:$0xff]   ;;  %v10605_v19 = vld [vmem:[#allocation2 + $0x108] sm:$0xff]  ;;  %v2648_v50 = vld [vmem:[#allocation2 + $0x60] sm:$0xf0]  ;;  %v2449_v9 = vrot.slane %v2435_v7, 4 }
 0x162   :  { %v2446_v54 = vsel %vm2441_vm6, %v2443_v26, %v10596_v36  ;;  %v2658_v62 = vrot.slane %v2648_v50, 4  ;;  %v2659_v40 = vrot.slane %v10161_v42, 4  ;;  %v10623_v33 = vld [vmem:[#allocation2 + $0x158] sm:$0xff]  ;;  %v10629_v61 = vld [vmem:[#allocation2 + $0x160] sm:$0xff]  ;;  %v2663_v51 = vrot.slane %v10194_v35, 4  ;;  %v2340_v58 = vld [vmem:[#allocation2 + $0x1b0] sm:$0xff] }
 0x163   :  { %1529 = vst.msk [vmem:[#allocation2 + $0x1c8] sm:$0xff] %vm42_vm3, %v1525_v39  ;;  %v2450_v34 = vsel %vm2441_vm6, %v10593_v57, %v2449_v9  ;;  %v2661_v13 = vrot.slane %v10169_v3, 4  ;;  %v10642_v18 = vld [vmem:[%s11497_s3 + $0x40] sm:$0xff]   ;;  %v2875_v63 = vrot.slane %v10417_v2, 4  ;;  %v10656_v39 = vld [vmem:[#allocation2 + $0x1b8] sm:$0xff]  ;;  %vm6399_vm7 = vcmask 523264  }
 0x164   :  { %8228 = vmatmul.mubr.msk.bf16.vlgmr.msra.gmra.mrb[32].mxu0 %vm42_vm3, %v10520_v47  ;;  %v2660_v4 = vsel %vm2441_vm6, %v2658_v62, %v2659_v40  ;;  %v2652_v32 = vld [vmem:[#allocation2 + $0x80] sm:$0xf]  ;;  %v2864_v0 = vld [vmem:[#allocation2 + $0xc0] sm:$0xf0]  ;;  %vm6560_vm8 = vcmask 516352   ;;  %vm6566_vm10 = vcmask 778752  }
 0x165   :  { %8231 = vmatprep.mubr.msk.bf16.mxu0 %vm42_vm3, %v10531_v56  ;;  %8246 = vmatpush3.bf16.msra.mxu0 %v10407_v52  ;;  %v10562_v21 = vld [vmem:[#allocation2 + $0x48] sm:$0xff]  ;;  %v2662_v28 = vsel %vm2441_vm6, %v2659_v40, %v2661_v13  ;;  %v2665_v48 = vrot.slane %v2652_v32, 4  ;;  %v2874_v23 = vrot.slane %v2864_v0, 4  ;;  %v2868_v7 = vld [vmem:[#allocation2 + $0xe0] sm:$0xf]  ;;  %vm6573_vm11 = vcmask 1041152  }
 0x166   :  { %v10527_v49 = vld [vmem:[#allocation2 + $0xa8] sm:$0xff]  ;;  %8265 = vmatprep.subr.bf16.mxu0 %v10525_v11  ;;  %v3080_v9 = vld [vmem:[#allocation2 + $0x120] sm:$0xf0]  ;;  %v2881_v62 = vrot.slane %v2868_v7, 4  ;;  %v2546_v32 = vld [vmem:[#allocation2 + $0x50] sm:$0xf] }
 0x167   :  { %8192 = vmatmul.mubr.msk.bf16.gmra.mrb[36].mxu1 %vm42_vm3, %v10527_v49  ;;  %v2666_v8 = vsel %vm2441_vm6, %v2663_v51, %v2665_v48  ;;  %v2876_v46 = vsel %vm2441_vm6, %v2874_v23, %v2875_v63  ;;  %v3090_v40 = vrot.slane %v3080_v9, 4  ;;  %v2758_v0 = vld [vmem:[#allocation2 + $0x90] sm:$0xf0]  ;;  %v10723_v48 = vrot.slane %v10531_v56, 4 }
 0x168   :  { %8197 = vmatprep.mubr.msk.bf16.mxu1 %vm42_vm3, %v1537_v1  ;;  %v10644_v25 = vld [vmem:[#allocation2 + $0x168] sm:$0xff]  ;;  %v10662_v1 = vld [vmem:[#allocation2 + $0x1c0] sm:$0xff]  ;;  %v2559_v23 = vrot.slane %v2546_v32, 4  ;;  %vm7246_vm12 = vcmask 33792  }
 0x16c   :  { %8232 = vmatmul.mubr.msk.bf16.gmra.mrb[36].mxu0 %vm42_vm3, %v10540_v22 }
 0x16d   :  { %8247 = vmatprep.mubr.msk.bf16.mxu0 %vm42_vm3, %v2245_v31  ;;  %v2542_v31 = vld [vmem:[#allocation2 + $0x30] sm:$0xf0] }
 0x16f   :  { %8198 = vmatmul.mubr.msk.bf16.vlgmr.msra.gmra.mrb[32].mxu1 %vm42_vm3, %v10542_v41 }
 0x170   :  { %8201 = vmatprep.mubr.msk.bf16.mxu1 %vm42_vm3, %v10548_v12  ;;  %8216 = vmatpush3.bf16.msra.mxu1 %v10147_v44  ;;  %v2431_v44 = vld [vmem:[#allocation2] sm:$0xf0] }
 0x171   :  { %8235 = vmatprep.subr.bf16.mxu1 %v10266_v5  ;;  %v2442_v29 = vrot.slane %v2431_v44, 4  ;;  %v10673_v44 = vrot.slane %v10475_v17, 4 }
 0x173   :  { %v2444_v16 = vsel %vm2441_vm6, %v2442_v29, %v2443_v26  ;;  %v2552_v29 = vrot.slane %v2542_v31, 4  ;;  %v2553_v26 = vrot.slane %v10542_v41, 4 }
 0x174   :  { %8248 = vmatmul.mubr.msk.bf16.vlgmr.msra.gmra.mrb[32].mxu0 %vm42_vm3, %v10555_v55 }
 0x175   :  { %8251 = vmatprep.mubr.msk.bf16.mxu0 %vm42_vm3, %v10566_v27  ;;  %8266 = vmatpush3.bf16.msra.mxu0 %v10525_v11  ;;  %v2554_v50 = vsel %vm2441_vm6, %v2552_v29, %v2553_v26 }
 0x176   :  { %8285 = vmatprep.subr.bf16.mxu0 %v10560_v37 }
 0x177   :  { %8202 = vmatmul.mubr.msk.bf16.gmra.mrb[36].mxu1 %vm42_vm3, %v10562_v21 }
 0x178   :  { %8217 = vmatprep.mubr.msk.bf16.mxu1 %vm42_vm3, %v1968_v10  ;;  %v10669_v10 = vrot.slane %v10431_v38, 4 }
 0x17c   :  { %8252 = vmatmul.mubr.msk.bf16.gmra.mrb[36].mxu0 %vm42_vm3, %v10576_v14 }
 0x17d   :  { %8267 = vmatprep.mubr.msk.bf16.mxu0 %vm42_vm3, %v2444_v16  ;;  %v2878_v16 = vsel %vm2441_vm6, %v2875_v63, %v10669_v10  ;;  %v10727_v63 = vrot.slane %v10540_v22, 4 }
 0x17f   :  { %8218 = vmatmul.mubr.msk.bf16.vlgmr.msra.gmra.mrb[32].mxu1 %vm42_vm3, %v10578_v15 }
 0x180   :  { %8221 = vmatprep.mubr.msk.bf16.mxu1 %vm42_vm3, %v10585_v53  ;;  %8236 = vmatpush3.bf16.msra.mxu1 %v10266_v5  ;;  %v10611_v5 = vsel %vm2441_vm6, %v10596_v36, %v10593_v57 }
 0x181   :  { %8255 = vmatprep.subr.bf16.mxu1 %v10407_v52 }
 0x184   :  { %8268 = vmatmul.mubr.msk.bf16.vlgmr.msra.gmra.mrb[32].mxu0 %vm42_vm3, %v2446_v54  ;;  %v10681_v54 = vld [vmem:[%s11497_s3 + $0x48] sm:$0xff]  }
 0x185   :  { %8271 = vmatprep.mubr.msk.bf16.mxu0 %vm42_vm3, %v10611_v5  ;;  %8286 = vmatpush3.bf16.msra.mxu0 %v10560_v37 }
 0x186   :  { %8305 = vmatprep.subr.bf16.mxu0 %v10603_v45 }
 0x187   :  { %8222 = vmatmul.mubr.msk.bf16.gmra.mrb[36].mxu1 %vm42_vm3, %v10605_v19 }
 0x188   :  { %8237 = vmatprep.mubr.msk.bf16.mxu1 %vm42_vm3, %v2154_v20  ;;  %v10689_v20 = vsel %vm2441_vm6, %v10669_v10, %v10673_v44 }
 0x18c   :  { %8272 = vmatmul.mubr.msk.bf16.gmra.mrb[36].mxu0 %vm42_vm3, %v2450_v34  ;;  %v3091_v34 = vrot.slane %v10520_v47, 4 }
 0x18d   :  { %8287 = vmatprep.mubr.msk.bf16.mxu0 %vm42_vm3, %v2660_v4  ;;  %v10701_v4 = vrot.slane %v10562_v21, 4 }
 0x18e   :  { %v3094_v31 = vsel %vm2441_vm6, %v3091_v34, %v10723_v48 }
 0x18f   :  { %8238 = vmatmul.mubr.msk.bf16.vlgmr.msra.gmra.mrb[32].mxu1 %vm42_vm3, %v10623_v33  ;;  %v2560_v29 = vsel %vm2441_vm6, %v10701_v4, %v2559_v23  ;;  %v2762_v23 = vld [vmem:[#allocation2 + $0xb0] sm:$0xf] }
 0x190   :  { %8241 = vmatprep.mubr.msk.bf16.mxu1 %vm42_vm3, %v10629_v61  ;;  %8256 = vmatpush3.bf16.msra.mxu1 %v10407_v52  ;;  %v2664_v52 = vsel %vm2441_vm6, %v2661_v13, %v2663_v51  ;;  %v10704_v51 = vrot.slane %v10548_v12, 4  ;;  %v2882_v13 = vsel %vm2441_vm6, %v10673_v44, %v2881_v62 }
 0x191   :  { %8275 = vmatprep.subr.bf16.mxu1 %v10525_v11 }
 0x194   :  { %8288 = vmatmul.mubr.msk.bf16.vlgmr.msra.gmra.mrb[32].mxu0 %vm42_vm3, %v2662_v28  ;;  %v2556_v28 = vsel %vm2441_vm6, %v2553_v26, %v10704_v51  ;;  %v10743_v26 = vsel %vm2441_vm6, %v10723_v48, %v10727_v63 }
 0x195   :  { %8291 = vmatprep.mubr.msk.bf16.mxu0 %vm42_vm3, %v2664_v52  ;;  %8306 = vmatpush3.bf16.msra.mxu0 %v10603_v45  ;;  %v10716_v52 = vsel %vm2441_vm6, %v10704_v51, %v10701_v4 }
 0x196   :  { %8325 = vmatprep.subr.bf16.mxu0 %v10642_v18 }
 0x197   :  { %8242 = vmatmul.mubr.msk.bf16.gmra.mrb[36].mxu1 %vm42_vm3, %v10644_v25 }
 0x198   :  { %8257 = vmatprep.mubr.msk.bf16.mxu1 %vm42_vm3, %v2340_v58  ;;  %v3092_v58 = vsel %vm2441_vm6, %v3090_v40, %v3091_v34  ;;  %v3307_v40 = vrot.slane %v10555_v55, 4  ;;  %v10754_v34 = vrot.slane %v10527_v49, 4 }
 0x19c   :  { %8292 = vmatmul.mubr.msk.bf16.gmra.mrb[36].mxu0 %vm42_vm3, %v2666_v8  ;;  %v2768_v8 = vrot.slane %v2758_v0, 4 }
 0x19d   :  { %8307 = vmatprep.mubr.msk.bf16.mxu0 %vm42_vm3, %v2876_v46  ;;  %v2769_v46 = vrot.slane %v10491_v30, 4 }
 0x19f   :  { %8258 = vmatmul.mubr.msk.bf16.vlgmr.msra.gmra.mrb[32].mxu1 %vm42_vm3, %v10656_v39  ;;  %v2770_v7 = vsel %vm2441_vm6, %v2768_v8, %v2769_v46  ;;  %v2974_v8 = vld [vmem:[#allocation2 + $0xf0] sm:$0xf0] }
 0x1a0   :  { %8261 = vmatprep.mubr.msk.bf16.mxu1 %vm42_vm3, %v10662_v1  ;;  %8276 = vmatpush3.bf16.msra.mxu1 %v10525_v11  ;;  %v10683_v11 = vld [vmem:[#allocation2 + $0x1c8] sm:$0xff] }
 0x1a1   :  { %8295 = vmatprep.subr.bf16.mxu1 %v10560_v37 }
 0x1a4   :  { %8308 = vmatmul.mubr.msk.bf16.vlgmr.msra.gmra.mrb[32].mxu0 %vm42_vm3, %v2878_v16  ;;  %v3084_v16 = vld [vmem:[#allocation2 + $0x140] sm:$0xf] }
 0x1a5   :  { %8311 = vmatprep.mubr.msk.bf16.mxu0 %vm42_vm3, %v10689_v20  ;;  %8326 = vmatpush3.bf16.msra.mxu0 %v10642_v18  ;;  %v3097_v9 = vrot.slane %v3084_v16, 4  ;;  %v2984_v16 = vrot.slane %v2974_v8, 4 }
 0x1a6   :  { %8345 = vmatprep.subr.bf16.mxu0 %v10681_v54 }
 0x1a7   :  { %8262 = vmatmul.mubr.msk.bf16.gmra.mrb[36].mxu1 %vm42_vm3, %v10683_v11 }
 0x1a8   :  { %8277 = vmatprep.mubr.msk.bf16.mxu1 %vm42_vm3, %v2554_v50  ;;  %v3296_v50 = vld [vmem:[#allocation2 + $0x180] sm:$0xf0] }
 0x1a9   :  { %v3306_v62 = vrot.slane %v3296_v50, 4 }
 0x1ab   :  { %v3308_v32 = vsel %vm2441_vm6, %v3306_v62, %v3307_v40 }
 0x1ac   :  { %8312 = vmatmul.mubr.msk.bf16.gmra.mrb[36].mxu0 %vm42_vm3, %v2882_v13  ;;  %v10757_v13 = vrot.slane %v10509_v6, 4 }
 0x1ad   :  { %8327 = vmatprep.mubr.msk.bf16.mxu0 %vm42_vm3, %v3092_v58 }
 0x1ae   :  { %v2772_v58 = vsel %vm2441_vm6, %v2769_v46, %v10757_v13  ;;  %v10769_v0 = vsel %vm2441_vm6, %v10757_v13, %v10754_v34  ;;  %v10776_v46 = vrot.slane %v10566_v27, 4 }
 0x1af   :  { %8278 = vmatmul.mubr.msk.bf16.vlgmr.msra.gmra.mrb[32].mxu1 %vm42_vm3, %v2556_v28  ;;  %v3098_v28 = vsel %vm2441_vm6, %v10727_v63, %v3097_v9 }
 0x1b0   :  { %8281 = vmatprep.mubr.msk.bf16.mxu1 %vm42_vm3, %v10716_v52  ;;  %8296 = vmatpush3.bf16.msra.mxu1 %v10560_v37  ;;  %v10735_v37 = vld [vmem:[%s11497_s3 + $0x50] sm:$0xff]   ;;  %v3310_v50 = vsel %vm2441_vm6, %v3307_v40, %v10776_v46 }
 0x1b1   :  { %8315 = vmatprep.subr.bf16.mxu1 %v10603_v45 }
 0x1b4   :  { %8328 = vmatmul.mubr.msk.bf16.vlgmr.msra.gmra.mrb[32].mxu0 %vm42_vm3, %v3094_v31  ;;  %v2775_v31 = vrot.slane %v2762_v23, 4  ;;  %v10809_v23 = vrot.slane %v10605_v19, 4 }
 0x1b5   :  { %8331 = vmatprep.mubr.msk.bf16.mxu0 %vm42_vm3, %v10743_v26  ;;  %8346 = vmatpush3.bf16.msra.mxu0 %v10681_v54 }
 0x1b6   :  { %8365 = vmatprep.subr.bf16.mxu0 %v10735_v37  ;;  %v2776_v9 = vsel %vm2441_vm6, %v10754_v34, %v2775_v31 }
 0x1b7   :  { %8282 = vmatmul.mubr.msk.bf16.gmra.mrb[36].mxu1 %vm42_vm3, %v2560_v29  ;;  %v10780_v29 = vrot.slane %v10576_v14, 4 }
 0x1b8   :  { %8297 = vmatprep.mubr.msk.bf16.mxu1 %vm42_vm3, %v2770_v7  ;;  %v2985_v7 = vrot.slane %v10578_v15, 4 }
 0x1b9   :  { %v10796_v62 = vsel %vm2441_vm6, %v10776_v46, %v10780_v29 }
 0x1ba   :  { %v2986_v40 = vsel %vm2441_vm6, %v2984_v16, %v2985_v7 }
 0x1bc   :  { %8332 = vmatmul.mubr.msk.bf16.gmra.mrb[36].mxu0 %vm42_vm3, %v3098_v28  ;;  %v3300_v28 = vld [vmem:[#allocation2 + $0x1a0] sm:$0xf] }
 0x1bd   :  { %8347 = vmatprep.mubr.msk.bf16.mxu0 %vm42_vm3, %v3308_v32  ;;  %v10806_v32 = vrot.slane %v10585_v53, 4 }
 0x1bf   :  { %8298 = vmatmul.mubr.msk.bf16.vlgmr.msra.gmra.mrb[32].mxu1 %vm42_vm3, %v2772_v58  ;;  %v3313_v58 = vrot.slane %v3300_v28, 4  ;;  %v2988_v31 = vsel %vm2441_vm6, %v2985_v7, %v10806_v32  ;;  %v10820_v16 = vsel %vm2441_vm6, %v10806_v32, %v10809_v23 }
 0x1c0   :  { %8301 = vmatprep.mubr.msk.bf16.mxu1 %vm42_vm3, %v10769_v0  ;;  %8316 = vmatpush3.bf16.msra.mxu1 %v10603_v45  ;;  %v10788_v45 = vld [vmem:[%s11497_s3 + $0x58] sm:$0xff]  }
 0x1c1   :  { %8335 = vmatprep.subr.bf16.mxu1 %v10642_v18  ;;  %v3314_v8 = vsel %vm2441_vm6, %v10780_v29, %v3313_v58  ;;  %v10832_v58 = vld [vmem:[%s11497_s3 + $0x60] sm:$0xff]  }
 0x1c4   :  { %8348 = vmatmul.mubr.msk.bf16.vlgmr.msra.gmra.mrb[32].mxu0 %vm42_vm3, %v3310_v50  ;;  %v2978_v50 = vld [vmem:[#allocation2 + $0x110] sm:$0xf] }
 0x1c5   :  { %8351 = vmatprep.mubr.msk.bf16.mxu0 %vm42_vm3, %v10796_v62  ;;  %8366 = vmatpush3.bf16.msra.mxu0 %v10735_v37  ;;  %v2991_v7 = vrot.slane %v2978_v50, 4 }
 0x1c6   :  { %8385 = vmatprep.subr.bf16.mxu0 %v10788_v45 }
 0x1c7   :  { %8302 = vmatmul.mubr.msk.bf16.gmra.mrb[36].mxu1 %vm42_vm3, %v2776_v9  ;;  %v3190_v9 = vld [vmem:[#allocation2 + $0x150] sm:$0xf0] }
 0x1c8   :  { %8317 = vmatprep.mubr.msk.bf16.mxu1 %vm42_vm3, %v2986_v40  ;;  %v3200_v28 = vrot.slane %v3190_v9, 4  ;;  %v3201_v40 = vrot.slane %v10623_v33, 4  ;;  %v3194_v9 = vld [vmem:[#allocation2 + $0x170] sm:$0xf] }
 0x1cc   :  { %8352 = vmatmul.mubr.msk.bf16.gmra.mrb[36].mxu0 %vm42_vm3, %v3314_v8  ;;  %v10846_v8 = vrot.slane %v10629_v61, 4 }
 0x1cd   :  { %8367 = vmatprep.mubr.msk.bf16.mxu0 %vm42_vm3, %v10276_v60  ;;  %v2992_v60 = vsel %vm2441_vm6, %v10809_v23, %v2991_v7  ;;  %v3406_v7 = vld [vmem:[#allocation2 + $0x1b0] sm:$0xf0] }
 0x1ce   :  { %v3204_v50 = vsel %vm2441_vm6, %v3201_v40, %v10846_v8 }
 0x1cf   :  { %8318 = vmatmul.mubr.msk.bf16.vlgmr.msra.gmra.mrb[32].mxu1 %vm42_vm3, %v2988_v31  ;;  %v10849_v31 = vrot.slane %v10644_v25, 4 }
 0x1d0   :  { %8321 = vmatprep.mubr.msk.bf16.mxu1 %vm42_vm3, %v10820_v16  ;;  %8336 = vmatpush3.bf16.msra.mxu1 %v10642_v18  ;;  %v3202_v18 = vsel %vm2441_vm6, %v3200_v28, %v3201_v40  ;;  %v3207_v28 = vrot.slane %v3194_v9, 4  ;;  %v3416_v40 = vrot.slane %v3406_v7, 4  ;;  %v10890_v9 = vrot.slane %v10683_v11, 4 }
 0x1d1   :  { %8355 = vmatprep.subr.bf16.mxu1 %v10681_v54 }
 0x1d4   :  { %8368 = vmatmul.mubr.msk.bf16.vlgmr.msra.gmra.mrb[32].mxu0 %vm42_vm3, %v10291_v43  ;;  %v10851_v43 = vld [vmem:[#allocation2 + $0x20] sm:$0xff] }
 0x1d5   :  { %8371 = vmatprep.mubr.msk.bf16.mxu0 %vm42_vm3, %v10339_v24  ;;  %8386 = vmatpush3.bf16.msra.mxu0 %v10788_v45  ;;  %v10861_v24 = vsel %vm2441_vm6, %v10846_v8, %v10849_v31 }
 0x1d6   :  { %8405 = vmatprep.subr.bf16.mxu0 %v10832_v58 }
 0x1d7   :  { %8322 = vmatmul.mubr.msk.bf16.gmra.mrb[36].mxu1 %vm42_vm3, %v2992_v60  ;;  %v3417_v60 = vrot.slane %v10656_v39, 4 }
 0x1d8   :  { %8337 = vmatprep.mubr.msk.bf16.mxu1 %vm42_vm3, %v3202_v18  ;;  %v10873_v18 = vld [vmem:[%s11497_s3 + $0x68] sm:$0xff]  }
 0x1dc   :  { %8372 = vmatmul.mubr.msk.bf16.gmra.mrb[36].mxu0 %vm42_vm3, %v10851_v43 }
 0x1dd   :  { %8387 = vmatprep.mubr.msk.bf16.mxu0 %vm42_vm3, %v10161_v42  ;;  %v3208_v42 = vsel %vm2441_vm6, %v10849_v31, %v3207_v28  ;;  %v3410_v28 = vld [vmem:[#allocation2 + $0x1d0] sm:$0xf] }
 0x1df   :  { %8338 = vmatmul.mubr.msk.bf16.vlgmr.msra.gmra.mrb[32].mxu1 %vm42_vm3, %v3204_v50  ;;  %v10887_v50 = vrot.slane %v10662_v1, 4 }
 0x1e0   :  { %8341 = vmatprep.mubr.msk.bf16.mxu1 %vm42_vm3, %v10861_v24  ;;  %8356 = vmatpush3.bf16.msra.mxu1 %v10681_v54  ;;  %v3418_v54 = vsel %vm2441_vm6, %v3416_v40, %v3417_v60  ;;  %v3423_v40 = vrot.slane %v3410_v28, 4 }
 0x1e1   :  { %8375 = vmatprep.subr.bf16.mxu1 %v10735_v37  ;;  %v3420_v7 = vsel %vm2441_vm6, %v3417_v60, %v10887_v50  ;;  %v10913_v60 = vld [vmem:[%s11497_s3 + $0x70] sm:$0xff]  }
 0x1e4   :  { %8388 = vmatmul.mubr.msk.bf16.vlgmr.msra.gmra.mrb[32].mxu0 %vm42_vm3, %v10169_v3  ;;  %v10892_v3 = vld [vmem:[#allocation2 + $0x80] sm:$0xff] }
 0x1e5   :  { %8391 = vmatprep.mubr.msk.bf16.mxu0 %vm42_vm3, %v10194_v35  ;;  %8406 = vmatpush3.bf16.msra.mxu0 %v10832_v58  ;;  %v10902_v35 = vsel %vm2441_vm6, %v10887_v50, %v10890_v9 }
 0x1e6   :  { %8425 = vmatprep.subr.bf16.mxu0 %v10873_v18 }
 0x1e7   :  { %8342 = vmatmul.mubr.msk.bf16.gmra.mrb[36].mxu1 %vm42_vm3, %v3208_v42  ;;  %v3424_v42 = vsel %vm2441_vm6, %v10890_v9, %v3423_v40  ;;  %v4416_v40 = vld [vmem:[#allocation2 + $0x28] sm:$0xf] }
 0x1e8   :  { %8357 = vmatprep.mubr.msk.bf16.mxu1 %vm42_vm3, %v3418_v54 }
 0x1ec   :  { %8392 = vmatmul.mubr.msk.bf16.gmra.mrb[36].mxu0 %vm42_vm3, %v10892_v3 }
 0x1ed   :  { %8407 = vmatprep.mubr.msk.bf16.mxu0 %vm42_vm3, %v10417_v2  ;;  %v10926_v2 = vld [vmem:[#allocation2 + $0xe0] sm:$0xff] }
 0x1ef   :  { %8358 = vmatmul.mubr.msk.bf16.vlgmr.msra.gmra.mrb[32].mxu1 %vm42_vm3, %v3420_v7  ;;  %v11001_v7 = vld [vmem:[%s11497_s3 + $0x88] sm:$0xff]  }
 0x1f0   :  { %8361 = vmatprep.mubr.msk.bf16.mxu1 %vm42_vm3, %v10902_v35  ;;  %8376 = vmatpush3.bf16.msra.mxu1 %v10735_v37  ;;  %v10972_v37 = vld [vmem:[#allocation2 + $0xb0] sm:$0xff] }
 0x1f1   :  { %8395 = vmatprep.subr.bf16.mxu1 %v10788_v45 }
 0x1f4   :  { %8408 = vmatmul.mubr.msk.bf16.vlgmr.msra.gmra.mrb[32].mxu0 %vm42_vm3, %v10431_v38  ;;  %v10941_v38 = vld [vmem:[%s11497_s3 + $0x78] sm:$0xff]  }
 0x1f5   :  { %8411 = vmatprep.mubr.msk.bf16.mxu0 %vm42_vm3, %v10475_v17  ;;  %8426 = vmatpush3.bf16.msra.mxu0 %v10873_v18 }
 0x1f6   :  { %8445 = vmatprep.subr.bf16.mxu0 %v10913_v60 }
 0x1f7   :  { %8362 = vmatmul.mubr.msk.bf16.gmra.mrb[36].mxu1 %vm42_vm3, %v3424_v42  ;;  %v4429_v42 = vrot.slane %v4416_v40, 4 }
 0x1f8   :  { %8377 = vmatprep.mubr.msk.bf16.mxu1 %vm42_vm3, %v10542_v41  ;;  %v10943_v41 = vld [vmem:[#allocation2 + $0x50] sm:$0xff] }
 0x1fc   :  { %8412 = vmatmul.mubr.msk.bf16.gmra.mrb[36].mxu0 %vm42_vm3, %v10926_v2 }
 0x1fd   :  { %8427 = vmatprep.mubr.msk.bf16.mxu0 %vm42_vm3, %v10520_v47  ;;  %v10955_v47 = vld [vmem:[#allocation2 + $0x140] sm:$0xff] }
 0x1ff   :  { %8378 = vmatmul.mubr.msk.bf16.vlgmr.msra.gmra.mrb[32].mxu1 %vm42_vm3, %v10548_v12 }
 0x200   :  { %8381 = vmatprep.mubr.msk.bf16.mxu1 %vm42_vm3, %v10562_v21  ;;  %8396 = vmatpush3.bf16.msra.mxu1 %v10788_v45 }
 0x201   :  { %8415 = vmatprep.subr.bf16.mxu1 %v10832_v58 }
 0x204   :  { %8428 = vmatmul.mubr.msk.bf16.vlgmr.msra.gmra.mrb[32].mxu0 %vm42_vm3, %v10531_v56 }
 0x205   :  { %8431 = vmatprep.mubr.msk.bf16.mxu0 %vm42_vm3, %v10540_v22  ;;  %8446 = vmatpush3.bf16.msra.mxu0 %v10913_v60 }
 0x206   :  { %8465 = vmatprep.subr.bf16.mxu0 %v10941_v38 }
 0x207   :  { %8382 = vmatmul.mubr.msk.bf16.gmra.mrb[36].mxu1 %vm42_vm3, %v10943_v41 }
 0x208   :  { %8397 = vmatprep.mubr.msk.bf16.mxu1 %vm42_vm3, %v10491_v30  ;;  %v10970_v30 = vld [vmem:[%s11497_s3 + $0x80] sm:$0xff]  }
 0x20c   :  { %8432 = vmatmul.mubr.msk.bf16.gmra.mrb[36].mxu0 %vm42_vm3, %v10955_v47 }
 0x20d   :  { %8447 = vmatprep.mubr.msk.bf16.mxu0 %vm42_vm3, %v10555_v55  ;;  %v4412_v55 = vld [vmem:[#allocation2 + $0x8] sm:$0xf0] }
 0x20e   :  { %v4422_v45 = vrot.slane %v4412_v55, 4  ;;  %v11015_v55 = vld [vmem:[#allocation2 + $0x70] sm:$0xff] }
 0x20f   :  { %8398 = vmatmul.mubr.msk.bf16.vlgmr.msra.gmra.mrb[32].mxu1 %vm42_vm3, %v10509_v6 }
 0x210   :  { %8401 = vmatprep.mubr.msk.bf16.mxu1 %vm42_vm3, %v10527_v49  ;;  %8416 = vmatpush3.bf16.msra.mxu1 %v10832_v58  ;;  %v10984_v58 = vld [vmem:[#allocation2 + $0x1a0] sm:$0xff]  ;;  %v4424_v54 = vsel %vm2441_vm6, %v4422_v45, %v10596_v36  ;;  %v11003_v36 = vld [vmem:[#allocation2 + $0x110] sm:$0xff] }
 0x211   :  { %8435 = vmatprep.subr.bf16.mxu1 %v10873_v18 }
 0x214   :  { %8448 = vmatmul.mubr.msk.bf16.vlgmr.msra.gmra.mrb[32].mxu0 %vm42_vm3, %v10566_v27 }
 0x215   :  { %8451 = vmatprep.mubr.msk.bf16.mxu0 %vm42_vm3, %v10576_v14  ;;  %8466 = vmatpush3.bf16.msra.mxu0 %v10941_v38 }
 0x216   :  { %8485 = vmatprep.subr.bf16.mxu0 %v10970_v30 }
 0x217   :  { %8402 = vmatmul.mubr.msk.bf16.gmra.mrb[36].mxu1 %vm42_vm3, %v10972_v37 }
 0x218   :  { %8417 = vmatprep.mubr.msk.bf16.mxu1 %vm42_vm3, %v10578_v15  ;;  %v4427_v15 = vrot.slane %v10851_v43, 4 }
 0x21a   :  { %v4428_v28 = vsel %vm2441_vm6, %v10593_v57, %v4427_v15  ;;  %v4639_v57 = vrot.slane %v11015_v55, 4  ;;  %v4430_v45 = vsel %vm2441_vm6, %v4427_v15, %v4429_v42  ;;  %v4643_v15 = vrot.slane %v10892_v3, 4  ;;  %v11039_v42 = vld [vmem:[#allocation2 + $0x170] sm:$0xff] }
 0x21c   :  { %8452 = vmatmul.mubr.msk.bf16.gmra.mrb[36].mxu0 %vm42_vm3, %v10984_v58 }
 0x21d   :  { %8467 = vmatprep.mubr.msk.bf16.mxu0 %vm42_vm3, %v4424_v54 }
 0x21f   :  { %8418 = vmatmul.mubr.msk.bf16.vlgmr.msra.gmra.mrb[32].mxu1 %vm42_vm3, %v10585_v53 }
 0x220   :  { %8421 = vmatprep.mubr.msk.bf16.mxu1 %vm42_vm3, %v10605_v19  ;;  %8436 = vmatpush3.bf16.msra.mxu1 %v10873_v18  ;;  %v4628_v18 = vld [vmem:[#allocation2 + $0x68] sm:$0xf0] }
 0x221   :  { %8455 = vmatprep.subr.bf16.mxu1 %v10913_v60 }
 0x224   :  { %8468 = vmatmul.mubr.msk.bf16.vlgmr.msra.gmra.mrb[32].mxu0 %vm42_vm3, %v10611_v5  ;;  %v4638_v5 = vrot.slane %v4628_v18, 4  ;;  %v11037_v18 = vld [vmem:[%s11497_s3 + $0x90] sm:$0xff]  }
 0x225   :  { %8471 = vmatprep.mubr.msk.bf16.mxu0 %vm42_vm3, %v4428_v28  ;;  %8486 = vmatpush3.bf16.msra.mxu0 %v10970_v30  ;;  %v11022_v28 = vld [vmem:[#allocation2 + $0x78] sm:$0xff] }
 0x226   :  { %8505 = vmatprep.subr.bf16.mxu0 %v11001_v7  ;;  %v4640_v54 = vsel %vm2441_vm6, %v4638_v5, %v4639_v57 }
 0x227   :  { %8422 = vmatmul.mubr.msk.bf16.gmra.mrb[36].mxu1 %vm42_vm3, %v11003_v36 }
 0x228   :  { %8437 = vmatprep.mubr.msk.bf16.mxu1 %vm42_vm3, %v10623_v33  ;;  %v4641_v33 = vrot.slane %v11022_v28, 4 }
 0x22a   :  { %v4642_v40 = vsel %vm2441_vm6, %v4639_v57, %v4641_v33  ;;  %v4644_v5 = vsel %vm2441_vm6, %v4641_v33, %v4643_v15 }
 0x22c   :  { %8472 = vmatmul.mubr.msk.bf16.gmra.mrb[36].mxu0 %vm42_vm3, %v4430_v45  ;;  %v4844_v45 = vld [vmem:[#allocation2 + $0xc8] sm:$0xf0] }
 0x22d   :  { %8487 = vmatprep.mubr.msk.bf16.mxu0 %vm42_vm3, %v4640_v54  ;;  %v4854_v54 = vrot.slane %v4844_v45, 4 }
 0x22f   :  { %8438 = vmatmul.mubr.msk.bf16.vlgmr.msra.gmra.mrb[32].mxu1 %vm42_vm3, %v10629_v61  ;;  %v4856_v33 = vsel %vm2441_vm6, %v4854_v54, %v10669_v10  ;;  %v11065_v10 = vld [vmem:[%s11497_s3 + $0x98] sm:$0xff]  }
 0x230   :  { %8441 = vmatprep.mubr.msk.bf16.mxu1 %vm42_vm3, %v10644_v25  ;;  %8456 = vmatpush3.bf16.msra.mxu1 %v10913_v60  ;;  %v4632_v60 = vld [vmem:[#allocation2 + $0x88] sm:$0xf] }
 0x231   :  { %8475 = vmatprep.subr.bf16.mxu1 %v10941_v38  ;;  %v4645_v57 = vrot.slane %v4632_v60, 4  ;;  %v11067_v60 = vld [vmem:[#allocation2 + $0x1d0] sm:$0xff] }
 0x234   :  { %8488 = vmatmul.mubr.msk.bf16.vlgmr.msra.gmra.mrb[32].mxu0 %vm42_vm3, %v4642_v40  ;;  %v4646_v40 = vsel %vm2441_vm6, %v4643_v15, %v4645_v57  ;;  %v4859_v15 = vrot.slane %v10926_v2, 4 }
 0x235   :  { %8491 = vmatprep.mubr.msk.bf16.mxu0 %vm42_vm3, %v4644_v5  ;;  %8506 = vmatpush3.bf16.msra.mxu0 %v11001_v7 }
 0x236   :  { %8525 = vmatprep.subr.bf16.mxu0 %v11037_v18  ;;  %v4860_v45 = vsel %vm2441_vm6, %v10673_v44, %v4859_v15 }
 0x237   :  { %8442 = vmatmul.mubr.msk.bf16.gmra.mrb[36].mxu1 %vm42_vm3, %v11039_v42 }
 0x238   :  { %8457 = vmatprep.mubr.msk.bf16.mxu1 %vm42_vm3, %v10656_v39  ;;  %v4522_v39 = vld [vmem:[#allocation2 + $0x38] sm:$0xf0] }
 0x239   :  { %v4532_v5 = vrot.slane %v4522_v39, 4 }
 0x23b   :  { %v4534_v57 = vsel %vm2441_vm6, %v4532_v5, %v10704_v51  ;;  %v4526_v5 = vld [vmem:[#allocation2 + $0x58] sm:$0xf] }
 0x23c   :  { %8492 = vmatmul.mubr.msk.bf16.gmra.mrb[36].mxu0 %vm42_vm3, %v4646_v40  ;;  %v5060_v40 = vld [vmem:[#allocation2 + $0x128] sm:$0xf0] }
 0x23d   :  { %8507 = vmatprep.mubr.msk.bf16.mxu0 %vm42_vm3, %v4856_v33  ;;  %v5070_v44 = vrot.slane %v5060_v40, 4 }
 0x23f   :  { %8458 = vmatmul.mubr.msk.bf16.vlgmr.msra.gmra.mrb[32].mxu1 %vm42_vm3, %v10662_v1  ;;  %v5072_v51 = vsel %vm2441_vm6, %v5070_v44, %v10723_v48 }
 0x240   :  { %8461 = vmatprep.mubr.msk.bf16.mxu1 %vm42_vm3, %v10683_v11  ;;  %8476 = vmatpush3.bf16.msra.mxu1 %v10941_v38  ;;  %v4848_v38 = vld [vmem:[#allocation2 + $0xe8] sm:$0xf] }
 0x241   :  { %8495 = vmatprep.subr.bf16.mxu1 %v10970_v30  ;;  %v4861_v54 = vrot.slane %v4848_v38, 4  ;;  %v5075_v38 = vrot.slane %v10955_v47, 4 }
 0x243   :  { %v4862_v33 = vsel %vm2441_vm6, %v4859_v15, %v4861_v54  ;;  %v4539_v15 = vrot.slane %v4526_v5, 4 }
 0x244   :  { %8508 = vmatmul.mubr.msk.bf16.vlgmr.msra.gmra.mrb[32].mxu0 %vm42_vm3, %v10689_v20  ;;  %v4537_v20 = vrot.slane %v10943_v41, 4 }
 0x245   :  { %8511 = vmatprep.mubr.msk.bf16.mxu0 %vm42_vm3, %v4860_v45  ;;  %8526 = vmatpush3.bf16.msra.mxu0 %v11037_v18  ;;  %v4738_v45 = vld [vmem:[#allocation2 + $0x98] sm:$0xf0] }
 0x246   :  { %8545 = vmatprep.subr.bf16.mxu0 %v11065_v10  ;;  %v4538_v39 = vsel %vm2441_vm6, %v10701_v4, %v4537_v20  ;;  %v4748_v48 = vrot.slane %v4738_v45, 4  ;;  %v4540_v4 = vsel %vm2441_vm6, %v4537_v20, %v4539_v15  ;;  %v5276_v20 = vld [vmem:[#allocation2 + $0x188] sm:$0xf0]  ;;  %v5291_v45 = vrot.slane %v10984_v58, 4  ;;  %v5280_v15 = vld [vmem:[#allocation2 + $0x1a8] sm:$0xf] }
 0x247   :  { %8462 = vmatmul.mubr.msk.bf16.gmra.mrb[36].mxu1 %vm42_vm3, %v11067_v60  ;;  %v5286_v44 = vrot.slane %v5276_v20, 4  ;;  %v9241_v20 = vld [vmem:[#allocation2 + $0x18] sm:$0xff] }
 0x248   :  { %8477 = vmatprep.mubr.msk.bf16.mxu1 %vm42_vm3, %v4534_v57  ;;  %v5064_v57 = vld [vmem:[#allocation2 + $0x148] sm:$0xf]  ;;  %v4750_v54 = vsel %vm2441_vm6, %v4748_v48, %v10757_v13  ;;  %v5293_v48 = vrot.slane %v5280_v15, 4 }
 0x249   :  { %v5077_v40 = vrot.slane %v5064_v57, 4  ;;  %v5288_v13 = vsel %vm2441_vm6, %v5286_v44, %v10776_v46  ;;  %v5185_v44 = vrot.slane %v11039_v42, 4 }
 0x24c   :  { %8512 = vmatmul.mubr.msk.bf16.gmra.mrb[36].mxu0 %vm42_vm3, %v4862_v33 }
 0x24d   :  { %8527 = vmatprep.mubr.msk.bf16.mxu0 %vm42_vm3, %v5072_v51  ;;  %v4742_v51 = vld [vmem:[#allocation2 + $0xb8] sm:$0xf] }
 0x24e   :  { %v4755_v5 = vrot.slane %v4742_v51, 4 }
 0x24f   :  { %8478 = vmatmul.mubr.msk.bf16.vlgmr.msra.gmra.mrb[32].mxu1 %vm42_vm3, %v10716_v52  ;;  %v11098_v52 = vld [vmem:[%s11497_s3 + $0xa0] sm:$0xff]  }
 0x250   :  { %8481 = vmatprep.mubr.msk.bf16.mxu1 %vm42_vm3, %v4538_v39  ;;  %8496 = vmatpush3.bf16.msra.mxu1 %v10970_v30  ;;  %v5076_v30 = vsel %vm2441_vm6, %v10727_v63, %v5075_v38  ;;  %v5078_v63 = vsel %vm2441_vm6, %v5075_v38, %v5077_v40  ;;  %v4954_v39 = vld [vmem:[#allocation2 + $0xf8] sm:$0xf0] }
 0x251   :  { %8515 = vmatprep.subr.bf16.mxu1 %v11001_v7  ;;  %v4964_v46 = vrot.slane %v4954_v39, 4 }
 0x253   :  { %v4966_v38 = vsel %vm2441_vm6, %v4964_v46, %v10806_v32  ;;  %v9240_v32 = vld [vmem:[#allocation2 + $0x10] sm:$0xff] }
 0x254   :  { %8528 = vmatmul.mubr.msk.bf16.vlgmr.msra.gmra.mrb[32].mxu0 %vm42_vm3, %v10743_v26  ;;  %v4753_v26 = vrot.slane %v10972_v37, 4  ;;  %v6396_v46 = vld [vmem:[%s11499_s5 + $0x30] sm:$0xff] }
 0x255   :  { %8531 = vmatprep.mubr.msk.bf16.mxu0 %vm42_vm3, %v5076_v30  ;;  %8546 = vmatpush3.bf16.msra.mxu0 %v11065_v10  ;;  %v4958_v30 = vld [vmem:[#allocation2 + $0x118] sm:$0xf] }
 0x256   :  { %8565 = vmatprep.subr.bf16.mxu0 %v11098_v52  ;;  %v4754_v33 = vsel %vm2441_vm6, %v10754_v34, %v4753_v26  ;;  %v4756_v34 = vsel %vm2441_vm6, %v4753_v26, %v4755_v5  ;;  %v4971_v57 = vrot.slane %v4958_v30, 4  ;;  %v5492_v26 = vld [vmem:[#allocation2 + $0x28] sm:$0xff]  ;;  %v9205_v5 = vld [vmem:[%s11497_s3 + $0xc0] sm:$0xff]  }
 0x257   :  { %8482 = vmatmul.mubr.msk.bf16.gmra.mrb[36].mxu1 %vm42_vm3, %v4540_v4  ;;  %v5294_v4 = vsel %vm2441_vm6, %v5291_v45, %v5293_v48 }
 0x258   :  { %8497 = vmatprep.mubr.msk.bf16.mxu1 %vm42_vm3, %v4750_v54  ;;  %v5170_v54 = vld [vmem:[#allocation2 + $0x158] sm:$0xf0] }
 0x259   :  { %v5180_v40 = vrot.slane %v5170_v54, 4 }
 0x25c   :  { %8532 = vmatmul.mubr.msk.bf16.gmra.mrb[36].mxu0 %vm42_vm3, %v5078_v63 }
 0x25d   :  { %8547 = vmatprep.mubr.msk.bf16.mxu0 %vm42_vm3, %v5288_v13  ;;  %v5386_v13 = vld [vmem:[#allocation2 + $0x1b8] sm:$0xf0] }
 0x25f   :  { %8498 = vmatmul.mubr.msk.bf16.vlgmr.msra.gmra.mrb[32].mxu1 %vm42_vm3, %v10769_v0  ;;  %v11129_v0 = vld [vmem:[%s11497_s3 + $0xa8] sm:$0xff]  }
 0x260   :  { %8501 = vmatprep.mubr.msk.bf16.mxu1 %vm42_vm3, %v4754_v33  ;;  %8516 = vmatpush3.bf16.msra.mxu1 %v11001_v7  ;;  %v5292_v7 = vsel %vm2441_vm6, %v10780_v29, %v5291_v45  ;;  %v5396_v33 = vrot.slane %v5386_v13, 4  ;;  %v6395_v45 = vld [vmem:[%s11499_s5 + $0x28] sm:$0xff] }
 0x261   :  { %8535 = vmatprep.subr.bf16.mxu1 %v11037_v18 }
 0x264   :  { %8548 = vmatmul.mubr.msk.bf16.vlgmr.msra.gmra.mrb[32].mxu0 %vm42_vm3, %v10796_v62  ;;  %v4969_v62 = vrot.slane %v11003_v36, 4 }
 0x265   :  { %8551 = vmatprep.mubr.msk.bf16.mxu0 %vm42_vm3, %v5292_v7  ;;  %8566 = vmatpush3.bf16.msra.mxu0 %v11098_v52 }
 0x266   :  { %8585 = vmatprep.subr.bf16.mxu0 %v11129_v0  ;;  %v4970_v29 = vsel %vm2441_vm6, %v10809_v23, %v4969_v62  ;;  %v4972_v23 = vsel %vm2441_vm6, %v4969_v62, %v4971_v57 }
 0x267   :  { %8502 = vmatmul.mubr.msk.bf16.gmra.mrb[36].mxu1 %vm42_vm3, %v4756_v34 }
 0x268   :  { %8517 = vmatprep.mubr.msk.bf16.mxu1 %vm42_vm3, %v4966_v38 }
 0x26c   :  { %8552 = vmatmul.mubr.msk.bf16.gmra.mrb[36].mxu0 %vm42_vm3, %v5294_v4 }
 0x26d   :  { %8567 = vmatprep.mubr.msk.bf16.mxu0 %vm42_vm3, %v9240_v32 }
 0x26f   :  { %8518 = vmatmul.mubr.msk.bf16.vlgmr.msra.gmra.mrb[32].mxu1 %vm42_vm3, %v10820_v16  ;;  %v11157_v16 = vld [vmem:[%s11497_s3 + $0xb0] sm:$0xff]  }
 0x270   :  { %8521 = vmatprep.mubr.msk.bf16.mxu1 %vm42_vm3, %v4970_v29  ;;  %8536 = vmatpush3.bf16.msra.mxu1 %v11037_v18  ;;  %v5182_v18 = vsel %vm2441_vm6, %v5180_v40, %v10846_v8  ;;  %v5186_v8 = vsel %vm2441_vm6, %v10849_v31, %v5185_v44  ;;  %v5398_v31 = vsel %vm2441_vm6, %v5396_v33, %v10887_v50  ;;  %v9242_v50 = vld [vmem:[#allocation2 + $0xd0] sm:$0xff] }
 0x271   :  { %8555 = vmatprep.subr.bf16.mxu1 %v11065_v10 }
 0x274   :  { %8568 = vmatmul.mubr.msk.bf16.vlgmr.msra.gmra.mrb[32].mxu0 %vm42_vm3, %v9241_v20 }
 0x275   :  { %8571 = vmatprep.mubr.msk.bf16.mxu0 %vm42_vm3, %v10851_v43  ;;  %8586 = vmatpush3.bf16.msra.mxu0 %v11129_v0  ;;  %v5174_v43 = vld [vmem:[#allocation2 + $0x178] sm:$0xf] }
 0x276   :  { %8605 = vmatprep.subr.bf16.mxu0 %v11157_v16  ;;  %v5187_v63 = vrot.slane %v5174_v43, 4 }
 0x277   :  { %8522 = vmatmul.mubr.msk.bf16.gmra.mrb[36].mxu1 %vm42_vm3, %v4972_v23 }
 0x278   :  { %8537 = vmatprep.mubr.msk.bf16.mxu1 %vm42_vm3, %v5182_v18  ;;  %v5188_v51 = vsel %vm2441_vm6, %v5185_v44, %v5187_v63  ;;  %v9269_v44 = vmov 1983009808  }
 0x27c   :  { %8572 = vmatmul.mubr.msk.bf16.gmra.mrb[36].mxu0 %vm42_vm3, %v5492_v26 }
 0x27d   :  { %8587 = vmatprep.mubr.msk.bf16.mxu0 %vm42_vm3, %v11015_v55  ;;  %v5672_v55 = vld [vmem:[#allocation2 + $0x88] sm:$0xff] }
 0x27f   :  { %8538 = vmatmul.mubr.msk.bf16.vlgmr.msra.gmra.mrb[32].mxu1 %vm42_vm3, %v10861_v24  ;;  %v9204_v24 = vld [vmem:[%s11497_s3 + $0xb8] sm:$0xff]  }
 0x280   :  { %8541 = vmatprep.mubr.msk.bf16.mxu1 %vm42_vm3, %v5186_v8  ;;  %8556 = vmatpush3.bf16.msra.mxu1 %v11065_v10  ;;  %v5401_v10 = vrot.slane %v11067_v60, 4  ;;  %v6549_v8 = vunpack.c.l.s4 %v9269_v44 }
 0x281   :  { %8575 = vmatprep.subr.bf16.mxu1 %v11098_v52 }
 0x284   :  { %8588 = vmatmul.mubr.msk.bf16.vlgmr.msra.gmra.mrb[32].mxu0 %vm42_vm3, %v11022_v28  ;;  %v5402_v28 = vsel %vm2441_vm6, %v10890_v9, %v5401_v10  ;;  %v5852_v9 = vld [vmem:[#allocation2 + $0xe8] sm:$0xff] }
 0x285   :  { %8591 = vmatprep.mubr.msk.bf16.mxu0 %vm42_vm3, %v10892_v3  ;;  %8606 = vmatpush3.bf16.msra.mxu0 %v11157_v16  ;;  %v5390_v3 = vld [vmem:[#allocation2 + $0x1d8] sm:$0xf] }
 0x286   :  { %8625 = vmatprep.subr.bf16.mxu0 %v9204_v24  ;;  %v5403_v39 = vrot.slane %v5390_v3, 4 }
 0x287   :  { %8542 = vmatmul.mubr.msk.bf16.gmra.mrb[36].mxu1 %vm42_vm3, %v5188_v51  ;;  %v11308_v51 = vld [vmem:[%s11498_s4] ss:$0 sm:$0xff]  ;;  %s9270_s4 = smov 64  }
 0x288   :  { %8557 = vmatprep.mubr.msk.bf16.mxu1 %vm42_vm3, %v5398_v31 }
 0x28c   :  { %8592 = vmatmul.mubr.msk.bf16.gmra.mrb[36].mxu0 %vm42_vm3, %v5672_v55 }
 0x28d   :  { %8607 = vmatprep.mubr.msk.bf16.mxu0 %vm42_vm3, %v9242_v50 }
 0x28f   :  { %8558 = vmatmul.mubr.msk.bf16.vlgmr.msra.gmra.mrb[32].mxu1 %vm42_vm3, %v10902_v35  ;;  %v5404_v35 = vsel %vm2441_vm6, %v5401_v10, %v5403_v39 }
 0x290   :  { %8561 = vmatprep.mubr.msk.bf16.mxu1 %vm42_vm3, %v5402_v28  ;;  %8576 = vmatpush3.bf16.msra.mxu1 %v11098_v52  ;;  %v6394_v52 = vld [vmem:[%s11499_s5 + $0x20] sm:$0xff] }
 0x291   :  { %8595 = vmatprep.subr.bf16.mxu1 %v11129_v0 }
 0x294   :  { %8608 = vmatmul.mubr.msk.bf16.vlgmr.msra.gmra.mrb[32].mxu0 %vm42_vm3, %v10475_v17  ;;  %v5584_v17 = vld [vmem:[#allocation2 + $0x58] sm:$0xff] }
 0x295   :  { %8611 = vmatprep.mubr.msk.bf16.mxu0 %vm42_vm3, %v10926_v2  ;;  %8626 = vmatpush3.bf16.msra.mxu0 %v9204_v24 }
 0x296   :  { %8645 = vmatprep.subr.bf16.mxu0 %v9205_v5 }
 0x297   :  { %8562 = vmatmul.mubr.msk.bf16.gmra.mrb[36].mxu1 %vm42_vm3, %v5404_v35 }
 0x298   :  { %8577 = vmatprep.mubr.msk.bf16.mxu1 %vm42_vm3, %v10548_v12  ;;  %v6124_v12 = vld [vmem:[#allocation2 + $0x178] sm:$0xff] }
 0x29c   :  { %8612 = vmatmul.mubr.msk.bf16.gmra.mrb[36].mxu0 %vm42_vm3, %v5852_v9 }
 0x29d   :  { %8627 = vmatprep.mubr.msk.bf16.mxu0 %vm42_vm3, %v10531_v56  ;;  %v6032_v56 = vld [vmem:[#allocation2 + $0x148] sm:$0xff] }
 0x29f   :  { %8578 = vmatmul.mubr.msk.bf16.vlgmr.msra.gmra.mrb[32].mxu1 %vm42_vm3, %v10562_v21  ;;  %v6304_v21 = vld [vmem:[#allocation2 + $0x1d8] sm:$0xff] }
 0x2a0   :  { %8581 = vmatprep.mubr.msk.bf16.mxu1 %vm42_vm3, %v10943_v41  ;;  %8596 = vmatpush3.bf16.msra.mxu1 %v11129_v0  ;;  %v6397_v0 = vld [vmem:[%s11499_s5 + $0x38] sm:$0xff] }
 0x2a1   :  { %8615 = vmatprep.subr.bf16.mxu1 %v11157_v16 }
 0x2a4   :  { %8628 = vmatmul.mubr.msk.bf16.vlgmr.msra.gmra.mrb[32].mxu0 %vm42_vm3, %v10540_v22  ;;  %v5764_v22 = vld [vmem:[#allocation2 + $0xb8] sm:$0xff] }
 0x2a5   :  { %8631 = vmatprep.mubr.msk.bf16.mxu0 %vm42_vm3, %v10955_v47  ;;  %8646 = vmatpush3.bf16.msra.mxu0 %v9205_v5 }
 0x2a7   :  { %8582 = vmatmul.mubr.msk.bf16.gmra.mrb[36].mxu1 %vm42_vm3, %v5584_v17 }
 0x2a8   :  { %8597 = vmatprep.mubr.msk.bf16.mxu1 %vm42_vm3, %v10509_v6  ;;  %v6212_v6 = vld [vmem:[#allocation2 + $0x1a8] sm:$0xff] }
 0x2ac   :  { %8632 = vmatmul.mubr.msk.bf16.gmra.mrb[36].mxu0 %vm42_vm3, %v6032_v56 }
 0x2ad   :  { %8647 = vmatprep.mubr.msk.bf16.mxu0 %vm42_vm3, %v10566_v27  ;;  %v6390_v27 = vld [vmem:[%s11499_s5] sm:$0xff] }
 0x2af   :  { %8598 = vmatmul.mubr.msk.bf16.vlgmr.msra.gmra.mrb[32].mxu1 %vm42_vm3, %v10527_v49  ;;  %v5944_v49 = vld [vmem:[#allocation2 + $0x118] sm:$0xff] }
 0x2b0   :  { %8601 = vmatprep.mubr.msk.bf16.mxu1 %vm42_vm3, %v10972_v37  ;;  %8616 = vmatpush3.bf16.msra.mxu1 %v11157_v16 }
 0x2b1   :  { %8635 = vmatprep.subr.bf16.mxu1 %v9204_v24 }
 0x2b4   :  { %8648 = vmatmul.mubr.msk.bf16.vlgmr.msra.gmra.mrb[32].mxu0 %vm42_vm3, %v10576_v14 }
 0x2b5   :  { %8651 = vmatprep.mubr.msk.bf16.mxu0 %vm42_vm3, %v10984_v58 }
 0x2b7   :  { %8602 = vmatmul.mubr.msk.bf16.gmra.mrb[36].mxu1 %vm42_vm3, %v5764_v22 }
 0x2b8   :  { %8617 = vmatprep.mubr.msk.bf16.mxu1 %vm42_vm3, %v10585_v53 }
 0x2bc   :  { %8652 = vmatmul.mubr.msk.bf16.gmra.mrb[36].mxu0 %vm42_vm3, %v6212_v6 }
 0x2bd   :  { %8681 = vmatprep.mubr.msk.f32.mxu0 %vm6399_vm7, %v6390_v27 }
 0x2bf   :  { %8618 = vmatmul.mubr.msk.bf16.vlgmr.msra.gmra.mrb[32].mxu1 %vm42_vm3, %v10605_v19 }
 0x2c0   :  { %8621 = vmatprep.mubr.msk.bf16.mxu1 %vm42_vm3, %v11003_v36  ;;  %8636 = vmatpush3.bf16.msra.mxu1 %v9204_v24  ;;  %v6391_v36 = vld [vmem:[%s11499_s5 + $0x8] sm:$0xff]  ;;  %v6550_v24 = vunpack.c.0.s8 %v6549_v8 }
 0x2c1   :  { %8655 = vmatprep.subr.bf16.mxu1 %v9205_v5 }
 0x2c2   :  { %v11312_v3 = vsub.s32 %v6550_v24, %v9633_v59  ;;  %v9216_v24 = vld [vmem:[%s11500_s6 + $0xd0] sm:$0xff]  }
 0x2c7   :  { %8622 = vmatmul.mubr.msk.bf16.gmra.mrb[36].mxu1 %vm42_vm3, %v5944_v49 }
 0x2c8   :  { %8637 = vmatprep.mubr.msk.bf16.mxu1 %vm42_vm3, %v10629_v61 }
 0x2cf   :  { %8638 = vmatmul.mubr.msk.bf16.vlgmr.msra.gmra.mrb[32].mxu1 %vm42_vm3, %v10644_v25 }
 0x2d0   :  { %8641 = vmatprep.mubr.msk.bf16.mxu1 %vm42_vm3, %v11039_v42  ;;  %8656 = vmatpush3.bf16.msra.mxu1 %v9205_v5  ;;  %v6392_v42 = vld [vmem:[%s11499_s5 + $0x10] sm:$0xff] }
 0x2d7   :  { %8642 = vmatmul.mubr.msk.bf16.gmra.mrb[36].mxu1 %vm42_vm3, %v6124_v12 }
 0x2d8   :  { %8657 = vmatprep.mubr.msk.bf16.mxu1 %vm42_vm3, %v10662_v1 }
 0x2df   :  { %8658 = vmatmul.mubr.msk.bf16.vlgmr.msra.gmra.mrb[32].mxu1 %vm42_vm3, %v10683_v11 }
 0x2e0   :  { %8661 = vmatprep.mubr.msk.bf16.mxu1 %vm42_vm3, %v11067_v60  ;;  %v6393_v60 = vld [vmem:[%s11499_s5 + $0x18] sm:$0xff] }
 0x2e7   :  { %8662 = vmatmul.mubr.msk.bf16.gmra.mrb[36].mxu1 %vm42_vm3, %v6304_v21  ;;  %vm6545_vm3 = vcmask 253952  }
 0x2e8   :  { %8709 = vmatprep.mubr.msk.f32.mxu1 %vm6399_vm7, %v6390_v27 }
 0x387   :  { %v8649_v14 = vpop.f32.mrb[32].mxu0 }
 0x388   :  { %v6265_v53 = vpop.f32.mrb[33].mxu0 }
 0x389   :  { %v8650_v19 = vpop.f32.mrb[34].mxu0 }
 0x38a   :  { %v8725_v61 = vpack.c.bf16 %v8650_v19, %v8649_v14  ;;  %v6268_v25 = vpop.f32.mrb[35].mxu0 }
 0x38b   :  { %v8721_v1 = vpack.c.bf16 %v6268_v25, %v6265_v53 }
 0x38d   :  { %8722 = vmatprep.subr.bf16.mxu0 %v8721_v1 }
 0x38e   :  { %8724 = vmatpush3.bf16.msra.mxu0 %v8721_v1 }
 0x38f   :  { %v8653_v11 = vpop.f32.mrb[36].mxu0  ;;  %8726 = vmatprep.subr.bf16.mxu0 %v8725_v61 }
 0x390   :  { %v6281_v2 = vpop.f32.mrb[37].mxu0 }
 0x391   :  { %v8654_v41 = vpop.f32.mrb[38].mxu0 }
 0x392   :  { %v8733_v47 = vpack.c.bf16 %v8654_v41, %v8653_v11  ;;  %v6284_v37 = vpop.f32.mrb[39].mxu0  ;;  %8728 = vmatpush3.bf16.msra.mxu0 %v8725_v61 }
 0x393   :  { %v8729_v58 = vpack.c.bf16 %v6284_v37, %v6281_v2 }
 0x395   :  { %8730 = vmatprep.subr.bf16.mxu0 %v8729_v58 }
 0x396   :  { %8732 = vmatpush3.bf16.msra.mxu0 %v8729_v58 }
 0x397   :  { %8734 = vmatprep.subr.bf16.mxu0 %v8733_v47 }
 0x39a   :  { %8736 = vmatpush3.bf16.msra.mxu0 %v8733_v47 }
 0x39d   :  { %8682 = vmatmul.mubr.msk.f32.vlgmr.msra.gmra.mrb[40].mxu0 %vm6399_vm7, %v6391_v36 }
 0x39e   :  { %8684 = vmatprep.mubr.msk.f32.mxu0 %vm6399_vm7, %v6392_v42 }
 0x3a1   :  { %8685 = vmatmul.mubr.msk.f32.gmra.mrb[42].mxu0 %vm6399_vm7, %v6393_v60 }
 0x3a2   :  { %8687 = vmatprep.mubr.msk.f32.mxu0 %vm6399_vm7, %v6394_v52 }
 0x3a5   :  { %8688 = vmatmul.mubr.msk.f32.gmra.mrb[44].mxu0 %vm6399_vm7, %v6395_v45 }
 0x3a6   :  { %8690 = vmatprep.mubr.msk.f32.mxu0 %vm6399_vm7, %v6396_v46 }
 0x3a9   :  { %8691 = vmatmul.mubr.msk.f32.gmra.mrb[46].mxu0 %vm6399_vm7, %v6397_v0 }
 0x3b2   :  { %v8659_v34 = vpop.f32.mrb[32].mxu1 }
 0x3b3   :  { %v6351_v7 = vpop.f32.mrb[33].mxu1 }
 0x3b4   :  { %v8660_v15 = vpop.f32.mrb[34].mxu1 }
 0x3b5   :  { %v8741_v38 = vpack.c.bf16 %v8660_v15, %v8659_v34  ;;  %v6354_v48 = vpop.f32.mrb[35].mxu1 }
 0x3b6   :  { %v8737_v62 = vpack.c.bf16 %v6354_v48, %v6351_v7 }
 0x3b8   :  { %8738 = vmatprep.subr.bf16.mxu1 %v8737_v62 }
 0x3b9   :  { %8740 = vmatpush3.bf16.msra.mxu1 %v8737_v62 }
 0x3ba   :  { %v8663_v4 = vpop.f32.mrb[36].mxu1  ;;  %8742 = vmatprep.subr.bf16.mxu1 %v8741_v38 }
 0x3bb   :  { %v6367_v29 = vpop.f32.mrb[37].mxu1 }
 0x3bc   :  { %v8664_v32 = vpop.f32.mrb[38].mxu1 }
 0x3bd   :  { %v8749_v30 = vpack.c.bf16 %v8664_v32, %v8663_v4  ;;  %v6370_v57 = vpop.f32.mrb[39].mxu1  ;;  %8744 = vmatpush3.bf16.msra.mxu1 %v8741_v38  ;;  %v9206_v38 = vld [vmem:[%s11500_s6 + $0x40] sm:$0xff]  }
 0x3be   :  { %v8745_v54 = vpack.c.bf16 %v6370_v57, %v6367_v29  ;;  %7977 = vmatprep.subr.bf16.mxu0 %v9206_v38  ;;  %v9207_v4 = vld [vmem:[%s11500_s6] sm:$0xff]  }
 0x3bf   :  { %v9208_v29 = vld [vmem:[%s11500_s6 + $0xc0] sm:$0xff]   ;;  %7978 = vmatpush3.bf16.msra.mxu0 %v9207_v4 }
 0x3c0   :  { %8746 = vmatprep.subr.bf16.mxu1 %v8745_v54  ;;  %v9209_v57 = vld [vmem:[%s11500_s6 + $0x80] sm:$0xff]  }
 0x3c1   :  { %8748 = vmatpush3.bf16.msra.mxu1 %v8745_v54  ;;  %v9210_v54 = vld [vmem:[%s11500_s6 + $0x48] sm:$0xff]  }
 0x3c2   :  { %8750 = vmatprep.subr.bf16.mxu1 %v8749_v30  ;;  %7979 = vmatprep.subr.bf16.mxu0 %v9210_v54 }
 0x3c5   :  { %8752 = vmatpush3.bf16.msra.mxu1 %v8749_v30 }
 0x3c6   :  { %7999 = vmatprep.subr.bf16.mxu1 %v9208_v29 }
 0x3c8   :  { %8710 = vmatmul.mubr.msk.f32.vlgmr.msra.gmra.mrb[40].mxu1 %vm6399_vm7, %v6391_v36 }
 0x3c9   :  { %8712 = vmatprep.mubr.msk.f32.mxu1 %vm6399_vm7, %v6392_v42  ;;  %8000 = vmatpush3.bf16.msra.mxu1 %v9209_v57 }
 0x3cc   :  { %8713 = vmatmul.mubr.msk.f32.gmra.mrb[42].mxu1 %vm6399_vm7, %v6393_v60 }
 0x3cd   :  { %8715 = vmatprep.mubr.msk.f32.mxu1 %vm6399_vm7, %v6394_v52 }
 0x3d0   :  { %8716 = vmatmul.mubr.msk.f32.gmra.mrb[44].mxu1 %vm6399_vm7, %v6395_v45 }
 0x3d1   :  { %8718 = vmatprep.mubr.msk.f32.mxu1 %vm6399_vm7, %v6396_v46 }
 0x3d4   :  { %8719 = vmatmul.mubr.msk.f32.gmra.mrb[46].mxu1 %vm6399_vm7, %v6397_v0 }
 0x470   :  { %v8683_v40 = vpop.f32.mrb[40].mxu0 }
 0x471   :  { %v6490_v16 = vpop.f32.mrb[41].mxu0 }
 0x474   :  { %v8686_v23 = vpop.f32.mrb[42].mxu0 }
 0x475   :  { %v6530_v20 = vmax.f32 %v8683_v40, %v8686_v23  ;;  %v6500_v18 = vpop.f32.mrb[43].mxu0 }
 0x476   :  { %v6529_v26 = vmax.f32 %v6490_v16, %v6500_v18  ;;  %v9212_v18 = vld [vmem:[%s11500_s6 + $0xc8] sm:$0xff]  }
 0x477   :  { %8001 = vmatprep.subr.bf16.mxu1 %v9212_v18 }
 0x478   :  { %v8689_v43 = vpop.f32.mrb[44].mxu0 }
 0x479   :  { %v6532_v63 = vmax.f32 %v6530_v20, %v8689_v43  ;;  %v6510_v13 = vpop.f32.mrb[45].mxu0  ;;  %v9211_v20 = vld [vmem:[%s11500_s6 + $0x8] sm:$0xff]  }
 0x47a   :  { %v6531_v33 = vmax.f32 %v6529_v26, %v6510_v13  ;;  %7980 = vmatpush3.bf16.msra.mxu0 %v9211_v20  ;;  %v9213_v43 = vld [vmem:[%s11500_s6 + $0x88] sm:$0xff]  }
 0x47b   :  { %8002 = vmatpush3.bf16.msra.mxu1 %v9213_v43 }
 0x47c   :  { %v8692_v31 = vpop.f32.mrb[46].mxu0  ;;  %8003 = vmatprep.subr.bf16.mxu1 %v9216_v24 }
 0x47d   :  { %v6534_v55 = vmax.f32 %v6532_v63, %v8692_v31  ;;  %v6520_v10 = vpop.f32.mrb[47].mxu0  ;;  %v9214_v63 = vld [vmem:[%s11500_s6 + $0x50] sm:$0xff]  }
 0x47e   :  { %v6533_v28 = vmax.f32 %v6531_v33, %v6520_v10  ;;  %7981 = vmatprep.subr.bf16.mxu0 %v9214_v63  ;;  %v9215_v33 = vld [vmem:[%s11500_s6 + $0x10] sm:$0xff]   ;;  %v9218_v10 = vld [vmem:[%s11500_s6 + $0x58] sm:$0xff]  }
 0x47f   :  { %v6542_v50 = vadd.f32 %v11308_v51, %v6534_v55  ;;  %7982 = vmatpush3.bf16.msra.mxu0 %v9215_v33  ;;  %v9217_v55 = vld [vmem:[%s11500_s6 + $0x90] sm:$0xff]  }
 0x480   :  { %v6541_v39 = vadd.f32 %v11308_v51, %v6533_v28  ;;  %8004 = vmatpush3.bf16.msra.mxu1 %v9217_v55  ;;  %7983 = vmatprep.subr.bf16.mxu0 %v9218_v10 }
 0x481   :  { %v6544_v5 = vmax.f32 %v6542_v50, 0.0  ;;  %v9219_v50 = vld [vmem:[%s11500_s6 + $0x18] sm:$0xff]  }
 0x482   :  { %v6543_v35 = vmax.f32 %v6541_v39, 0.0  ;;  %v9220_v39 = vld [vmem:[%s11500_s6 + $0xd8] sm:$0xff]  }
 0x483   :  { %v6628_v9 = vcombine.high %v6544_v5, %v6544_v5  ;;  %v6610_v17 = vrot.slane %v6544_v5, %v11312_v3  ;;  %6602 = vst.msk [vmem:[#allocation3 + $0x4] sm:$0x1] %vm6545_vm3, %v6544_v5  ;;  %7984 = vmatpush3.bf16.msra.mxu0 %v9219_v50  ;;  %8005 = vmatprep.subr.bf16.mxu1 %v9220_v39 }
 0x484   :  { %v6575_v56 = vcombine.high %v6543_v35, %v6543_v35  ;;  %v6554_v22 = vrot.slane %v6543_v35, %v11312_v3  ;;  %6546 = vst.msk [vmem:[#allocation3] sm:$0x1] %vm6545_vm3, %v6543_v35  ;;  %v9221_v35 = vld [vmem:[%s11500_s6 + $0x98] sm:$0xff]  }
 0x485   :  { %v6617_v6 = vcombine.high %v6610_v17, %v6610_v17  ;;  %v7570_v49 = vrot.slane %v6610_v17, 9  ;;  %v6635_v59 = vrot.slane %v6628_v9, %v11312_v3  ;;  %v9222_v9 = vld [vmem:[%s11500_s6 + $0x60] sm:$0xff]   ;;  %8006 = vmatpush3.bf16.msra.mxu1 %v9221_v35 }
 0x486   :  { %v6582_v12 = vrot.slane %v6575_v56, %v11312_v3  ;;  %v7566_v27 = vrot.slane %v6554_v22, 9  ;;  %v6562_v53 = vcombine.high %v6554_v22, %v6554_v22  ;;  %7985 = vmatprep.subr.bf16.mxu0 %v9222_v9  ;;  %v9223_v56 = vld [vmem:[%s11500_s6 + $0x20] sm:$0xff]  }
 0x487   :  { %6618 = vrot.lane.b32.xlu0 %v6617_v6, %s9270_s4  ;;  %6613 = vrot.lane.b32.xlu1 %v7570_v49, %s9271_s27  ;;  %v7572_v21 = vrot.slane %v6635_v59, 9  ;;  %6637 = vst.msk [vmem:[#allocation3 + $0x6] sm:$0x1] %vm6545_vm3, %v6635_v59  ;;  %v6644_v14 = vcombine.high %v6635_v59, %v6635_v59  ;;  %v7571_v19 = vrot.slane %v6617_v6, 9  ;;  %v9224_v22 = vld [vmem:[%s11500_s6 + $0xe0] sm:$0xff]   ;;  %v9226_v59 = vld [vmem:[%s11500_s6 + $0x68] sm:$0xff]  }
 0x488   :  { %6584 = vst.msk [vmem:[#allocation3 + $0x2] sm:$0x1] %vm6545_vm3, %v6582_v12  ;;  %v6591_v61 = vcombine.high %v6582_v12, %v6582_v12  ;;  %v7568_v1 = vrot.slane %v6582_v12, 9  ;;  %v7567_v41 = vrot.slane %v6562_v53, 9  ;;  %v9225_v6 = vld [vmem:[%s11500_s6 + $0xa0] sm:$0xff]   ;;  %v9228_v12 = vld [vmem:[%s11500_s6 + $0xe8] sm:$0xff]   ;;  %7986 = vmatpush3.bf16.msra.mxu0 %v9223_v56  ;;  %8007 = vmatprep.subr.bf16.mxu1 %v9224_v22 }
 0x489   :  { %v7573_v25 = vrot.slane %v6644_v14, 9  ;;  %7987 = vmatprep.subr.bf16.mxu0 %v9226_v59  ;;  %8008 = vmatpush3.bf16.msra.mxu1 %v9225_v6 }
 0x48a   :  { %v7569_v2 = vrot.slane %v6591_v61, 9  ;;  %8009 = vmatprep.subr.bf16.mxu1 %v9228_v12 }
 0x48b   :  { %6640 = vrot.lane.b32.xlu1 %v7572_v21, %s9271_s27  ;;  %6557 = vrot.lane.b32.xlu0 %v7566_v27, %s9271_s27  ;;  %v9227_v21 = vld [vmem:[%s11500_s6 + $0x28] sm:$0xff]  }
 0x48c   :  { %7988 = vmatpush3.bf16.msra.mxu0 %v9227_v21 }
 0x48f   :  { %6645 = vrot.lane.b32.xlu1 %v6644_v14, %s9270_s4  ;;  %6563 = vrot.lane.b32.xlu0 %v6562_v53, %s9270_s4  ;;  %v9230_v14 = vld [vmem:[%s11500_s6 + $0x70] sm:$0xff]   ;;  %v9229_v53 = vld [vmem:[%s11500_s6 + $0xa8] sm:$0xff]  }
 0x490   :  { %7989 = vmatprep.subr.bf16.mxu0 %v9230_v14  ;;  %8010 = vmatpush3.bf16.msra.mxu1 %v9229_v53 }
 0x493   :  { %6592 = vrot.lane.b32.xlu1 %v6591_v61, %s9270_s4  ;;  %6624 = vrot.lane.b32.xlu0 %v7571_v19, %s9272_s28  ;;  %v9232_v61 = vld [vmem:[%s11500_s6 + $0xf0] sm:$0xff]  }
 0x494   :  { %8011 = vmatprep.subr.bf16.mxu1 %v9232_v61 }
 0x497   :  { %6651 = vrot.lane.b32.xlu1 %v7573_v25, %s9272_s28  ;;  %6587 = vrot.lane.b32.xlu0 %v7568_v1, %s9271_s27  ;;  %v9231_v25 = vld [vmem:[%s11500_s6 + $0x30] sm:$0xff]  }
 0x498   :  { %7990 = vmatpush3.bf16.msra.mxu0 %v9231_v25 }
 0x49b   :  { %v8711_v11 = vpop.f32.mrb[40].mxu1  ;;  %6598 = vrot.lane.b32.xlu1 %v7569_v2, %s9272_s28  ;;  %6570 = vrot.lane.b32.xlu0 %v7567_v41, %s9272_s28  ;;  %v9233_v2 = vld [vmem:[%s11500_s6 + $0xb0] sm:$0xff]  }
 0x49c   :  { %v6721_v47 = vpop.f32.mrb[41].mxu1  ;;  %8012 = vmatpush3.bf16.msra.mxu1 %v9233_v2 }
 0x49f   :  { %v8714_v37 = vpop.f32.mrb[42].mxu1 }
 0x4a0   :  { %v6761_v58 = vmax.f32 %v8711_v11, %v8714_v37  ;;  %v6731_v36 = vpop.f32.mrb[43].mxu1  ;;  %v9234_v11 = vld [vmem:[%s11500_s6 + $0x78] sm:$0xff]  }
 0x4a1   :  { %v6760_v42 = vmax.f32 %v6721_v47, %v6731_v36  ;;  %v9236_v47 = vld [vmem:[%s11500_s6 + $0xf8] sm:$0xff]   ;;  %7991 = vmatprep.subr.bf16.mxu0 %v9234_v11 }
 0x4a2   :  { %v9235_v37 = vld [vmem:[%s11500_s6 + $0x38] sm:$0xff]   ;;  %8013 = vmatprep.subr.bf16.mxu1 %v9236_v47 }
 0x4a3   :  { %v8717_v60 = vpop.f32.mrb[44].mxu1  ;;  %7992 = vmatpush3.bf16.msra.mxu0 %v9235_v37  ;;  %v9237_v36 = vld [vmem:[%s11500_s6 + $0xb8] sm:$0xff]  }
 0x4a4   :  { %v6763_v52 = vmax.f32 %v6761_v58, %v8717_v60  ;;  %v6741_v45 = vpop.f32.mrb[45].mxu1  ;;  %8014 = vmatpush3.bf16.msra.mxu1 %v9237_v36 }
 0x4a5   :  { %v6762_v46 = vmax.f32 %v6760_v42, %v6741_v45 }
 0x4a7   :  { %v8720_v0 = vpop.f32.mrb[46].mxu1 }
 0x4a8   :  { %v6765_v34 = vmax.f32 %v6763_v52, %v8720_v0  ;;  %v6751_v7 = vpop.f32.mrb[47].mxu1 }
 0x4a9   :  { %v6764_v15 = vmax.f32 %v6762_v46, %v6751_v7 }
 0x4aa   :  { %v6767_v48 = vadd.f32 %v11308_v51, %v6765_v34 }
 0x4ab   :  { %v6766_v62 = vadd.f32 %v11308_v51, %v6764_v15 }
 0x4ac   :  { %v6769_v32 = vmax.f32 %v6767_v48, 0.0 }
 0x4ad   :  { %v6768_v30 = vmax.f32 %v6766_v62, 0.0 }
 0x4ae   :  { %v6849_v40 = vcombine.high %v6769_v32, %v6769_v32  ;;  %v6831_v16 = vrot.slane %v6769_v32, %v11312_v3  ;;  %6823 = vst.msk [vmem:[#allocation3 + $0x5] sm:$0x1] %vm6545_vm3, %v6769_v32 }
 0x4af   :  { %v6796_v23 = vcombine.high %v6768_v30, %v6768_v30  ;;  %6770 = vst.msk [vmem:[#allocation3 + $0x1] sm:$0x1] %vm6545_vm3, %v6768_v30  ;;  %v6778_v31 = vrot.slane %v6768_v30, %v11312_v3 }
 0x4b0   :  { %v7586_v26 = vrot.slane %v6831_v16, 9  ;;  %v6856_v44 = vrot.slane %v6849_v40, %v11312_v3  ;;  %v6838_v51 = vcombine.high %v6831_v16, %v6831_v16 }
 0x4b1   :  { %v6803_v8 = vrot.slane %v6796_v23, %v11312_v3  ;;  %v7582_v5 = vrot.slane %v6778_v31, 9  ;;  %v6785_v49 = vcombine.high %v6778_v31, %v6778_v31 }
 0x4b2   :  { %6834 = vrot.lane.b32.xlu0 %v7586_v26, %s9271_s27  ;;  %v7588_v13 = vrot.slane %v6856_v44, 9  ;;  %6858 = vst.msk [vmem:[#allocation3 + $0x7] sm:$0x1] %vm6545_vm3, %v6856_v44  ;;  %v6865_v28 = vcombine.high %v6856_v44, %v6856_v44  ;;  %v7587_v41 = vrot.slane %v6838_v51, 9 }
 0x4b3   :  { %6805 = vst.msk [vmem:[#allocation3 + $0x3] sm:$0x1] %vm6545_vm3, %v6803_v8  ;;  %v7584_v17 = vrot.slane %v6803_v8, 9  ;;  %v6812_v27 = vcombine.high %v6803_v8, %v6803_v8  ;;  %v7583_v19 = vrot.slane %v6785_v49, 9 }
 0x4b4   :  { %6861 = vrot.lane.b32.xlu1 %v7588_v13, %s9271_s27  ;;  %v7589_v58 = vrot.slane %v6865_v28, 9 }
 0x4b5   :  { %v7585_v1 = vrot.slane %v6812_v27, 9 }
 0x4b6   :  { %6839 = vrot.lane.b32.xlu0 %v6838_v51, %s9270_s4 }
 0x4b8   :  { %6866 = vrot.lane.b32.xlu1 %v6865_v28, %s9270_s4  ;;  %v7590_v28 = vld [vmem:[%s11501_s7] ss:$0 sm:$0xff] }
 0x4ba   :  { %6781 = vrot.lane.b32.xlu0 %v7582_v5, %s9271_s27 }
 0x4bc   :  { %6808 = vrot.lane.b32.xlu1 %v7584_v17, %s9271_s27 }
 0x4be   :  { %6786 = vrot.lane.b32.xlu0 %v6785_v49, %s9270_s4 }
 0x4c0   :  { %6813 = vrot.lane.b32.xlu1 %v6812_v27, %s9270_s4 }
 0x4c2   :  { %6792 = vrot.lane.b32.xlu0 %v7583_v19, %s9272_s28 }
 0x4c4   :  { %6819 = vrot.lane.b32.xlu1 %v7585_v1, %s9272_s28 }
 0x4c6   :  { %6845 = vrot.lane.b32.xlu0 %v7587_v41, %s9272_s28 }
 0x4c8   :  { %6872 = vrot.lane.b32.xlu1 %v7589_v58, %s9272_s28 }
 0x4f9   :  { %v6619_v42 = vpop.permute.xlu0 %6618  ;;  %v6614_v60 = vpop.permute.xlu1 %6613 }
 0x4fa   :  { %6616 = vst.msk [vmem:[#allocation3 + $0x4] sm:$0x1] %vm6560_vm8, %v6614_v60 }
 0x4fb   :  { %6621 = vst.msk [vmem:[#allocation3 + $0x4] sm:$0x1] %vm6566_vm10, %v6619_v42 }
 0x4fd   :  { %v6641_v52 = vpop.permute.xlu1 %6640  ;;  %v6558_v45 = vpop.permute.xlu0 %6557 }
 0x4fe   :  { %6643 = vst.msk [vmem:[#allocation3 + $0x6] sm:$0x1] %vm6560_vm8, %v6641_v52  ;;  %6561 = vst.msk [vmem:[#allocation3] sm:$0x1] %vm6560_vm8, %v6558_v45 }
 0x501   :  { %v6646_v46 = vpop.permute.xlu1 %6645  ;;  %v6564_v0 = vpop.permute.xlu0 %6563 }
 0x502   :  { %6648 = vst.msk [vmem:[#allocation3 + $0x6] sm:$0x1] %vm6566_vm10, %v6646_v46  ;;  %6567 = vst.msk [vmem:[#allocation3] sm:$0x1] %vm6566_vm10, %v6564_v0 }
 0x505   :  { %v6593_v34 = vpop.permute.xlu1 %6592  ;;  %v6625_v7 = vpop.permute.xlu0 %6624 }
 0x506   :  { %6627 = vst.msk [vmem:[#allocation3 + $0x4] sm:$0x1] %vm6573_vm11, %v6625_v7 }
 0x509   :  { %v6652_v15 = vpop.permute.xlu1 %6651  ;;  %v6588_v38 = vpop.permute.xlu0 %6587 }
 0x50a   :  { %6654 = vst.msk [vmem:[#allocation3 + $0x6] sm:$0x1] %vm6573_vm11, %v6652_v15 }
 0x50b   :  { %6590 = vst.msk [vmem:[#allocation3 + $0x2] sm:$0x1] %vm6560_vm8, %v6588_v38 }
 0x50c   :  { %6595 = vst.msk [vmem:[#allocation3 + $0x2] sm:$0x1] %vm6566_vm10, %v6593_v34 }
 0x50d   :  { %v6599_v48 = vpop.permute.xlu1 %6598  ;;  %v6571_v62 = vpop.permute.xlu0 %6570 }
 0x50e   :  { %6601 = vst.msk [vmem:[#allocation3 + $0x2] sm:$0x1] %vm6573_vm11, %v6599_v48  ;;  %6574 = vst.msk [vmem:[#allocation3] sm:$0x1] %vm6573_vm11, %v6571_v62 }
 0x524   :  { %v6835_v4 = vpop.permute.xlu0 %6834 }
 0x525   :  { %6837 = vst.msk [vmem:[#allocation3 + $0x5] sm:$0x1] %vm6560_vm8, %v6835_v4 }
 0x526   :  { %v6862_v29 = vpop.permute.xlu1 %6861 }
 0x527   :  { %6864 = vst.msk [vmem:[#allocation3 + $0x7] sm:$0x1] %vm6560_vm8, %v6862_v29 }
 0x528   :  { %v6840_v32 = vpop.permute.xlu0 %6839 }
 0x529   :  { %6842 = vst.msk [vmem:[#allocation3 + $0x5] sm:$0x1] %vm6566_vm10, %v6840_v32 }
 0x52a   :  { %v6867_v30 = vpop.permute.xlu1 %6866 }
 0x52b   :  { %6869 = vst.msk [vmem:[#allocation3 + $0x7] sm:$0x1] %vm6566_vm10, %v6867_v30 }
 0x52c   :  { %v6782_v57 = vpop.permute.xlu0 %6781 }
 0x52d   :  { %6784 = vst.msk [vmem:[#allocation3 + $0x1] sm:$0x1] %vm6560_vm8, %v6782_v57 }
 0x52e   :  { %v6809_v54 = vpop.permute.xlu1 %6808 }
 0x52f   :  { %6811 = vst.msk [vmem:[#allocation3 + $0x3] sm:$0x1] %vm6560_vm8, %v6809_v54 }
 0x530   :  { %v6787_v40 = vpop.permute.xlu0 %6786 }
 0x531   :  { %6789 = vst.msk [vmem:[#allocation3 + $0x1] sm:$0x1] %vm6566_vm10, %v6787_v40 }
 0x532   :  { %v6814_v16 = vpop.permute.xlu1 %6813 }
 0x533   :  { %6816 = vst.msk [vmem:[#allocation3 + $0x3] sm:$0x1] %vm6566_vm10, %v6814_v16 }
 0x534   :  { %v6793_v23 = vpop.permute.xlu0 %6792 }
 0x535   :  { %6795 = vst.msk [vmem:[#allocation3 + $0x1] sm:$0x1] %vm6573_vm11, %v6793_v23 }
 0x536   :  { %v6820_v20 = vpop.permute.xlu1 %6819 }
 0x537   :  { %6822 = vst.msk [vmem:[#allocation3 + $0x3] sm:$0x1] %vm6573_vm11, %v6820_v20 }
 0x538   :  { %v6846_v18 = vpop.permute.xlu0 %6845 }
 0x539   :  { %6848 = vst.msk [vmem:[#allocation3 + $0x5] sm:$0x1] %vm6573_vm11, %v6846_v18 }
 0x53a   :  { %v6873_v26 = vpop.permute.xlu1 %6872 }
 0x53b   :  { %6875 = vst.msk [vmem:[#allocation3 + $0x7] sm:$0x1] %vm6573_vm11, %v6873_v26 }
 0x542   :  { %v6876_v44 = vld [vmem:[#allocation3] sm:$0xff] }
 0x543   :  { %v6885_v8 = vrot.slane %v6876_v44, %v11312_v3  ;;  %v6878_v43 = vcombine.high %v6876_v44, %v6876_v44 }
 0x545   :  { %v6893_v63 = vcombine.high %v6885_v8, %v6885_v8  ;;  %v6892_v13 = vrot.slane %v6878_v43, %v11312_v3  ;;  %v6899_v51 = vpack.c.bf16 %v6885_v8, %v6885_v8 }
 0x547   :  { %v6900_v33 = vpack.c.bf16 %v6893_v63, %v6893_v63  ;;  %v6894_v24 = vcombine.high %v6892_v13, %v6892_v13  ;;  %v6901_v55 = vpack.c.bf16 %v6892_v13, %v6892_v13 }
 0x549   :  { %7198 = vmatprep.mubr.bf16.mxu0 %v6900_v33  ;;  %v6902_v31 = vpack.c.bf16 %v6894_v24, %v6894_v24 }
 0x54a   :  { %7199 = vmatmul.mubr.bf16.vlgmr.msra.gmra.mrb[48].mxu0 %v6899_v51 }
 0x54b   :  { %7238 = vmatprep.mubr.bf16.mxu1 %v6902_v31 }
 0x54c   :  { %7239 = vmatmul.mubr.bf16.vlgmr.msra.gmra.mrb[48].mxu1 %v6901_v55 }
 0x61d   :  { %v7993_v10 = vpop.f32.mrb[48].mxu0 }
 0x61e   :  { %v7994_v50 = vpop.f32.mrb[49].mxu0 }
 0x61f   :  { %v7995_v39 = vadd.f32 %v7994_v50, %v7993_v10  ;;  %v7996_v5 = vpop.f32.mrb[50].mxu0  ;;  %v8015_v35 = vpop.f32.mrb[48].mxu1 }
 0x620   :  { %v7997_v9 = vpop.f32.mrb[51].mxu0  ;;  %v8016_v3 = vpop.f32.mrb[49].mxu1 }
 0x621   :  { %v7201_v17 = vadd.f32 %v7995_v39, %v7590_v28  ;;  %v8017_v56 = vadd.f32 %v8016_v3, %v8015_v35  ;;  %v8018_v22 = vpop.f32.mrb[50].mxu1 }
 0x622   :  { %v8019_v6 = vpop.f32.mrb[51].mxu1 }
 0x623   :  { %v7241_v49 = vadd.f32 %v8017_v56, %v7201_v17 }
 0x625   :  { %7247 = vst.msk [vmem:[#allocation4] sm:$0x3] %vm7246_vm12, %v7241_v49 }
 0x626   :  { %9254 = shalt.err (!%p9251_p4)
}
 0x627   :  { %s9255_s19 = scalar_lea.hbm %s11502_s8, 32 }
 0x628   :  { %p9256_p5 = scmp.ne.s32.totalorder %s11502_s8, %s9255_s19  ;;  %p9259_p6 = scmp.lt.u32.totalorder %s9255_s19, %s11502_s8 }
 0x62a   :  { %p9261_p7 = pnand %p9259_p6, %p9256_p5 }
 0x62c   :  { %9264 = shalt.err (!%p9261_p7)
}
 0x62d   :  { %7257 = dma.vmem_to_hbm [thread:$0]  %s7255_s17, 32, %s11502_s8, [#allocation5]  }
 0x62e   :  { %9265 = dma.done.wait [#allocation5], 32  }
 0x62f   :  { %9266 = vsyncadd [#allocation5], 4294967264 }
 0x630   :  { %7261 = vsyncpa [#allocation5], 1 }

</bundles_post_ra>
